<compile_context>
chip_gen: v7x
topology: tpu7x:2x2x1
jax: 0.10.0
libtpu: 0.0.40
codegen_flags: <defaults>
</compile_context>

<pallas_src>
import functools

import numpy as np

import jax
import jax.numpy as jnp
from jax.experimental import pallas as pl
from jax.experimental.pallas import tpu as pltpu

EPS = 1e-5
LANES = 128


def _round_up(x, m):
    return (x + m - 1) // m * m


@functools.lru_cache(maxsize=None)
def _vmem_capacity_bytes():
    """Per-core VMEM capacity; conservative 64 MiB (v7x-safe) fallback."""
    try:
        return int(pltpu.get_tpu_info().vmem_capacity_bytes)
    except Exception:
        return 64 * 1024 * 1024


def _vmem_limit_bytes():
    cap = _vmem_capacity_bytes()
    return int(min(max(cap * 9 // 10, 32 * 1024 * 1024), 128 * 1024 * 1024))


def _plan_row_tiles(H, W, Cin, Cout):
    """Pick the row-block height: largest block whose per-step working set
    (double-buffered input/output/mask, double-buffered weights, f32 acc and
    headroom for the shifted tap operands) fits this chip's VMEM budget."""
    budget = int(_vmem_capacity_bytes() * 0.6)   # headroom for compiler scratch
    wp2 = W + 2
    cin_v = _round_up(Cin, LANES)                # VMEM lane footprint
    cout_v = _round_up(Cout, LANES)

    def usage(th):
        m_ext = th * wp2
        m_in = (th + 2) * wp2 + 8
        return (2 * m_in * cin_v * 2             # bf16 input block (2 buffers)
                + 2 * m_ext * cout_v * 2         # bf16 output block (2 buffers)
                + 2 * m_ext * LANES * 2          # (m_ext, 1) mask pads to 128 lanes
                + 2 * 9 * _round_up(Cin, 8) * cout_v * 2   # weights (2 buffers)
                + m_ext * cout_v * 4             # f32 accumulator
                + 2 * m_ext * cin_v * 2)         # shifted-tap operand headroom

    tile_h = max(H, 1)
    while tile_h > 1 and usage(tile_h) > budget:
        tile_h -= 1
    # Prefer a divisor of H close to the budget-optimal height (no padded junk
    # rows), but never degenerate on an awkward H: a ragged last block is
    # handled by the validity mask instead.
    for d in range(tile_h, 0, -1):
        if H % d == 0:
            if 4 * d >= 3 * tile_h:
                tile_h = d
            break
    nb = -(-H // tile_h)
    return tile_h, nb, nb * tile_h


# ---------------------------------------------------------------------------
# Pallas kernel: 3x3 conv on one halo'd row block + per-block BN statistics.
# ---------------------------------------------------------------------------
def _conv3x3_kernel(x_ref, w_ref, m_ref, y_ref, s_ref, *, wp2):
    """
    x_ref: ((tile_h+2)*(W+2) + 8, Cin) bf16  flattened zero-padded halo block
    w_ref: (9, Cin, Cout)              bf16  per-tap weights, tap = dy*3 + dx
    m_ref: (tile_h*(W+2), 1)           bf16  1.0 on valid output pixels
    y_ref: (tile_h*(W+2), Cout)        bf16  raw conv output ("extended rows")
    s_ref: (2, Cout)                   f32   [sum; sum of squares] of valid px
    """
    m_ext = y_ref.shape[0]
    acc = jnp.dot(x_ref[pl.ds(0, m_ext), :], w_ref[0],
                  preferred_element_type=jnp.float32)
    for tap in range(1, 9):
        off = (tap // 3) * wp2 + (tap % 3)       # dy*(W+2) + dx
        acc = acc + jnp.dot(x_ref[pl.ds(off, m_ext), :], w_ref[tap],
                            preferred_element_type=jnp.float32)
    y_ref[...] = acc.astype(y_ref.dtype)
    # One-pass channel statistics from the f32 accumulator (junk cols / padded
    # rows masked out).  Note: E[x^2]-E[x]^2 in f32 — adequate here, see notes.
    masked = acc * m_ref[...].astype(jnp.float32)
    s_ref[0:1, :] = jnp.sum(masked, axis=0, keepdims=True)
    s_ref[1:2, :] = jnp.sum(masked * acc, axis=0, keepdims=True)


def _valid_mask(H, W, tile_h, nb):
    """(nb, tile_h*(W+2), 1) bf16 mask: 1 on real output pixels, 0 on the two
    wrap-around junk columns and on padded rows of a ragged last block."""
    wp2 = W + 2
    col_ok = np.arange(wp2) < W
    m = np.zeros((nb, tile_h, wp2), np.float32)
    for b in range(nb):
        row_ok = (b * tile_h + np.arange(tile_h)) < H
        m[b] = row_ok[:, None] & col_ok[None, :]
    return jnp.asarray(m.reshape(nb, tile_h * wp2, 1), dtype=jnp.bfloat16)


def conv_bn_relu_stage(x, w_oihw, gamma, beta):
    """Conv2d(3x3, pad=1) + BatchNorm2d(train mode) + ReLU.  NHWC -> NHWC f32.

    Returns a lazy jnp expression: the scale/shift + ReLU epilogue fuses into
    the consumer (next stage's prep or the final layout transpose)."""
    N, H, W, Cin = x.shape
    Cout = w_oihw.shape[0]
    wp2 = W + 2
    tile_h, nb, h_pad = _plan_row_tiles(H, W, Cin, Cout)
    m_ext = tile_h * wp2
    m_in = (tile_h + 2) * wp2 + 8     # +8 slack rows keep the dy=2/dx=2 tap slice in bounds

    # Weights: (Cout, Cin, 3, 3) -> (9, Cin, Cout), tap index = dy*3 + dx.
    wt = jnp.transpose(w_oihw, (2, 3, 1, 0)).reshape(9, Cin, Cout).astype(jnp.bfloat16)

    # Input prep (single fused XLA pass: previous BN+ReLU -> bf16 cast, zero
    # pad, halo'd row blocks, flatten).  No 3x width unroll is materialized.
    xp = jnp.pad(x.astype(jnp.bfloat16),
                 ((0, 0), (1, 1 + h_pad - H), (1, 1), (0, 0)))
    if nb == 1:
        xb = xp[:, None]
    else:
        xb = jnp.stack(
            [xp[:, b * tile_h:b * tile_h + tile_h + 2] for b in range(nb)],
            axis=1)
    xb = xb.reshape(N, nb, (tile_h + 2) * wp2, Cin)
    xb = jnp.pad(xb, ((0, 0), (0, 0), (0, m_in - (tile_h + 2) * wp2), (0, 0)))

    mask = _valid_mask(H, W, tile_h, nb)

    y_ext, part = pl.pallas_call(
        functools.partial(_conv3x3_kernel, wp2=wp2),
        out_shape=(
            jax.ShapeDtypeStruct((N, nb, m_ext, Cout), jnp.bfloat16),
            jax.ShapeDtypeStruct((N, nb, 2, Cout), jnp.float32),
        ),
        grid=(N, nb),
        in_specs=[
            pl.BlockSpec((None, None, m_in, Cin), lambda n, b: (n, b, 0, 0)),
            # Grid-invariant weight block (single DMA; the tile plan already
            # charges for its default double buffer).
            pl.BlockSpec((9, Cin, Cout), lambda n, b: (0, 0, 0)),
            pl.BlockSpec((None, m_ext, 1), lambda n, b: (b, 0, 0)),
        ],
        out_specs=(
            pl.BlockSpec((None, None, m_ext, Cout), lambda n, b: (n, b, 0, 0)),
            pl.BlockSpec((None, None, 2, Cout), lambda n, b: (n, b, 0, 0)),
        ),
        compiler_params=pltpu.CompilerParams(
            dimension_semantics=("parallel", "parallel"),
            vmem_limit_bytes=_vmem_limit_bytes()),
    )(xb, wt, mask)

    # Training-mode BN batch stats (biased variance over N*H*W) folded into a
    # single per-channel scale/shift; applied with the ReLU in plain jnp so XLA
    # fuses it — no standalone Pallas pass, no extra HBM round trip.
    cnt = jnp.float32(N * H * W)
    sums = jnp.sum(part, axis=(0, 1))                      # (2, Cout)
    mean = sums[0] / cnt
    var = jnp.maximum(sums[1] / cnt - mean * mean, 0.0)
    scale = gamma * jax.lax.rsqrt(var + EPS)
    shift = beta - mean * scale

    y = y_ext.reshape(N, h_pad, wp2, Cout)[:, :H, :W, :]   # drop junk cols/rows
    return jnp.maximum(y.astype(jnp.float32) * scale + shift, 0.0)


def double_conv(x_nhwc, params):
    h = conv_bn_relu_stage(x_nhwc, params["w1"], params["g1"], params["be1"])
    return conv_bn_relu_stage(h, params["w2"], params["g2"], params["be2"])


# ---------------------------------------------------------------------------
# Bilinear 2x upsample (align_corners=True) via static interpolation matrices.
# ---------------------------------------------------------------------------
def _interp_matrix_x2(n_in):
    n_out = 2 * n_in
    m = np.zeros((n_out, n_in), np.float32)
    if n_in == 1:
        m[:, 0] = 1.0
        return m
    src = np.arange(n_out, dtype=np.float64) * (n_in - 1) / (n_out - 1)
    i0 = np.clip(np.floor(src).astype(np.int64), 0, n_in - 1)
    i1 = np.minimum(i0 + 1, n_in - 1)
    frac = (src - i0).astype(np.float32)
    rows = np.arange(n_out)
    m[rows, i0] += 1.0 - frac
    m[rows, i1] += frac
    return m


def _bilinear_upsample_x2(x):
    """2x bilinear, align_corners=True (matches nn.Upsample in Up).  NHWC."""
    N, H, W, C = x.shape
    mh = jnp.asarray(_interp_matrix_x2(H))
    mw = jnp.asarray(_interp_matrix_x2(W))
    x = jnp.einsum("oh,nhwc->nowc", mh, x, precision=jax.lax.Precision.HIGHEST)
    x = jnp.einsum("pw,nhwc->nhpc", mw, x, precision=jax.lax.Precision.HIGHEST)
    return x


def up_forward(x1_nchw, x2_nchw, params):
    """Forward of Up(bilinear=True).  Inputs/outputs in PyTorch NCHW layout."""
    x1 = jnp.transpose(x1_nchw, (0, 2, 3, 1))               # NCHW -> NHWC
    x2 = jnp.transpose(x2_nchw, (0, 2, 3, 1))
    x1 = _bilinear_upsample_x2(x1)
    dy = x2.shape[1] - x1.shape[1]
    dx = x2.shape[2] - x1.shape[2]
    x1 = jnp.pad(x1, ((0, 0), (dy // 2, dy - dy // 2),
                      (dx // 2, dx - dx // 2), (0, 0)))
    x = jnp.concatenate([x2, x1], axis=-1)                   # torch.cat(dim=1)
    y = double_conv(x, params)
    return jnp.transpose(y, (0, 3, 1, 2))                    # NHWC -> NCHW


def init_up_params(key, in_channels, out_channels):
    """Up(in_channels, out_channels, bilinear=True): DoubleConv(in, out, in//2)."""
    mid = in_channels // 2
    ks = jax.random.split(key, 4)

    def conv_init(k, cout, cin):
        kw, kb = jax.random.split(k)
        bound = 1.0 / jnp.sqrt(cin * 9.0)
        w = jax.random.uniform(kw, (cout, cin, 3, 3), jnp.float32, -bound, bound)
        b = jax.random.uniform(kb, (cout,), jnp.float32, -bound, bound)
        return w, b

    w1, b1 = conv_init(ks[0], mid, in_channels)
    w2, b2 = conv_init(ks[1], out_channels, mid)
    g1 = 1.0 + 0.1 * jax.random.normal(ks[2], (mid,), jnp.float32)
    be1 = 0.05 * jnp.arange(mid, dtype=jnp.float32)
    g2 = 1.0 + 0.1 * jax.random.normal(ks[3], (out_channels,), jnp.float32)
    be2 = -0.05 * jnp.arange(out_channels, dtype=jnp.float32)
    # b1/b2 only mirror nn.Conv2d parameters: under training-mode BatchNorm the
    # conv bias is cancelled by the batch-mean subtraction, so kernels skip it.
    return dict(w1=w1, b1=b1, g1=g1, be1=be1, w2=w2, b2=b2, g2=g2, be2=be2)


def _reference_up(x1_nchw, x2_nchw, params):
    """Plain-XLA f32 reference (with conv bias) for a numerical sanity check."""
    x1 = jnp.transpose(x1_nchw, (0, 2, 3, 1))
    x2 = jnp.transpose(x2_nchw, (0, 2, 3, 1))
    x1 = _bilinear_upsample_x2(x1)
    dy = x2.shape[1] - x1.shape[1]
    dx = x2.shape[2] - x1.shape[2]
    x1 = jnp.pad(x1, ((0, 0), (dy // 2, dy - dy // 2),
                      (dx // 2, dx - dx // 2), (0, 0)))
    x = jnp.concatenate([x2, x1], axis=-1)

    def stage(h, w, b, g, be):
        y = jax.lax.conv_general_dilated(
            h, jnp.transpose(w, (2, 3, 1, 0)), (1, 1), "SAME",
            dimension_numbers=("NHWC", "HWIO", "NHWC"),
            precision=jax.lax.Precision.HIGHEST) + b
        mu = jnp.mean(y, axis=(0, 1, 2))
        var = jnp.mean(jnp.square(y - mu), axis=(0, 1, 2))
        return jnp.maximum((y - mu) * jax.lax.rsqrt(var + EPS) * g + be, 0.0)

    h = stage(x, params["w1"], params["b1"], params["g1"], params["be1"])
    h = stage(h, params["w2"], params["b2"], params["g2"], params["be2"])
    return jnp.transpose(h, (0, 3, 1, 2))


if __name__ == "__main__":
    key = jax.random.PRNGKey(0)
    k1, k2, kp = jax.random.split(key, 3)

    in_channels, out_channels = 8, 8
    N = 2
    # x1: low-res decoder feature (in_channels // 2 channels, half spatial size)
    # x2: skip connection          (in_channels // 2 channels, full spatial size)
    x1 = jax.random.normal(k1, (N, in_channels // 2, 8, 8), jnp.float32)
    x2 = jax.random.normal(k2, (N, in_channels // 2, 16, 16), jnp.float32)
    params = init_up_params(kp, in_channels, out_channels)

    up_fn = jax.jit(up_forward)
    y = jax.block_until_ready(up_fn(x1, x2, params))
    assert y.shape == (N, out_channels, 16, 16), y.shape
    assert bool(jnp.all(jnp.isfinite(y)))

    # Sanity-check against a plain-XLA f32 reference (bf16 conv inputs =>
    # expect small differences; tolerance reflects that).
    y_ref = jax.block_until_ready(jax.jit(_reference_up)(x1, x2, params))
    max_err = float(jnp.max(jnp.abs(y - y_ref)))
    assert max_err < 1e-1, f"max abs err vs reference: {max_err}"

    print("KERNEL_OK")
</pallas_src>

<mosaic_0001>
module attributes {stable_mosaic.version = 11 : i64} {
  func.func @_conv3x3_kernel(%arg0: i32, %arg1: i32, %arg2: memref<1x1x332x8xbf16, #tpu.memory_space<vmem>>, %arg3: memref<9x8x4xbf16, #tpu.memory_space<vmem>>, %arg4: memref<1x288x1xbf16, #tpu.memory_space<vmem>>, %arg5: memref<1x1x288x4xbf16, #tpu.memory_space<vmem>>, %arg6: memref<1x1x2x4xf32, #tpu.memory_space<vmem>>) attributes {dimension_semantics = [#tpu.dimension_semantics<parallel>, #tpu.dimension_semantics<parallel>], iteration_bounds = array<i64: 2, 1>, scalar_prefetch = 0 : i64, scratch_operands = 0 : i64, tpu.core_type = #tpu.core_type<tc>, window_params = [{transform_indices = @transform_0, window_bounds = array<i64: 1, 1, 332, 8>}, {pipeline_mode = #tpu.pipeline_mode<synchronous>, transform_indices = @transform_1, window_bounds = array<i64: 9, 8, 4>}, {transform_indices = @transform_2, window_bounds = array<i64: 1, 288, 1>}, {transform_indices = @transform_3, window_bounds = array<i64: 1, 1, 288, 4>}, {transform_indices = @transform_4, window_bounds = array<i64: 1, 1, 2, 4>}]} {
    %c0 = arith.constant 0 : index
    %c0_0 = arith.constant 0 : index
    %c0_1 = arith.constant 0 : index
    %c0_2 = arith.constant 0 : index
    %0 = vector.load %arg2[%c0, %c0_0, %c0_1, %c0_2] : memref<1x1x332x8xbf16, #tpu.memory_space<vmem>>, vector<1x1x288x8xbf16>
    %1 = vector.shape_cast %0 : vector<1x1x288x8xbf16> to vector<288x8xbf16>
    %c0_3 = arith.constant 0 : index
    %c0_4 = arith.constant 0 : index
    %c0_5 = arith.constant 0 : index
    %2 = vector.load %arg3[%c0_3, %c0_4, %c0_5] : memref<9x8x4xbf16, #tpu.memory_space<vmem>>, vector<1x8x4xbf16>
    %3 = vector.shape_cast %2 : vector<1x8x4xbf16> to vector<8x4xbf16>
    %cst = arith.constant dense<0.000000e+00> : vector<288x4xf32>
    %4 = tpu.matmul %1, %3, %cst {dimension_numbers = #tpu.dot_dimension_numbers<[1], [0], [0], [1], [0, 0, 1, 1], [], []>} : vector<288x8xbf16>, vector<8x4xbf16>, vector<288x4xf32> -> vector<288x4xf32>
    %c0_6 = arith.constant 0 : index
    %c0_7 = arith.constant 0 : index
    %c1 = arith.constant 1 : index
    %c0_8 = arith.constant 0 : index
    %5 = vector.load %arg2[%c0_6, %c0_7, %c1, %c0_8] : memref<1x1x332x8xbf16, #tpu.memory_space<vmem>>, vector<1x1x288x8xbf16>
    %6 = vector.shape_cast %5 : vector<1x1x288x8xbf16> to vector<288x8xbf16>
    %c1_9 = arith.constant 1 : index
    %c0_10 = arith.constant 0 : index
    %c0_11 = arith.constant 0 : index
    %7 = vector.load %arg3[%c1_9, %c0_10, %c0_11] : memref<9x8x4xbf16, #tpu.memory_space<vmem>>, vector<1x8x4xbf16>
    %8 = vector.shape_cast %7 : vector<1x8x4xbf16> to vector<8x4xbf16>
    %cst_12 = arith.constant dense<0.000000e+00> : vector<288x4xf32>
    %9 = tpu.matmul %6, %8, %cst_12 {dimension_numbers = #tpu.dot_dimension_numbers<[1], [0], [0], [1], [0, 0, 1, 1], [], []>} : vector<288x8xbf16>, vector<8x4xbf16>, vector<288x4xf32> -> vector<288x4xf32>
    %10 = arith.addf %4, %9 : vector<288x4xf32>
    %c0_13 = arith.constant 0 : index
    %c0_14 = arith.constant 0 : index
    %c2 = arith.constant 2 : index
    %c0_15 = arith.constant 0 : index
    %11 = vector.load %arg2[%c0_13, %c0_14, %c2, %c0_15] : memref<1x1x332x8xbf16, #tpu.memory_space<vmem>>, vector<1x1x288x8xbf16>
    %12 = vector.shape_cast %11 : vector<1x1x288x8xbf16> to vector<288x8xbf16>
    %c2_16 = arith.constant 2 : index
    %c0_17 = arith.constant 0 : index
    %c0_18 = arith.constant 0 : index
    %13 = vector.load %arg3[%c2_16, %c0_17, %c0_18] : memref<9x8x4xbf16, #tpu.memory_space<vmem>>, vector<1x8x4xbf16>
    %14 = vector.shape_cast %13 : vector<1x8x4xbf16> to vector<8x4xbf16>
    %cst_19 = arith.constant dense<0.000000e+00> : vector<288x4xf32>
    %15 = tpu.matmul %12, %14, %cst_19 {dimension_numbers = #tpu.dot_dimension_numbers<[1], [0], [0], [1], [0, 0, 1, 1], [], []>} : vector<288x8xbf16>, vector<8x4xbf16>, vector<288x4xf32> -> vector<288x4xf32>
    %16 = arith.addf %10, %15 : vector<288x4xf32>
    %c0_20 = arith.constant 0 : index
    %c0_21 = arith.constant 0 : index
    %c18 = arith.constant 18 : index
    %c0_22 = arith.constant 0 : index
    %17 = vector.load %arg2[%c0_20, %c0_21, %c18, %c0_22] : memref<1x1x332x8xbf16, #tpu.memory_space<vmem>>, vector<1x1x288x8xbf16>
    %18 = vector.shape_cast %17 : vector<1x1x288x8xbf16> to vector<288x8xbf16>
    %c3 = arith.constant 3 : index
    %c0_23 = arith.constant 0 : index
    %c0_24 = arith.constant 0 : index
    %19 = vector.load %arg3[%c3, %c0_23, %c0_24] : memref<9x8x4xbf16, #tpu.memory_space<vmem>>, vector<1x8x4xbf16>
    %20 = vector.shape_cast %19 : vector<1x8x4xbf16> to vector<8x4xbf16>
    %cst_25 = arith.constant dense<0.000000e+00> : vector<288x4xf32>
    %21 = tpu.matmul %18, %20, %cst_25 {dimension_numbers = #tpu.dot_dimension_numbers<[1], [0], [0], [1], [0, 0, 1, 1], [], []>} : vector<288x8xbf16>, vector<8x4xbf16>, vector<288x4xf32> -> vector<288x4xf32>
    %22 = arith.addf %16, %21 : vector<288x4xf32>
    %c0_26 = arith.constant 0 : index
    %c0_27 = arith.constant 0 : index
    %c19 = arith.constant 19 : index
    %c0_28 = arith.constant 0 : index
    %23 = vector.load %arg2[%c0_26, %c0_27, %c19, %c0_28] : memref<1x1x332x8xbf16, #tpu.memory_space<vmem>>, vector<1x1x288x8xbf16>
    %24 = vector.shape_cast %23 : vector<1x1x288x8xbf16> to vector<288x8xbf16>
    %c4 = arith.constant 4 : index
    %c0_29 = arith.constant 0 : index
    %c0_30 = arith.constant 0 : index
    %25 = vector.load %arg3[%c4, %c0_29, %c0_30] : memref<9x8x4xbf16, #tpu.memory_space<vmem>>, vector<1x8x4xbf16>
    %26 = vector.shape_cast %25 : vector<1x8x4xbf16> to vector<8x4xbf16>
    %cst_31 = arith.constant dense<0.000000e+00> : vector<288x4xf32>
    %27 = tpu.matmul %24, %26, %cst_31 {dimension_numbers = #tpu.dot_dimension_numbers<[1], [0], [0], [1], [0, 0, 1, 1], [], []>} : vector<288x8xbf16>, vector<8x4xbf16>, vector<288x4xf32> -> vector<288x4xf32>
    %28 = arith.addf %22, %27 : vector<288x4xf32>
    %c0_32 = arith.constant 0 : index
    %c0_33 = arith.constant 0 : index
    %c20 = arith.constant 20 : index
    %c0_34 = arith.constant 0 : index
    %29 = vector.load %arg2[%c0_32, %c0_33, %c20, %c0_34] : memref<1x1x332x8xbf16, #tpu.memory_space<vmem>>, vector<1x1x288x8xbf16>
    %30 = vector.shape_cast %29 : vector<1x1x288x8xbf16> to vector<288x8xbf16>
    %c5 = arith.constant 5 : index
    %c0_35 = arith.constant 0 : index
    %c0_36 = arith.constant 0 : index
    %31 = vector.load %arg3[%c5, %c0_35, %c0_36] : memref<9x8x4xbf16, #tpu.memory_space<vmem>>, vector<1x8x4xbf16>
    %32 = vector.shape_cast %31 : vector<1x8x4xbf16> to vector<8x4xbf16>
    %cst_37 = arith.constant dense<0.000000e+00> : vector<288x4xf32>
    %33 = tpu.matmul %30, %32, %cst_37 {dimension_numbers = #tpu.dot_dimension_numbers<[1], [0], [0], [1], [0, 0, 1, 1], [], []>} : vector<288x8xbf16>, vector<8x4xbf16>, vector<288x4xf32> -> vector<288x4xf32>
    %34 = arith.addf %28, %33 : vector<288x4xf32>
    %c0_38 = arith.constant 0 : index
    %c0_39 = arith.constant 0 : index
    %c36 = arith.constant 36 : index
    %c0_40 = arith.constant 0 : index
    %35 = vector.load %arg2[%c0_38, %c0_39, %c36, %c0_40] : memref<1x1x332x8xbf16, #tpu.memory_space<vmem>>, vector<1x1x288x8xbf16>
    %36 = vector.shape_cast %35 : vector<1x1x288x8xbf16> to vector<288x8xbf16>
    %c6 = arith.constant 6 : index
    %c0_41 = arith.constant 0 : index
    %c0_42 = arith.constant 0 : index
    %37 = vector.load %arg3[%c6, %c0_41, %c0_42] : memref<9x8x4xbf16, #tpu.memory_space<vmem>>, vector<1x8x4xbf16>
    %38 = vector.shape_cast %37 : vector<1x8x4xbf16> to vector<8x4xbf16>
    %cst_43 = arith.constant dense<0.000000e+00> : vector<288x4xf32>
    %39 = tpu.matmul %36, %38, %cst_43 {dimension_numbers = #tpu.dot_dimension_numbers<[1], [0], [0], [1], [0, 0, 1, 1], [], []>} : vector<288x8xbf16>, vector<8x4xbf16>, vector<288x4xf32> -> vector<288x4xf32>
    %40 = arith.addf %34, %39 : vector<288x4xf32>
    %c0_44 = arith.constant 0 : index
    %c0_45 = arith.constant 0 : index
    %c37 = arith.constant 37 : index
    %c0_46 = arith.constant 0 : index
    %41 = vector.load %arg2[%c0_44, %c0_45, %c37, %c0_46] : memref<1x1x332x8xbf16, #tpu.memory_space<vmem>>, vector<1x1x288x8xbf16>
    %42 = vector.shape_cast %41 : vector<1x1x288x8xbf16> to vector<288x8xbf16>
    %c7 = arith.constant 7 : index
    %c0_47 = arith.constant 0 : index
    %c0_48 = arith.constant 0 : index
    %43 = vector.load %arg3[%c7, %c0_47, %c0_48] : memref<9x8x4xbf16, #tpu.memory_space<vmem>>, vector<1x8x4xbf16>
    %44 = vector.shape_cast %43 : vector<1x8x4xbf16> to vector<8x4xbf16>
    %cst_49 = arith.constant dense<0.000000e+00> : vector<288x4xf32>
    %45 = tpu.matmul %42, %44, %cst_49 {dimension_numbers = #tpu.dot_dimension_numbers<[1], [0], [0], [1], [0, 0, 1, 1], [], []>} : vector<288x8xbf16>, vector<8x4xbf16>, vector<288x4xf32> -> vector<288x4xf32>
    %46 = arith.addf %40, %45 : vector<288x4xf32>
    %c0_50 = arith.constant 0 : index
    %c0_51 = arith.constant 0 : index
    %c38 = arith.constant 38 : index
    %c0_52 = arith.constant 0 : index
    %47 = vector.load %arg2[%c0_50, %c0_51, %c38, %c0_52] : memref<1x1x332x8xbf16, #tpu.memory_space<vmem>>, vector<1x1x288x8xbf16>
    %48 = vector.shape_cast %47 : vector<1x1x288x8xbf16> to vector<288x8xbf16>
    %c8 = arith.constant 8 : index
    %c0_53 = arith.constant 0 : index
    %c0_54 = arith.constant 0 : index
    %49 = vector.load %arg3[%c8, %c0_53, %c0_54] : memref<9x8x4xbf16, #tpu.memory_space<vmem>>, vector<1x8x4xbf16>
    %50 = vector.shape_cast %49 : vector<1x8x4xbf16> to vector<8x4xbf16>
    %cst_55 = arith.constant dense<0.000000e+00> : vector<288x4xf32>
    %51 = tpu.matmul %48, %50, %cst_55 {dimension_numbers = #tpu.dot_dimension_numbers<[1], [0], [0], [1], [0, 0, 1, 1], [], []>} : vector<288x8xbf16>, vector<8x4xbf16>, vector<288x4xf32> -> vector<288x4xf32>
    %52 = arith.addf %46, %51 : vector<288x4xf32>
    %53 = arith.truncf %52 : vector<288x4xf32> to vector<288x4xbf16>
    %c0_56 = arith.constant 0 : index
    %c0_57 = arith.constant 0 : index
    %c0_58 = arith.constant 0 : index
    %c0_59 = arith.constant 0 : index
    %54 = vector.load %arg5[%c0_56, %c0_57, %c0_58, %c0_59] : memref<1x1x288x4xbf16, #tpu.memory_space<vmem>>, vector<1x1x288x4xbf16>
    %55 = vector.shape_cast %54 : vector<1x1x288x4xbf16> to vector<288x4xbf16>
    %56 = vector.shape_cast %53 : vector<288x4xbf16> to vector<1x1x288x4xbf16>
    tpu.vector_store %arg5[%c0_56, %c0_57, %c0_58, %c0_59], %56 {strides = array<i32>} : memref<1x1x288x4xbf16, #tpu.memory_space<vmem>>, vector<1x1x288x4xbf16>,
    %c0_60 = arith.constant 0 : index
    %c0_61 = arith.constant 0 : index
    %c0_62 = arith.constant 0 : index
    %57 = vector.load %arg4[%c0_60, %c0_61, %c0_62] : memref<1x288x1xbf16, #tpu.memory_space<vmem>>, vector<1x288x1xbf16>
    %58 = vector.shape_cast %57 : vector<1x288x1xbf16> to vector<288x1xbf16>
    %59 = arith.extf %58 : vector<288x1xbf16> to vector<288x1xf32>
    %60 = vector.broadcast %59 : vector<288x1xf32> to vector<288x4xf32>
    %61 = arith.mulf %52, %60 : vector<288x4xf32>
    %cst_63 = arith.constant dense<0.000000e+00> : vector<4xf32>
    %62 = vector.multi_reduction <add>, %61, %cst_63 [0] : vector<288x4xf32> to vector<4xf32>
    %63 = vector.shape_cast %62 : vector<4xf32> to vector<1x4xf32>
    %c0_64 = arith.constant 0 : index
    %c0_65 = arith.constant 0 : index
    %c0_66 = arith.constant 0 : index
    %c0_67 = arith.constant 0 : index
    %64 = vector.load %arg6[%c0_64, %c0_65, %c0_66, %c0_67] : memref<1x1x2x4xf32, #tpu.memory_space<vmem>>, vector<1x1x1x4xf32>
    %65 = vector.shape_cast %64 : vector<1x1x1x4xf32> to vector<1x4xf32>
    %66 = vector.shape_cast %63 : vector<1x4xf32> to vector<1x1x1x4xf32>
    tpu.vector_store %arg6[%c0_64, %c0_65, %c0_66, %c0_67], %66 {strides = array<i32>} : memref<1x1x2x4xf32, #tpu.memory_space<vmem>>, vector<1x1x1x4xf32>,
    %67 = arith.mulf %61, %52 : vector<288x4xf32>
    %cst_68 = arith.constant dense<0.000000e+00> : vector<4xf32>
    %68 = vector.multi_reduction <add>, %67, %cst_68 [0] : vector<288x4xf32> to vector<4xf32>
    %69 = vector.shape_cast %68 : vector<4xf32> to vector<1x4xf32>
    %c0_69 = arith.constant 0 : index
    %c0_70 = arith.constant 0 : index
    %c1_71 = arith.constant 1 : index
    %c0_72 = arith.constant 0 : index
    %70 = vector.load %arg6[%c0_69, %c0_70, %c1_71, %c0_72] : memref<1x1x2x4xf32, #tpu.memory_space<vmem>>, vector<1x1x1x4xf32>
    %71 = vector.shape_cast %70 : vector<1x1x1x4xf32> to vector<1x4xf32>
    %72 = vector.shape_cast %69 : vector<1x4xf32> to vector<1x1x1x4xf32>
    tpu.vector_store %arg6[%c0_69, %c0_70, %c1_71, %c0_72], %72 {strides = array<i32>} : memref<1x1x2x4xf32, #tpu.memory_space<vmem>>, vector<1x1x1x4xf32>,
    return
  }
  func.func @transform_0(%arg0: i32, %arg1: i32) -> (i32, i32, i32, i32) {
    %c0_i32 = arith.constant 0 : i32
    %c0_i32_0 = arith.constant 0 : i32
    %c0_i32_1 = arith.constant 0 : i32
    return %arg0, %arg1, %c0_i32, %c0_i32_0 : i32, i32, i32, i32
  }
  func.func @transform_1(%arg0: i32, %arg1: i32) -> (i32, i32, i32) {
    %c0_i32 = arith.constant 0 : i32
    %c0_i32_0 = arith.constant 0 : i32
    %c0_i32_1 = arith.constant 0 : i32
    %c0_i32_2 = arith.constant 0 : i32
    return %c0_i32, %c0_i32_0, %c0_i32_1 : i32, i32, i32
  }
  func.func @transform_2(%arg0: i32, %arg1: i32) -> (i32, i32, i32) {
    %c0_i32 = arith.constant 0 : i32
    %c0_i32_0 = arith.constant 0 : i32
    %c0_i32_1 = arith.constant 0 : i32
    return %arg1, %c0_i32, %c0_i32_0 : i32, i32, i32
  }
  func.func @transform_3(%arg0: i32, %arg1: i32) -> (i32, i32, i32, i32) {
    %c0_i32 = arith.constant 0 : i32
    %c0_i32_0 = arith.constant 0 : i32
    %c0_i32_1 = arith.constant 0 : i32
    return %arg0, %arg1, %c0_i32, %c0_i32_0 : i32, i32, i32, i32
  }
  func.func @transform_4(%arg0: i32, %arg1: i32) -> (i32, i32, i32, i32) {
    %c0_i32 = arith.constant 0 : i32
    %c0_i32_0 = arith.constant 0 : i32
    %c0_i32_1 = arith.constant 0 : i32
    return %arg0, %arg1, %c0_i32, %c0_i32_0 : i32, i32, i32, i32
  }
}

module attributes {stable_mosaic.version = 11 : i64} {
  func.func @_conv3x3_kernel(%arg0: i32, %arg1: i32, %arg2: memref<1x1x332x4xbf16, #tpu.memory_space<vmem>>, %arg3: memref<9x4x8xbf16, #tpu.memory_space<vmem>>, %arg4: memref<1x288x1xbf16, #tpu.memory_space<vmem>>, %arg5: memref<1x1x288x8xbf16, #tpu.memory_space<vmem>>, %arg6: memref<1x1x2x8xf32, #tpu.memory_space<vmem>>) attributes {dimension_semantics = [#tpu.dimension_semantics<parallel>, #tpu.dimension_semantics<parallel>], iteration_bounds = array<i64: 2, 1>, scalar_prefetch = 0 : i64, scratch_operands = 0 : i64, tpu.core_type = #tpu.core_type<tc>, window_params = [{transform_indices = @transform_0, window_bounds = array<i64: 1, 1, 332, 4>}, {pipeline_mode = #tpu.pipeline_mode<synchronous>, transform_indices = @transform_1, window_bounds = array<i64: 9, 4, 8>}, {transform_indices = @transform_2, window_bounds = array<i64: 1, 288, 1>}, {transform_indices = @transform_3, window_bounds = array<i64: 1, 1, 288, 8>}, {transform_indices = @transform_4, window_bounds = array<i64: 1, 1, 2, 8>}]} {
    %c0 = arith.constant 0 : index
    %c0_0 = arith.constant 0 : index
    %c0_1 = arith.constant 0 : index
    %c0_2 = arith.constant 0 : index
    %0 = vector.load %arg2[%c0, %c0_0, %c0_1, %c0_2] : memref<1x1x332x4xbf16, #tpu.memory_space<vmem>>, vector<1x1x288x4xbf16>
    %1 = vector.shape_cast %0 : vector<1x1x288x4xbf16> to vector<288x4xbf16>
    %c0_3 = arith.constant 0 : index
    %c0_4 = arith.constant 0 : index
    %c0_5 = arith.constant 0 : index
    %2 = vector.load %arg3[%c0_3, %c0_4, %c0_5] : memref<9x4x8xbf16, #tpu.memory_space<vmem>>, vector<1x4x8xbf16>
    %3 = vector.shape_cast %2 : vector<1x4x8xbf16> to vector<4x8xbf16>
    %cst = arith.constant dense<0.000000e+00> : vector<288x8xf32>
    %4 = tpu.matmul %1, %3, %cst {dimension_numbers = #tpu.dot_dimension_numbers<[1], [0], [0], [1], [0, 0, 1, 1], [], []>} : vector<288x4xbf16>, vector<4x8xbf16>, vector<288x8xf32> -> vector<288x8xf32>
    %c0_6 = arith.constant 0 : index
    %c0_7 = arith.constant 0 : index
    %c1 = arith.constant 1 : index
    %c0_8 = arith.constant 0 : index
    %5 = vector.load %arg2[%c0_6, %c0_7, %c1, %c0_8] : memref<1x1x332x4xbf16, #tpu.memory_space<vmem>>, vector<1x1x288x4xbf16>
    %6 = vector.shape_cast %5 : vector<1x1x288x4xbf16> to vector<288x4xbf16>
    %c1_9 = arith.constant 1 : index
    %c0_10 = arith.constant 0 : index
    %c0_11 = arith.constant 0 : index
    %7 = vector.load %arg3[%c1_9, %c0_10, %c0_11] : memref<9x4x8xbf16, #tpu.memory_space<vmem>>, vector<1x4x8xbf16>
    %8 = vector.shape_cast %7 : vector<1x4x8xbf16> to vector<4x8xbf16>
    %cst_12 = arith.constant dense<0.000000e+00> : vector<288x8xf32>
    %9 = tpu.matmul %6, %8, %cst_12 {dimension_numbers = #tpu.dot_dimension_numbers<[1], [0], [0], [1], [0, 0, 1, 1], [], []>} : vector<288x4xbf16>, vector<4x8xbf16>, vector<288x8xf32> -> vector<288x8xf32>
    %10 = arith.addf %4, %9 : vector<288x8xf32>
    %c0_13 = arith.constant 0 : index
    %c0_14 = arith.constant 0 : index
    %c2 = arith.constant 2 : index
    %c0_15 = arith.constant 0 : index
    %11 = vector.load %arg2[%c0_13, %c0_14, %c2, %c0_15] : memref<1x1x332x4xbf16, #tpu.memory_space<vmem>>, vector<1x1x288x4xbf16>
    %12 = vector.shape_cast %11 : vector<1x1x288x4xbf16> to vector<288x4xbf16>
    %c2_16 = arith.constant 2 : index
    %c0_17 = arith.constant 0 : index
    %c0_18 = arith.constant 0 : index
    %13 = vector.load %arg3[%c2_16, %c0_17, %c0_18] : memref<9x4x8xbf16, #tpu.memory_space<vmem>>, vector<1x4x8xbf16>
    %14 = vector.shape_cast %13 : vector<1x4x8xbf16> to vector<4x8xbf16>
    %cst_19 = arith.constant dense<0.000000e+00> : vector<288x8xf32>
    %15 = tpu.matmul %12, %14, %cst_19 {dimension_numbers = #tpu.dot_dimension_numbers<[1], [0], [0], [1], [0, 0, 1, 1], [], []>} : vector<288x4xbf16>, vector<4x8xbf16>, vector<288x8xf32> -> vector<288x8xf32>
    %16 = arith.addf %10, %15 : vector<288x8xf32>
    %c0_20 = arith.constant 0 : index
    %c0_21 = arith.constant 0 : index
    %c18 = arith.constant 18 : index
    %c0_22 = arith.constant 0 : index
    %17 = vector.load %arg2[%c0_20, %c0_21, %c18, %c0_22] : memref<1x1x332x4xbf16, #tpu.memory_space<vmem>>, vector<1x1x288x4xbf16>
    %18 = vector.shape_cast %17 : vector<1x1x288x4xbf16> to vector<288x4xbf16>
    %c3 = arith.constant 3 : index
    %c0_23 = arith.constant 0 : index
    %c0_24 = arith.constant 0 : index
    %19 = vector.load %arg3[%c3, %c0_23, %c0_24] : memref<9x4x8xbf16, #tpu.memory_space<vmem>>, vector<1x4x8xbf16>
    %20 = vector.shape_cast %19 : vector<1x4x8xbf16> to vector<4x8xbf16>
    %cst_25 = arith.constant dense<0.000000e+00> : vector<288x8xf32>
    %21 = tpu.matmul %18, %20, %cst_25 {dimension_numbers = #tpu.dot_dimension_numbers<[1], [0], [0], [1], [0, 0, 1, 1], [], []>} : vector<288x4xbf16>, vector<4x8xbf16>, vector<288x8xf32> -> vector<288x8xf32>
    %22 = arith.addf %16, %21 : vector<288x8xf32>
    %c0_26 = arith.constant 0 : index
    %c0_27 = arith.constant 0 : index
    %c19 = arith.constant 19 : index
    %c0_28 = arith.constant 0 : index
    %23 = vector.load %arg2[%c0_26, %c0_27, %c19, %c0_28] : memref<1x1x332x4xbf16, #tpu.memory_space<vmem>>, vector<1x1x288x4xbf16>
    %24 = vector.shape_cast %23 : vector<1x1x288x4xbf16> to vector<288x4xbf16>
    %c4 = arith.constant 4 : index
    %c0_29 = arith.constant 0 : index
    %c0_30 = arith.constant 0 : index
    %25 = vector.load %arg3[%c4, %c0_29, %c0_30] : memref<9x4x8xbf16, #tpu.memory_space<vmem>>, vector<1x4x8xbf16>
    %26 = vector.shape_cast %25 : vector<1x4x8xbf16> to vector<4x8xbf16>
    %cst_31 = arith.constant dense<0.000000e+00> : vector<288x8xf32>
    %27 = tpu.matmul %24, %26, %cst_31 {dimension_numbers = #tpu.dot_dimension_numbers<[1], [0], [0], [1], [0, 0, 1, 1], [], []>} : vector<288x4xbf16>, vector<4x8xbf16>, vector<288x8xf32> -> vector<288x8xf32>
    %28 = arith.addf %22, %27 : vector<288x8xf32>
    %c0_32 = arith.constant 0 : index
    %c0_33 = arith.constant 0 : index
    %c20 = arith.constant 20 : index
    %c0_34 = arith.constant 0 : index
    %29 = vector.load %arg2[%c0_32, %c0_33, %c20, %c0_34] : memref<1x1x332x4xbf16, #tpu.memory_space<vmem>>, vector<1x1x288x4xbf16>
    %30 = vector.shape_cast %29 : vector<1x1x288x4xbf16> to vector<288x4xbf16>
    %c5 = arith.constant 5 : index
    %c0_35 = arith.constant 0 : index
    %c0_36 = arith.constant 0 : index
    %31 = vector.load %arg3[%c5, %c0_35, %c0_36] : memref<9x4x8xbf16, #tpu.memory_space<vmem>>, vector<1x4x8xbf16>
    %32 = vector.shape_cast %31 : vector<1x4x8xbf16> to vector<4x8xbf16>
    %cst_37 = arith.constant dense<0.000000e+00> : vector<288x8xf32>
    %33 = tpu.matmul %30, %32, %cst_37 {dimension_numbers = #tpu.dot_dimension_numbers<[1], [0], [0], [1], [0, 0, 1, 1], [], []>} : vector<288x4xbf16>, vector<4x8xbf16>, vector<288x8xf32> -> vector<288x8xf32>
    %34 = arith.addf %28, %33 : vector<288x8xf32>
    %c0_38 = arith.constant 0 : index
    %c0_39 = arith.constant 0 : index
    %c36 = arith.constant 36 : index
    %c0_40 = arith.constant 0 : index
    %35 = vector.load %arg2[%c0_38, %c0_39, %c36, %c0_40] : memref<1x1x332x4xbf16, #tpu.memory_space<vmem>>, vector<1x1x288x4xbf16>
    %36 = vector.shape_cast %35 : vector<1x1x288x4xbf16> to vector<288x4xbf16>
    %c6 = arith.constant 6 : index
    %c0_41 = arith.constant 0 : index
    %c0_42 = arith.constant 0 : index
    %37 = vector.load %arg3[%c6, %c0_41, %c0_42] : memref<9x4x8xbf16, #tpu.memory_space<vmem>>, vector<1x4x8xbf16>
    %38 = vector.shape_cast %37 : vector<1x4x8xbf16> to vector<4x8xbf16>
    %cst_43 = arith.constant dense<0.000000e+00> : vector<288x8xf32>
    %39 = tpu.matmul %36, %38, %cst_43 {dimension_numbers = #tpu.dot_dimension_numbers<[1], [0], [0], [1], [0, 0, 1, 1], [], []>} : vector<288x4xbf16>, vector<4x8xbf16>, vector<288x8xf32> -> vector<288x8xf32>
    %40 = arith.addf %34, %39 : vector<288x8xf32>
    %c0_44 = arith.constant 0 : index
    %c0_45 = arith.constant 0 : index
    %c37 = arith.constant 37 : index
    %c0_46 = arith.constant 0 : index
    %41 = vector.load %arg2[%c0_44, %c0_45, %c37, %c0_46] : memref<1x1x332x4xbf16, #tpu.memory_space<vmem>>, vector<1x1x288x4xbf16>
    %42 = vector.shape_cast %41 : vector<1x1x288x4xbf16> to vector<288x4xbf16>
    %c7 = arith.constant 7 : index
    %c0_47 = arith.constant 0 : index
    %c0_48 = arith.constant 0 : index
    %43 = vector.load %arg3[%c7, %c0_47, %c0_48] : memref<9x4x8xbf16, #tpu.memory_space<vmem>>, vector<1x4x8xbf16>
    %44 = vector.shape_cast %43 : vector<1x4x8xbf16> to vector<4x8xbf16>
    %cst_49 = arith.constant dense<0.000000e+00> : vector<288x8xf32>
    %45 = tpu.matmul %42, %44, %cst_49 {dimension_numbers = #tpu.dot_dimension_numbers<[1], [0], [0], [1], [0, 0, 1, 1], [], []>} : vector<288x4xbf16>, vector<4x8xbf16>, vector<288x8xf32> -> vector<288x8xf32>
    %46 = arith.addf %40, %45 : vector<288x8xf32>
    %c0_50 = arith.constant 0 : index
    %c0_51 = arith.constant 0 : index
    %c38 = arith.constant 38 : index
    %c0_52 = arith.constant 0 : index
    %47 = vector.load %arg2[%c0_50, %c0_51, %c38, %c0_52] : memref<1x1x332x4xbf16, #tpu.memory_space<vmem>>, vector<1x1x288x4xbf16>
    %48 = vector.shape_cast %47 : vector<1x1x288x4xbf16> to vector<288x4xbf16>
    %c8 = arith.constant 8 : index
    %c0_53 = arith.constant 0 : index
    %c0_54 = arith.constant 0 : index
    %49 = vector.load %arg3[%c8, %c0_53, %c0_54] : memref<9x4x8xbf16, #tpu.memory_space<vmem>>, vector<1x4x8xbf16>
    %50 = vector.shape_cast %49 : vector<1x4x8xbf16> to vector<4x8xbf16>
    %cst_55 = arith.constant dense<0.000000e+00> : vector<288x8xf32>
    %51 = tpu.matmul %48, %50, %cst_55 {dimension_numbers = #tpu.dot_dimension_numbers<[1], [0], [0], [1], [0, 0, 1, 1], [], []>} : vector<288x4xbf16>, vector<4x8xbf16>, vector<288x8xf32> -> vector<288x8xf32>
    %52 = arith.addf %46, %51 : vector<288x8xf32>
    %53 = arith.truncf %52 : vector<288x8xf32> to vector<288x8xbf16>
    %c0_56 = arith.constant 0 : index
    %c0_57 = arith.constant 0 : index
    %c0_58 = arith.constant 0 : index
    %c0_59 = arith.constant 0 : index
    %54 = vector.load %arg5[%c0_56, %c0_57, %c0_58, %c0_59] : memref<1x1x288x8xbf16, #tpu.memory_space<vmem>>, vector<1x1x288x8xbf16>
    %55 = vector.shape_cast %54 : vector<1x1x288x8xbf16> to vector<288x8xbf16>
    %56 = vector.shape_cast %53 : vector<288x8xbf16> to vector<1x1x288x8xbf16>
    tpu.vector_store %arg5[%c0_56, %c0_57, %c0_58, %c0_59], %56 {strides = array<i32>} : memref<1x1x288x8xbf16, #tpu.memory_space<vmem>>, vector<1x1x288x8xbf16>,
    %c0_60 = arith.constant 0 : index
    %c0_61 = arith.constant 0 : index
    %c0_62 = arith.constant 0 : index
    %57 = vector.load %arg4[%c0_60, %c0_61, %c0_62] : memref<1x288x1xbf16, #tpu.memory_space<vmem>>, vector<1x288x1xbf16>
    %58 = vector.shape_cast %57 : vector<1x288x1xbf16> to vector<288x1xbf16>
    %59 = arith.extf %58 : vector<288x1xbf16> to vector<288x1xf32>
    %60 = vector.broadcast %59 : vector<288x1xf32> to vector<288x8xf32>
    %61 = arith.mulf %52, %60 : vector<288x8xf32>
    %cst_63 = arith.constant dense<0.000000e+00> : vector<8xf32>
    %62 = vector.multi_reduction <add>, %61, %cst_63 [0] : vector<288x8xf32> to vector<8xf32>
    %63 = vector.shape_cast %62 : vector<8xf32> to vector<1x8xf32>
    %c0_64 = arith.constant 0 : index
    %c0_65 = arith.constant 0 : index
    %c0_66 = arith.constant 0 : index
    %c0_67 = arith.constant 0 : index
    %64 = vector.load %arg6[%c0_64, %c0_65, %c0_66, %c0_67] : memref<1x1x2x8xf32, #tpu.memory_space<vmem>>, vector<1x1x1x8xf32>
    %65 = vector.shape_cast %64 : vector<1x1x1x8xf32> to vector<1x8xf32>
    %66 = vector.shape_cast %63 : vector<1x8xf32> to vector<1x1x1x8xf32>
    tpu.vector_store %arg6[%c0_64, %c0_65, %c0_66, %c0_67], %66 {strides = array<i32>} : memref<1x1x2x8xf32, #tpu.memory_space<vmem>>, vector<1x1x1x8xf32>,
    %67 = arith.mulf %61, %52 : vector<288x8xf32>
    %cst_68 = arith.constant dense<0.000000e+00> : vector<8xf32>
    %68 = vector.multi_reduction <add>, %67, %cst_68 [0] : vector<288x8xf32> to vector<8xf32>
    %69 = vector.shape_cast %68 : vector<8xf32> to vector<1x8xf32>
    %c0_69 = arith.constant 0 : index
    %c0_70 = arith.constant 0 : index
    %c1_71 = arith.constant 1 : index
    %c0_72 = arith.constant 0 : index
    %70 = vector.load %arg6[%c0_69, %c0_70, %c1_71, %c0_72] : memref<1x1x2x8xf32, #tpu.memory_space<vmem>>, vector<1x1x1x8xf32>
    %71 = vector.shape_cast %70 : vector<1x1x1x8xf32> to vector<1x8xf32>
    %72 = vector.shape_cast %69 : vector<1x8xf32> to vector<1x1x1x8xf32>
    tpu.vector_store %arg6[%c0_69, %c0_70, %c1_71, %c0_72], %72 {strides = array<i32>} : memref<1x1x2x8xf32, #tpu.memory_space<vmem>>, vector<1x1x1x8xf32>,
    return
  }
  func.func @transform_0(%arg0: i32, %arg1: i32) -> (i32, i32, i32, i32) {
    %c0_i32 = arith.constant 0 : i32
    %c0_i32_0 = arith.constant 0 : i32
    %c0_i32_1 = arith.constant 0 : i32
    return %arg0, %arg1, %c0_i32, %c0_i32_0 : i32, i32, i32, i32
  }
  func.func @transform_1(%arg0: i32, %arg1: i32) -> (i32, i32, i32) {
    %c0_i32 = arith.constant 0 : i32
    %c0_i32_0 = arith.constant 0 : i32
    %c0_i32_1 = arith.constant 0 : i32
    %c0_i32_2 = arith.constant 0 : i32
    return %c0_i32, %c0_i32_0, %c0_i32_1 : i32, i32, i32
  }
  func.func @transform_2(%arg0: i32, %arg1: i32) -> (i32, i32, i32) {
    %c0_i32 = arith.constant 0 : i32
    %c0_i32_0 = arith.constant 0 : i32
    %c0_i32_1 = arith.constant 0 : i32
    return %arg1, %c0_i32, %c0_i32_0 : i32, i32, i32
  }
  func.func @transform_3(%arg0: i32, %arg1: i32) -> (i32, i32, i32, i32) {
    %c0_i32 = arith.constant 0 : i32
    %c0_i32_0 = arith.constant 0 : i32
    %c0_i32_1 = arith.constant 0 : i32
    return %arg0, %arg1, %c0_i32, %c0_i32_0 : i32, i32, i32, i32
  }
  func.func @transform_4(%arg0: i32, %arg1: i32) -> (i32, i32, i32, i32) {
    %c0_i32 = arith.constant 0 : i32
    %c0_i32_0 = arith.constant 0 : i32
    %c0_i32_1 = arith.constant 0 : i32
    return %arg0, %arg1, %c0_i32, %c0_i32_0 : i32, i32, i32, i32
  }
}

</mosaic_0001>

<bundles_post_ra>
// kernel: up_forward.2
= control target key start
LH: loop header
LB: loop body
LE: loop exit
PB: predicated region body
PF: predicated region fallthrough
CT: control target
= control target key end

     0   :  { %s5911_s15 = smov 0   ;;  %s5913_s16 = smov 0   ;;  %s7108_s0 = inlined_call_operand.vmem [shape: bf16[2,1,332,8], index: 0, kind: input, shape index: {}]   ;;  %s7109_s1 = inlined_call_operand.vmem [shape: bf16[9,8,4], index: 1, kind: input, shape index: {}]   ;;  %s7110_s2 = inlined_call_operand.vmem [shape: bf16[1,288,1], index: 2, kind: input, shape index: {}]   ;;  %s7111_s3 = inlined_call_operand.vmem [shape: bf16[2,1,288,4], index: 3, kind: output, shape index: {0}]   ;;  %s7112_s4 = inlined_call_operand.vmem [shape: f32[2,1,2,4], index: 4, kind: output, shape index: {1}]  }
   0x1   :  { %s5915_s17 = smov 0  }
   0x2 LB: > { %s27_s18 = sadd.s32 1, %s5879_s16  ;;  %p4539_p0 = scmp.ge.s32.totalorder %s5883_s17, 1  ;;  %s5883_s17 = sphi %s5915_s17, %s15_s17   ;;  %s5879_s16 = sphi %s5913_s16, %s7114_s16   ;;  %s5875_s15 = sphi %s5911_s15, %s7113_s15  }
   0x3   : > { %p29_p1 = scmp.ge.s32.totalorder %s27_s18, 2  ;;  %p197_p2 = scmp.lt.s32.totalorder %s5883_s17, 3 }
   0x5   : > { %s7116_s18 = smov (%p29_p1, %s27_s18), 0  ;;  %p198_p3 = pnand %p4539_p0, %p197_p2 }
   0x6   : > { %vm611_vm0 = vcmask (!%p198_p3), 1043456   ;;  %v4657_v0 = vld [vmem:[%s7109_s1 + $0x10] sm:$0xf] (!%p198_p3)  ;;  %v4543_v1 = vld [vmem:[%s7109_s1 + $0x4] sm:$0xf] (!%p198_p3)  ;;  %p243_p4 = scmp.lt.s32.totalorder (!%p198_p3), %s5875_s15, 1 }
   0x7   : > { %201 = sbr.rel (%p198_p3) target bundleno = 595 (0x253), region = 32  ;;  %5745 = vmatprep.subr.msk.bf16.mxu0 (!%p198_p3), %vm611_vm0, %v4657_v0  ;;  %5741 = vmatprep.subr.msk.bf16.mxu1 (!%p198_p3), %vm611_vm0, %v4543_v1  ;;  %v5938_v2 = vsel (!%p198_p3), %vm611_vm0, %v4657_v0, 0  ;;  %v613_v3 = vsel (!%p198_p3), %vm611_vm0, %v4543_v1, 0  ;;  %v4677_v4 = vld [vmem:[%s7109_s1 + $0x14] sm:$0xf] (!%p198_p3)  ;;  %vm556_vm2 = vcmask (!%p198_p3), 64512  }
   0x8   : > { %5262 = vmatpush3.bf16.msra.mxu0 (!%p198_p3), %v5938_v2  ;;  %5110 = vmatpush3.bf16.msra.mxu1 (!%p198_p3), %v613_v3  ;;  %v310_v5 = vld [vmem:[%s7109_s1] sm:$0xf] (!%p198_p3)  ;;  %vm407_vm1 = vsmask.f32 (!%p198_p3), 7424  ;;  %v5959_v6 = vsel (!%p198_p3), %vm611_vm0, %v4677_v4, 0  ;;  %vm2214_vm4 = vcmask (!%p198_p3), 1045504  }
   0x9   : > { %5747 = vmatprep.subr.msk.bf16.mxu0 (!%p198_p3), %vm611_vm0, %v4677_v4  ;;  %5742 = vmatprep.subr.msk.bf16.mxu1 (!%p198_p3), %vm611_vm0, %v310_v5  ;;  %vm1767_vm3 = vsmask.f32 (!%p198_p3), 6400  ;;  %v829_v12 = vsel (!%p198_p3), %vm611_vm0, %v310_v5, 0  ;;  %v6007_v39 = vld [vmem:[%s7109_s1 + $0x8] sm:$0xf] (!%p198_p3)  ;;  %vm1014_vm5 = vcmask (!%p198_p3), 1046528  }
   0xa   : > { %v6041_v1 = vld [vmem:[%s7109_s1 + $0x18] sm:$0xf] (!%p198_p3)  ;;  %vm2967_vm6 = vsmask.f32 (!%p198_p3), 5376  ;;  %vm3414_vm7 = vcmask (!%p198_p3), 1044480   ;;  %vm3866_vm8 = vcmask (!%p198_p3), 27648  }
   0xb   : > { %vm4191_vm9 = vcmask (!%p198_p3), 31744   ;;  %vm4269_vm10 = vcmask (!%p198_p3), 24576  }
   0xe   : > { %s7118_s15 = smov (!%p243_p4, %s5875_s15), 1 }
   0xf   : > { %s5751_s27 = smul.u32 168, %s7118_s15  ;;  %s4542_s14 = sshll.u32 %s7118_s15, 1 }
  0x10   : > { %s272_s21 = scalar_lea.vmem %s7112_s4, %s4542_s14 }
  0x11   : > { %s5956_s30 = scalar_lea.vmem %s7108_s0, %s5751_s27 }
  0x12   : > { %v274_v7 = vld [vmem:[%s5956_s30] sm:$0xf]  ;;  %v5963_v8 = vld [vmem:[%s5956_s30 + $0x4] sm:$0xf]  ;;  %v5969_v10 = vld [vmem:[%s5956_s30 + $0x8] sm:$0xff]  }
  0x13   : > { %v5966_v9 = vcombine.low %v274_v7, %v5963_v8  ;;  %v1322_v11 = vld [vmem:[%s5956_s30 + $0x8] sm:$0xe]  ;;  %v5974_v13 = vld [vmem:[%s5956_s30 + $0xc] sm:$0xf]  ;;  %v416_v16 = vshll.u32 %v5969_v10, 16  ;;  %v420_v17 = vshrl.u32 %v5969_v10, 16 }
  0x14   : > { %v5981_v18 = vld [vmem:[%s5956_s30 + $0x10] sm:$0xff]   ;;  %v5987_v20 = vcombine.low %v1322_v11, %v5974_v13  ;;  %v5995_v28 = vld [vmem:[%s5956_s30 + $0x18] sm:$0xff]   ;;  %v6001_v34 = vld [vmem:[%s5956_s30 + $0x20] sm:$0xff]  }
  0x15   : > { %v409_v14 = vshrl.u32 %v5966_v9, 16  ;;  %v411_v15 = vshll.u32 %v5966_v9, 16  ;;  %v5984_v19 = vld [vmem:[%s5956_s30 + $0x10] sm:$0xff]   ;;  %v418_v22 = vrot.slane %v416_v16, 1  ;;  %v1777_v23 = vshrl.u32 %v5981_v18, 16  ;;  %v5998_v33 = vld [vmem:[%s5956_s30 + $0x18] sm:$0xff]  }
  0x16   : > { %v1780_v24 = vshll.u32 %v5981_v18, 16  ;;  %v1769_v25 = vshrl.u32 %v5987_v20, 16  ;;  %v1772_v26 = vshll.u32 %v5987_v20, 16  ;;  %v424_v27 = vshll.u32 %v5984_v19, 16  ;;  %v6016_v48 = vld [vmem:[%s5956_s30 + $0x20] sm:$0xff]   ;;  %v6019_v49 = vld [vmem:[%s5956_s30 + $0x28] sm:$0xff]  }
  0x17   : > { %v413_v21 = vrot.slane %v411_v15, 1  ;;  %v422_v30 = vor.u32 %v420_v17, %v418_v22  ;;  %v1779_v31 = vrot.slane %v1777_v23, 1  ;;  %v1786_v38 = vshrl.u32 %v5995_v28, 16  ;;  %v6025_v54 = vld [vmem:[%s5956_s30 + $0x28] sm:$0xff]   ;;  %v6031_v59 = vld [vmem:[%s5956_s30 + $0x30] sm:$0xff]   ;;  %v6055_v23 = vld [vmem:[%s5956_s30 + $0x38] sm:$0xff]  }
  0x18   : > { %v1782_v32 = vrot.slane %v1780_v24, 2  ;;  %v1771_v35 = vrot.slane %v1769_v25, 1  ;;  %v1774_v36 = vrot.slane %v1772_v26, 2  ;;  %v426_v37 = vrot.slane %v424_v27, 1  ;;  %v6036_v0 = vld [vmem:[%s5956_s30 + $0x30] sm:$0xff]  }
  0x19   : > { %v414_v29 = vor.u32 %v413_v21, %v409_v14  ;;  %v1789_v42 = vshll.u32 %v5995_v28, 16  ;;  %v428_v43 = vshrl.u32 %v5984_v19, 16  ;;  %v1788_v46 = vrot.slane %v1786_v38, 1 }
  0x1a   : > { %v1783_v41 = vor.u32 %v1782_v32, %v1779_v31  ;;  %v1775_v44 = vor.u32 %v1774_v36, %v1771_v35  ;;  %v427_v45 = vsel %vm407_vm1, %v422_v30, %v426_v37  ;;  %v432_v47 = vshll.u32 %v5998_v33, 16  ;;  %v6064_v35 = vld [vmem:[%s5956_s30 + $0x38] sm:$0xff]  }
  0x1b   : > { %v419_v40 = vsel %vm407_vm1, %v414_v29, %v418_v22  ;;  %v1791_v50 = vrot.slane %v1789_v42, 2  ;;  %v430_v51 = vor.u32 %v428_v43, %v426_v37  ;;  %v1795_v52 = vshrl.u32 %v6001_v34, 16 }
  0x1c   : > { %5111 = vmatprep.mubr.msk.bf16.mxu1 %vm556_vm2, %v419_v40  ;;  %v1798_v53 = vshll.u32 %v6001_v34, 16  ;;  %v1784_v55 = vsel %vm1767_vm3, %v1775_v44, %v1783_v41  ;;  %v434_v56 = vrot.slane %v432_v47, 1  ;;  %v436_v57 = vshrl.u32 %v5998_v33, 16  ;;  %v6075_v44 = vld [vmem:[%s5956_s30 + $0x40] sm:$0xff]  }
  0x1d   : > { %5112 = vmatmul.mubr.msk.bf16.vlgmr.msra.gmra.mrb[0].mxu1 %vm556_vm2, %v427_v45  ;;  %v440_v58 = vshll.u32 %v6016_v48, 16  ;;  %5263 = vmatprep.mubr.msk.bf16.mxu0 %vm556_vm2, %v1784_v55  ;;  %v1792_v60 = vor.u32 %v1791_v50, %v1788_v46  ;;  %v1797_v61 = vrot.slane %v1795_v52, 1  ;;  %v1804_v63 = vshrl.u32 %v6019_v49, 16 }
  0x1e   : > { %5148 = vmatpush3.bf16.msra.mxu1 %v829_v12  ;;  %v1800_v62 = vrot.slane %v1798_v53, 2  ;;  %v435_v3 = vsel %vm407_vm1, %v430_v51, %v434_v56  ;;  %v438_v4 = vor.u32 %v436_v57, %v434_v56  ;;  %v1807_v7 = vshll.u32 %v6019_v49, 16  ;;  %v6080_v51 = vld [vmem:[%s5956_s30 + $0x40] sm:$0xff]  }
  0x1f   : > { %5743 = vmatprep.subr.msk.bf16.mxu1 %vm611_vm0, %v6007_v39  ;;  %v442_v5 = vrot.slane %v440_v58, 1  ;;  %v1793_v11 = vsel %vm1767_vm3, %v1783_v41, %v1792_v60  ;;  %5115 = vmatprep.mubr.msk.bf16.mxu1 %vm556_vm2, %v435_v3  ;;  %v1806_v14 = vrot.slane %v1804_v63, 1  ;;  %v444_v15 = vshrl.u32 %v6016_v48, 16  ;;  %v6091_v63 = vld [vmem:[%s5956_s30 + $0x48] sm:$0xff]  }
  0x20   : > { %v1801_v12 = vor.u32 %v1800_v62, %v1797_v61  ;;  %5264 = vmatmul.mubr.msk.bf16.vlgmr.msra.gmra.mrb[0].mxu0 %vm556_vm2, %v1793_v11  ;;  %v1809_v17 = vrot.slane %v1807_v7, 2  ;;  %v448_v21 = vshll.u32 %v6025_v54, 16  ;;  %v1813_v22 = vshrl.u32 %v6031_v59, 16  ;;  %v6088_v62 = vld [vmem:[%s5956_s30 + $0x48] sm:$0xff]  }
  0x21   : > { %v443_v16 = vsel %vm407_vm1, %v438_v4, %v442_v5  ;;  %5300 = vmatpush3.bf16.msra.mxu0 %v5959_v6  ;;  %v446_v25 = vor.u32 %v444_v15, %v442_v5  ;;  %v1816_v26 = vshll.u32 %v6031_v59, 16  ;;  %v452_v27 = vshrl.u32 %v6025_v54, 16 }
  0x22   : > { %v1802_v24 = vsel %vm1767_vm3, %v1792_v60, %v1801_v12  ;;  %v1810_v29 = vor.u32 %v1809_v17, %v1806_v14  ;;  %v450_v30 = vrot.slane %v448_v21, 1  ;;  %v1815_v31 = vrot.slane %v1813_v22, 1  ;;  %5748 = vmatprep.subr.msk.bf16.mxu0 %vm611_vm0, %v6041_v1  ;;  %v6100_v14 = vld [vmem:[%s5956_s30 + $0x50] sm:$0xff]  }
  0x23   : > { %5267 = vmatprep.mubr.msk.bf16.mxu0 %vm556_vm2, %v1802_v24  ;;  %v456_v32 = vshll.u32 %v6036_v0, 16  ;;  %v1818_v6 = vrot.slane %v1816_v26, 2  ;;  %v1822_v36 = vshrl.u32 %v6055_v23, 16  ;;  %v1825_v37 = vshll.u32 %v6055_v23, 16 }
  0x24   : > { %v460_v38 = vshrl.u32 %v6036_v0, 16  ;;  %v1811_v40 = vsel %vm1767_vm3, %v1801_v12, %v1810_v29  ;;  %v451_v41 = vsel %vm407_vm1, %v446_v25, %v450_v30  ;;  %v454_v42 = vor.u32 %v452_v27, %v450_v30  ;;  %v6108_v25 = vld [vmem:[%s5956_s30 + $0x50] sm:$0xff]  }
  0x25   : > { %5116 = vmatmul.mubr.msk.bf16.gmra.mrb[4].mxu1 %vm556_vm2, %v443_v16  ;;  %v458_v43 = vrot.slane %v456_v32, 1  ;;  %v1819_v45 = vor.u32 %v1818_v6, %v1815_v31  ;;  %v1824_v46 = vrot.slane %v1822_v36, 1  ;;  %v1827_v47 = vrot.slane %v1825_v37, 2 }
  0x26   : > { %5119 = vmatprep.mubr.msk.bf16.mxu1 %vm556_vm2, %v451_v41  ;;  %v464_v50 = vshll.u32 %v6064_v35, 16  ;;  %v1831_v55 = vshrl.u32 %v6075_v44, 16  ;;  %v1834_v56 = vshll.u32 %v6075_v44, 16  ;;  %v468_v61 = vshrl.u32 %v6064_v35, 16  ;;  %v6118_v41 = vld [vmem:[%s5956_s30 + $0x58] sm:$0xff]  }
  0x27   : > { %v459_v52 = vsel %vm407_vm1, %v454_v42, %v458_v43  ;;  %v462_v53 = vor.u32 %v460_v38, %v458_v43  ;;  %v1820_v57 = vsel %vm1767_vm3, %v1810_v29, %v1819_v45  ;;  %v1828_v58 = vor.u32 %v1827_v47, %v1824_v46  ;;  %v6113_v29 = vld [vmem:[%s5956_s30 + $0x58] sm:$0xff]  }
  0x28   : > { %v466_v60 = vrot.slane %v464_v50, 1  ;;  %5268 = vmatmul.mubr.msk.bf16.gmra.mrb[4].mxu0 %vm556_vm2, %v1811_v40  ;;  %v1833_v3 = vrot.slane %v1831_v55, 1  ;;  %v1836_v4 = vrot.slane %v1834_v56, 2  ;;  %v472_v5 = vshll.u32 %v6080_v51, 16 }
  0x29   : > { %v476_v7 = vshrl.u32 %v6080_v51, 16  ;;  %5271 = vmatprep.mubr.msk.bf16.mxu0 %vm556_vm2, %v1820_v57  ;;  %v1840_v12 = vshrl.u32 %v6088_v62, 16  ;;  %v1843_v16 = vshll.u32 %v6088_v62, 16  ;;  %v480_v17 = vshll.u32 %v6091_v63, 16  ;;  %v2208_v57 = vld [vmem:[%s5956_s30 + $0x8] sm:$0xc] }
  0x2a   : > { %v467_v11 = vsel %vm407_vm1, %v462_v53, %v466_v60  ;;  %v1837_v15 = vor.u32 %v1836_v4, %v1833_v3  ;;  %v474_v21 = vrot.slane %v472_v5, 1  ;;  %v1849_v22 = vshrl.u32 %v6100_v14, 16 }
  0x2b   : > { %v1852_v24 = vshll.u32 %v6100_v14, 16  ;;  %v1829_v26 = vsel %vm1767_vm3, %v1819_v45, %v1828_v58  ;;  %v470_v27 = vor.u32 %v468_v61, %v466_v60  ;;  %v1842_v30 = vrot.slane %v1840_v12, 1 }
  0x2c   : > { %v1845_v31 = vrot.slane %v1843_v16, 2  ;;  %v478_v32 = vor.u32 %v476_v7, %v474_v21  ;;  %v482_v6 = vrot.slane %v480_v17, 1  ;;  %v1838_v36 = vsel %vm1767_vm3, %v1828_v58, %v1837_v15  ;;  %v6132_v58 = vld [vmem:[%s5956_s30 + $0x60] sm:$0xff]  }
  0x2d   : > { %5120 = vmatmul.mubr.msk.bf16.gmra.mrb[8].mxu1 %vm556_vm2, %v459_v52  ;;  %v1851_v37 = vrot.slane %v1849_v22, 1  ;;  %v1854_v38 = vrot.slane %v1852_v24, 2  ;;  %v488_v40 = vshll.u32 %v6108_v25, 16  ;;  %v475_v42 = vsel %vm407_vm1, %v470_v27, %v474_v21 }
  0x2e   : > { %5123 = vmatprep.mubr.msk.bf16.mxu1 %vm556_vm2, %v467_v11  ;;  %v484_v43 = vshrl.u32 %v6091_v63, 16  ;;  %v1858_v45 = vshrl.u32 %v6113_v29, 16  ;;  %v1861_v46 = vshll.u32 %v6113_v29, 16  ;;  %v1846_v47 = vor.u32 %v1845_v31, %v1842_v30  ;;  %v6137_v11 = vld [vmem:[%s5956_s30 + $0x68] sm:$0xff]  }
  0x2f   : > { %v483_v50 = vsel %vm407_vm1, %v478_v32, %v482_v6  ;;  %v492_v52 = vshrl.u32 %v6108_v25, 16  ;;  %v496_v53 = vshll.u32 %v6118_v41, 16  ;;  %v1855_v55 = vor.u32 %v1854_v38, %v1851_v37  ;;  %v6154_v32 = vld [vmem:[%s5956_s30 + $0x70] sm:$0xff]  }
  0x30   : > { %5272 = vmatmul.mubr.msk.bf16.gmra.mrb[8].mxu0 %vm556_vm2, %v1829_v26  ;;  %v490_v56 = vrot.slane %v488_v40, 1  ;;  %v486_v60 = vor.u32 %v484_v43, %v482_v6  ;;  %v1860_v61 = vrot.slane %v1858_v45, 1  ;;  %v1863_v3 = vrot.slane %v1861_v46, 2  ;;  %v6160_v40 = vld [vmem:[%s5956_s30 + $0x78] sm:$0xff]  }
  0x31   : > { %5275 = vmatprep.mubr.msk.bf16.mxu0 %vm556_vm2, %v1838_v36  ;;  %v1847_v4 = vsel %vm1767_vm3, %v1837_v15, %v1846_v47  ;;  %v498_v7 = vrot.slane %v496_v53, 1  ;;  %v1856_v12 = vsel %vm1767_vm3, %v1846_v47, %v1855_v55  ;;  %v4678_v16 = vcombine.low %v2208_v57, %v5974_v13 }
  0x32   : > { %v494_v5 = vor.u32 %v492_v52, %v490_v56  ;;  %v504_v17 = vshll.u32 %v6132_v58, 16  ;;  %v491_v21 = vsel %vm407_vm1, %v486_v60, %v490_v56  ;;  %v500_v22 = vshrl.u32 %v6118_v41, 16  ;;  %v6175_v56 = vld [vmem:[%s5956_s30 + $0x80] sm:$0xff]  }
  0x33   : > { %v6146_v15 = vor.u32 %v1863_v3, %v1860_v61  ;;  %v508_v26 = vshrl.u32 %v6132_v58, 16  ;;  %v512_v27 = vshll.u32 %v6137_v11, 16  ;;  %v2215_v13 = vrot.slane %v4678_v16, 2 }
  0x34   : > { %v499_v24 = vsel %vm407_vm1, %v494_v5, %v498_v7  ;;  %v2216_v30 = vrot.slane %v5981_v18, 2  ;;  %v506_v31 = vrot.slane %v504_v17, 1  ;;  %v502_v6 = vor.u32 %v500_v22, %v498_v7 }
  0x35   : > { %5124 = vmatmul.mubr.msk.bf16.gmra.mrb[12].mxu1 %vm556_vm2, %v475_v42  ;;  %v1865_v36 = vsel %vm1767_vm3, %v1855_v55, %v6146_v15  ;;  %v514_v38 = vrot.slane %v512_v27, 1  ;;  %v520_v18 = vshll.u32 %v6154_v32, 16  ;;  %v2218_v45 = vrot.slane %v5995_v28, 2  ;;  %v6205_v27 = vld [vmem:[%s5956_s30 + $0x90] ss:$0 sps:$4 sm:$0x11]  }
  0x36   : > { %5127 = vmatprep.mubr.msk.bf16.mxu1 %vm556_vm2, %v483_v50  ;;  %v510_v37 = vor.u32 %v508_v26, %v506_v31  ;;  %v2217_v42 = vsel %vm2214_vm4, %v2215_v13, %v2216_v30  ;;  %v507_v43 = vsel %vm407_vm1, %v502_v6, %v506_v31  ;;  %v516_v46 = vshrl.u32 %v6137_v11, 16 }
  0x37   : > { %v524_v50 = vshrl.u32 %v6154_v32, 16  ;;  %v528_v52 = vshll.u32 %v6160_v40, 16  ;;  %v2220_v53 = vrot.slane %v6001_v34, 2  ;;  %v522_v55 = vrot.slane %v520_v18, 1  ;;  %v6188_v34 = vld [vmem:[%s7109_s1 + $0x1c] sm:$0xf] }
  0x38   : > { %5276 = vmatmul.mubr.msk.bf16.gmra.mrb[12].mxu0 %vm556_vm2, %v1847_v4  ;;  %v515_v47 = vsel %vm407_vm1, %v510_v37, %v514_v38  ;;  %v2746_v28 = vsel %vm611_vm0, %v6041_v1, 0  ;;  %v518_v57 = vor.u32 %v516_v46, %v514_v38  ;;  %v2219_v60 = vsel %vm2214_vm4, %v2216_v30, %v2218_v45  ;;  %v6182_v4 = vld [vmem:[%s5956_s30 + $0x88] sm:$0xff]  }
  0x39   : > { %5279 = vmatprep.mubr.msk.bf16.mxu0 %vm556_vm2, %v1856_v12  ;;  %v526_v61 = vor.u32 %v524_v50, %v522_v55  ;;  %v530_v3 = vrot.slane %v528_v52, 1  ;;  %v2221_v5 = vsel %vm2214_vm4, %v2218_v45, %v2220_v53  ;;  %v536_v7 = vshll.u32 %v6175_v56, 16 }
  0x3a   : > { %v523_v1 = vsel %vm407_vm1, %v518_v57, %v522_v55  ;;  %v2222_v12 = vrot.slane %v6019_v49, 2  ;;  %v532_v16 = vshrl.u32 %v6160_v40, 16  ;;  %v544_v22 = vshll.u32 %v6182_v4, 16  ;;  %v6232_v55 = vld [vmem:[%s5956_s30 + $0x60] sm:$0xff]   ;;  %v6251_v57 = vld [vmem:[%s5956_s30 + $0x68] sm:$0xff]  }
  0x3b   : > { %v531_v17 = vsel %vm407_vm1, %v526_v61, %v530_v3  ;;  %v538_v26 = vrot.slane %v536_v7, 1  ;;  %v552_v37 = vshll.u32 %v6205_v27, 16  ;;  %v2226_v38 = vrot.slane %v6055_v23, 2  ;;  %v6269_v7 = vld [vmem:[%s5956_s30 + $0x78] sm:$0xff]  }
  0x3c   : > { %v534_v49 = vor.u32 %v532_v16, %v530_v3  ;;  %v2223_v13 = vsel %vm2214_vm4, %v2220_v53, %v2222_v12  ;;  %v546_v31 = vrot.slane %v544_v22, 1  ;;  %v2228_v18 = vrot.slane %v6075_v44, 2  ;;  %v6285_v22 = vld [vmem:[%s5956_s30 + $0x88] sm:$0xff]  }
  0x3d   : > { %5128 = vmatmul.mubr.msk.bf16.gmra.mrb[16].mxu1 %vm556_vm2, %v491_v21  ;;  %v540_v21 = vshrl.u32 %v6175_v56, 16  ;;  %v554_v45 = vrot.slane %v552_v37, 1  ;;  %v2230_v23 = vrot.slane %v6088_v62, 2  ;;  %v2232_v44 = vrot.slane %v6100_v14, 2 }
  0x3e   : > { %5131 = vmatprep.mubr.msk.bf16.mxu1 %vm556_vm2, %v499_v24  ;;  %v2224_v24 = vrot.slane %v6031_v59, 2  ;;  %v539_v59 = vsel %vm407_vm1, %v534_v49, %v538_v26  ;;  %v2234_v62 = vrot.slane %v6113_v29, 2  ;;  %v1107_v14 = vsel %vm611_vm0, %v6007_v39, 0 }
  0x3f   : > { %v542_v30 = vor.u32 %v540_v21, %v538_v26  ;;  %v2231_v52 = vsel %vm2214_vm4, %v2228_v18, %v2230_v23  ;;  %v2233_v53 = vsel %vm2214_vm4, %v2230_v23, %v2232_v44  ;;  %v2238_v61 = vrot.slane %v6251_v57, 2  ;;  %v6289_v26 = vld [vmem:[%s5956_s30 + $0x90] sm:$0xff]  }
  0x40   : > { %5280 = vmatmul.mubr.msk.bf16.gmra.mrb[16].mxu0 %vm556_vm2, %v1865_v36  ;;  %v2225_v6 = vsel %vm2214_vm4, %v2222_v12, %v2224_v24  ;;  %v548_v36 = vshrl.u32 %v6182_v4, 16  ;;  %v2227_v46 = vsel %vm2214_vm4, %v2224_v24, %v2226_v38  ;;  %v2235_v29 = vsel %vm2214_vm4, %v2232_v44, %v2234_v62  ;;  %v6273_v12 = vld [vmem:[%s5956_s30 + $0x80] sm:$0xff]  }
  0x41   : > { %5301 = vmatprep.mubr.msk.bf16.mxu0 %vm556_vm2, %v2217_v42  ;;  %v547_v42 = vsel %vm407_vm1, %v542_v30, %v546_v31  ;;  %v2242_v16 = vrot.slane %v6269_v7, 2  ;;  %v2246_v49 = vrot.slane %v6285_v22, 2  ;;  %v2522_v30 = vld [vmem:[%s5956_s30 + $0x10] sm:$0xc] }
  0x45   : > { %5132 = vmatmul.mubr.msk.bf16.gmra.mrb[20].mxu1 %vm556_vm2, %v507_v43  ;;  %v550_v43 = vor.u32 %v548_v36, %v546_v31  ;;  %v6299_v31 = vld [vmem:[%s5956_s30 + $0x14] sm:$0xf] }
  0x46   : > { %5135 = vmatprep.mubr.msk.bf16.mxu1 %vm556_vm2, %v515_v47  ;;  %v2229_v47 = vsel %vm2214_vm4, %v2226_v38, %v2228_v18  ;;  %v6307_v37 = vcombine.low %v2522_v30, %v6299_v31  ;;  %v6310_v38 = vld [vmem:[%s5956_s30 + $0x18] sm:$0xff]  }
  0x47   : > { %v555_v50 = vsel %vm407_vm1, %v550_v43, %v554_v45  ;;  %v2655_v43 = vrot.slane %v6310_v38, 2 }
  0x48   : > { %5302 = vmatmul.mubr.msk.bf16.vlgmr.msra.gmra.mrb[0].mxu0 %vm556_vm2, %v2219_v60  ;;  %v6257_v60 = vld [vmem:[%s5956_s30 + $0x70] sm:$0xff]   ;;  %v2654_v18 = vrot.slane %v6307_v37, 2 }
  0x49   : > { %5338 = vmatpush3.bf16.msra.mxu0 %v2746_v28  ;;  %5305 = vmatprep.mubr.msk.bf16.mxu0 %vm556_vm2, %v2221_v5  ;;  %v2236_v28 = vrot.slane %v6232_v55, 2  ;;  %v2240_v3 = vrot.slane %v6257_v60, 2 }
  0x4a   : > { %5749 = vmatprep.subr.msk.bf16.mxu0 %vm611_vm0, %v6188_v34 }
  0x4b   : > { %v2237_v39 = vsel %vm2214_vm4, %v2234_v62, %v2236_v28  ;;  %v2239_v5 = vsel %vm2214_vm4, %v2236_v28, %v2238_v61  ;;  %v2243_v21 = vsel %vm2214_vm4, %v2240_v3, %v2242_v16  ;;  %v3193_v62 = vsel %vm611_vm0, %v6188_v34, 0  ;;  %v6344_v28 = vld [vmem:[%s5956_s30 + $0x38] sm:$0xff]  }
  0x4d   : > { %5136 = vmatmul.mubr.msk.bf16.gmra.mrb[24].mxu1 %vm556_vm2, %v523_v1  ;;  %v2241_v1 = vsel %vm2214_vm4, %v2238_v61, %v2240_v3  ;;  %v2663_v61 = vrot.slane %v6344_v28, 2  ;;  %v6363_v3 = vld [vmem:[%s5956_s30 + $0x40] sm:$0xff]  }
  0x4e   : > { %5139 = vmatprep.mubr.msk.bf16.mxu1 %vm556_vm2, %v531_v17  ;;  %v2244_v17 = vrot.slane %v6273_v12, 2 }
  0x50   : > { %5306 = vmatmul.mubr.msk.bf16.gmra.mrb[4].mxu0 %vm556_vm2, %v2223_v13  ;;  %v2245_v24 = vsel %vm2214_vm4, %v2242_v16, %v2244_v17  ;;  %v2248_v13 = vrot.slane %v6289_v26, 2  ;;  %v1008_v16 = vld [vmem:[%s5956_s30] sm:$0xe] }
  0x51   : > { %5309 = vmatprep.mubr.msk.bf16.mxu0 %vm556_vm2, %v2225_v6  ;;  %v2247_v6 = vsel %vm2214_vm4, %v2244_v17, %v2246_v49  ;;  %v2665_v17 = vrot.slane %v6363_v3, 2 }
  0x52   : > { %v2249_v36 = vsel %vm2214_vm4, %v2246_v49, %v2248_v13 }
  0x53   : > { %v2666_v49 = vsel %vm2214_vm4, %v2663_v61, %v2665_v17 }
  0x55   : > { %5140 = vmatmul.mubr.msk.bf16.gmra.mrb[28].mxu1 %vm556_vm2, %v539_v59  ;;  %v5823_v59 = vld [vmem:[%s5956_s30 + $0x98] ss:$0 sps:$4 sm:$0x33]  }
  0x56   : > { %5143 = vmatprep.mubr.msk.bf16.mxu1 %vm556_vm2, %v547_v42  ;;  %v2250_v42 = vrot.slane %v5823_v59, 2 }
  0x58   : > { %5310 = vmatmul.mubr.msk.bf16.gmra.mrb[8].mxu0 %vm556_vm2, %v2227_v46  ;;  %v2251_v45 = vsel %vm2214_vm4, %v2248_v13, %v2250_v42  ;;  %v6322_v46 = vld [vmem:[%s5956_s30 + $0x20] sm:$0xff]   ;;  %v6381_v13 = vld [vmem:[%s5956_s30 + $0x50] sm:$0xff]  }
  0x59   : > { %5313 = vmatprep.mubr.msk.bf16.mxu0 %vm556_vm2, %v2229_v47  ;;  %v2656_v47 = vsel %vm2214_vm4, %v2654_v18, %v2655_v43  ;;  %v2657_v23 = vrot.slane %v6322_v46, 2 }
  0x5d   : > { %5144 = vmatmul.mubr.msk.bf16.gmra.mrb[32].mxu1 %vm556_vm2, %v555_v50  ;;  %v6326_v50 = vld [vmem:[%s5956_s30 + $0x28] sm:$0xff]  }
  0x5e   : > { %5149 = vmatprep.mubr.msk.bf16.mxu1 %vm556_vm2, %v5966_v9  ;;  %v6243_v9 = vld [vmem:[%s7109_s1 + $0xc] sm:$0xf]  ;;  %v2659_v44 = vrot.slane %v6326_v50, 2 }
  0x60   : > { %5314 = vmatmul.mubr.msk.bf16.gmra.mrb[12].mxu0 %vm556_vm2, %v2231_v52  ;;  %v2658_v52 = vsel %vm2214_vm4, %v2655_v43, %v2657_v23 }
  0x61   : > { %5317 = vmatprep.mubr.msk.bf16.mxu0 %vm556_vm2, %v2233_v53  ;;  %v6338_v53 = vld [vmem:[%s5956_s30 + $0x30] sm:$0xff]  }
  0x65   : > { %5150 = vmatmul.mubr.msk.bf16.vlgmr.msra.gmra.mrb[0].mxu1 %vm556_vm2, %v5969_v10 }
  0x66   : > { %5153 = vmatprep.mubr.msk.bf16.mxu1 %vm556_vm2, %v5984_v19  ;;  %5186 = vmatpush3.bf16.msra.mxu1 %v1107_v14  ;;  %v2660_v14 = vsel %vm2214_vm4, %v2657_v23, %v2659_v44 }
  0x67   : > { %5744 = vmatprep.subr.msk.bf16.mxu1 %vm611_vm0, %v6243_v9 }
  0x68   : > { %5318 = vmatmul.mubr.msk.bf16.gmra.mrb[16].mxu0 %vm556_vm2, %v2235_v29  ;;  %v6349_v29 = vld [vmem:[%s7109_s1 + $0x20] sm:$0xf] }
  0x69   : > { %5321 = vmatprep.mubr.msk.bf16.mxu0 %vm556_vm2, %v2237_v39  ;;  %v2661_v39 = vrot.slane %v6338_v53, 2 }
  0x6b   : > { %v2662_v34 = vsel %vm2214_vm4, %v2659_v44, %v2661_v39  ;;  %v6404_v44 = vld [vmem:[%s5956_s30 + $0x68] sm:$0xff]  }
  0x6d   : > { %5154 = vmatmul.mubr.msk.bf16.gmra.mrb[4].mxu1 %vm556_vm2, %v5998_v33 }
  0x6e   : > { %5157 = vmatprep.mubr.msk.bf16.mxu1 %vm556_vm2, %v6016_v48 }
  0x70   : > { %5322 = vmatmul.mubr.msk.bf16.gmra.mrb[20].mxu0 %vm556_vm2, %v2239_v5  ;;  %v2664_v5 = vsel %vm2214_vm4, %v2661_v39, %v2663_v61  ;;  %v1022_v39 = vrot.slane %v6016_v48, 1  ;;  %v4850_v48 = vld [vmem:[%s7110_s2] sm:$0xff]  }
  0x71   : > { %5325 = vmatprep.mubr.msk.bf16.mxu0 %vm556_vm2, %v2241_v1  ;;  %v6367_v1 = vld [vmem:[%s5956_s30 + $0x48] sm:$0xff]  }
  0x75   : > { %5158 = vmatmul.mubr.msk.bf16.gmra.mrb[8].mxu1 %vm556_vm2, %v6025_v54 }
  0x76   : > { %5161 = vmatprep.mubr.msk.bf16.mxu1 %vm556_vm2, %v6036_v0 }
  0x78   : > { %5326 = vmatmul.mubr.msk.bf16.gmra.mrb[24].mxu0 %vm556_vm2, %v2243_v21  ;;  %v4600_v21 = vcombine.low %v1008_v16, %v5963_v8  ;;  %v6386_v8 = vld [vmem:[%s5956_s30 + $0x58] sm:$0xff]   ;;  %v5847_v16 = vld [vmem:[%s7109_s1 + $0x10] sm:$0xf] }
  0x79   : > { %5329 = vmatprep.mubr.msk.bf16.mxu0 %vm556_vm2, %v2245_v24  ;;  %v2667_v24 = vrot.slane %v6367_v1, 2  ;;  %v2671_v18 = vrot.slane %v6386_v8, 2 }
  0x7a   : > { %v1015_v30 = vrot.slane %v4600_v21, 1  ;;  %v4851_v21 = vunpack.c.l.bf16 %v4850_v48 }
  0x7b   : > { %v2668_v59 = vsel %vm2214_vm4, %v2665_v17, %v2667_v24  ;;  %v6428_v17 = vld [vmem:[%s5956_s30 + $0x78] sm:$0xff]  }
  0x7d   : > { %5162 = vmatmul.mubr.msk.bf16.gmra.mrb[12].mxu1 %vm556_vm2, %v6064_v35 }
  0x7e   : > { %5165 = vmatprep.mubr.msk.bf16.mxu1 %vm556_vm2, %v6080_v51 }
  0x80   : > { %5330 = vmatmul.mubr.msk.bf16.gmra.mrb[28].mxu0 %vm556_vm2, %v2247_v6  ;;  %v1016_v6 = vrot.slane %v5969_v10, 1  ;;  %v1018_v10 = vrot.slane %v5984_v19, 1 }
  0x81   : > { %5333 = vmatprep.mubr.msk.bf16.mxu0 %vm556_vm2, %v2249_v36  ;;  %v2669_v36 = vrot.slane %v6381_v13, 2 }
  0x82   : > { %v1017_v42 = vsel %vm1014_vm5, %v1015_v30, %v1016_v6 }
  0x83   : > { %v2670_v43 = vsel %vm2214_vm4, %v2667_v24, %v2669_v36  ;;  %v2672_v23 = vsel %vm2214_vm4, %v2669_v36, %v2671_v18  ;;  %v4852_v24 = vunpack.c.h.bf16 %v4850_v48  ;;  %v1030_v48 = vrot.slane %v6080_v51, 1  ;;  %v4924_v51 = vld [vmem:[%s7110_s2 + $0x20] sm:$0xff]  }
  0x85   : > { %5166 = vmatmul.mubr.msk.bf16.gmra.mrb[16].mxu1 %vm556_vm2, %v6091_v63  ;;  %v5779_v36 = vpack.i.bf16 %v4852_v24, %v4851_v21  ;;  %v6470_v21 = vld [vmem:[%s5956_s30 + $0x90] sm:$0xff]  }
  0x86   : > { %5169 = vmatprep.mubr.msk.bf16.mxu1 %vm556_vm2, %v6108_v25 }
  0x88   : > { %5334 = vmatmul.mubr.msk.bf16.gmra.mrb[32].mxu0 %vm556_vm2, %v2251_v45  ;;  %v6399_v45 = vld [vmem:[%s5956_s30 + $0x60] sm:$0xff]  }
  0x89   : > { %5339 = vmatprep.mubr.msk.bf16.mxu0 %vm556_vm2, %v2656_v47  ;;  %v1020_v47 = vrot.slane %v5998_v33, 1  ;;  %v2673_v19 = vrot.slane %v6399_v45, 2  ;;  %v2675_v33 = vrot.slane %v6404_v44, 2 }
  0x8b   : > { %v2674_v61 = vsel %vm2214_vm4, %v2671_v18, %v2673_v19 }
  0x8d   : > { %5170 = vmatmul.mubr.msk.bf16.gmra.mrb[20].mxu1 %vm556_vm2, %v6118_v41 }
  0x8e   : > { %5173 = vmatprep.mubr.msk.bf16.mxu1 %vm556_vm2, %v6132_v58 }
  0x90   : > { %5340 = vmatmul.mubr.msk.bf16.vlgmr.msra.gmra.mrb[0].mxu0 %vm556_vm2, %v2658_v52  ;;  %v1019_v52 = vsel %vm1014_vm5, %v1016_v6, %v1018_v10 }
  0x91   : > { %5376 = vmatpush3.bf16.msra.mxu0 %v3193_v62  ;;  %5343 = vmatprep.mubr.msk.bf16.mxu0 %vm556_vm2, %v2660_v14  ;;  %v1021_v62 = vsel %vm1014_vm5, %v1018_v10, %v1020_v47  ;;  %v1546_v14 = vsel %vm611_vm0, %v6243_v9, 0  ;;  %v2676_v9 = vsel %vm2214_vm4, %v2673_v19, %v2675_v33  ;;  %v1026_v10 = vrot.slane %v6036_v0, 1  ;;  %v6452_v19 = vld [vmem:[%s5956_s30 + $0x88] sm:$0xff]   ;;  %v4922_v0 = vld [vmem:[%s7110_s2 + $0x10] sm:$0xff]  }
  0x92   : > { %5750 = vmatprep.subr.msk.bf16.mxu0 %vm611_vm0, %v6349_v29 }
  0x95   : > { %5174 = vmatmul.mubr.msk.bf16.gmra.mrb[24].mxu1 %vm556_vm2, %v6137_v11 }
  0x96   : > { %5177 = vmatprep.mubr.msk.bf16.mxu1 %vm556_vm2, %v6154_v32 }
  0x98   : > { %5344 = vmatmul.mubr.msk.bf16.gmra.mrb[4].mxu0 %vm556_vm2, %v2662_v34  ;;  %v6419_v34 = vld [vmem:[%s5956_s30 + $0x70] sm:$0xff]  }
  0x99   : > { %5347 = vmatprep.mubr.msk.bf16.mxu0 %vm556_vm2, %v2664_v5  ;;  %v1024_v5 = vrot.slane %v6025_v54, 1  ;;  %v1023_v54 = vsel %vm1014_vm5, %v1020_v47, %v1022_v39  ;;  %v2677_v30 = vrot.slane %v6419_v34, 2  ;;  %v6447_v47 = vld [vmem:[%s5956_s30 + $0x80] sm:$0xff]  }
  0x9b   : > { %v1025_v6 = vsel %vm1014_vm5, %v1022_v39, %v1024_v5 }
  0x9d   : > { %5178 = vmatmul.mubr.msk.bf16.gmra.mrb[28].mxu1 %vm556_vm2, %v6160_v40 }
  0x9e   : > { %5181 = vmatprep.mubr.msk.bf16.mxu1 %vm556_vm2, %v6175_v56 }
  0xa0   : > { %5348 = vmatmul.mubr.msk.bf16.gmra.mrb[8].mxu0 %vm556_vm2, %v2666_v49  ;;  %v4921_v49 = vld [vmem:[%s7110_s2 + $0x8] sm:$0xff]  }
  0xa1   : > { %5351 = vmatprep.mubr.msk.bf16.mxu0 %vm556_vm2, %v2668_v59  ;;  %v5885_v59 = vmov 0   ;;  %v4855_v18 = vunpack.c.l.bf16 %v4921_v49 }
  0xa2   : > { %5778 = vset.pattern.permute.xlu0 %v5885_v59  ;;  %5784 = vset.pattern.permute.xlu1 %v5885_v59  ;;  %v2685_v59 = vrot.slane %v6470_v21, 2 }
  0xa3   : > { %5780 = vperm.xlu0 %5778, %v5779_v36  }
  0xa5   : > { %5182 = vmatmul.mubr.msk.bf16.gmra.mrb[32].mxu1 %vm556_vm2, %v6182_v4 }
  0xa6   : > { %5187 = vmatprep.mubr.msk.bf16.mxu1 %vm556_vm2, %v1017_v42  ;;  %v2679_v42 = vrot.slane %v6428_v17, 2 }
  0xa7   : > { %3987 = vperm.xlu0 %5778, %v4855_v18   ;;  %v2969_v18 = vshrl.u32 %v6307_v37, 16 }
  0xa8   : > { %5352 = vmatmul.mubr.msk.bf16.gmra.mrb[12].mxu0 %vm556_vm2, %v2670_v43  ;;  %v2678_v43 = vsel %vm2214_vm4, %v2675_v33, %v2677_v30  ;;  %v4923_v33 = vld [vmem:[%s7110_s2 + $0x18] sm:$0xff]  }
  0xa9   : > { %5355 = vmatprep.mubr.msk.bf16.mxu0 %vm556_vm2, %v2672_v23  ;;  %v1028_v23 = vrot.slane %v6064_v35, 1  ;;  %v2681_v35 = vrot.slane %v6447_v47, 2  ;;  %v4863_v36 = vunpack.c.l.bf16 %v4923_v33 }
  0xab   : > { %v1029_v39 = vsel %vm1014_vm5, %v1026_v10, %v1028_v23  ;;  %v2682_v24 = vsel %vm2214_vm4, %v2679_v42, %v2681_v35 }
  0xad   : > { %5188 = vmatmul.mubr.msk.bf16.vlgmr.msra.gmra.mrb[0].mxu1 %vm556_vm2, %v1019_v52  ;;  %v2680_v52 = vsel %vm2214_vm4, %v2677_v30, %v2679_v42  ;;  %v6476_v30 = vld [vmem:[%s5956_s30 + $0x98] sm:$0xff]  }
  0xae   : > { %5191 = vmatprep.mubr.msk.bf16.mxu1 %vm556_vm2, %v1021_v62  ;;  %5224 = vmatpush3.bf16.msra.mxu1 %v1546_v14  ;;  %v1027_v62 = vsel %vm1014_vm5, %v1024_v5, %v1026_v10  ;;  %v4856_v14 = vunpack.c.h.bf16 %v4921_v49  ;;  %v2683_v5 = vrot.slane %v6452_v19, 2  ;;  %v2972_v10 = vshll.u32 %v6307_v37, 16 }
  0xaf   : > { %5746 = vmatprep.subr.msk.bf16.mxu1 %vm611_vm0, %v5847_v16  ;;  %v4859_v16 = vunpack.c.l.bf16 %v4922_v0  ;;  %v1036_v37 = vrot.slane %v6118_v41, 1  ;;  %v4926_v41 = vld [vmem:[%s7110_s2 + $0x30] sm:$0xff]  }
  0xb0   : > { %5356 = vmatmul.mubr.msk.bf16.gmra.mrb[16].mxu0 %vm556_vm2, %v2674_v61  ;;  %v4860_v61 = vunpack.c.h.bf16 %v4922_v0  ;;  %3992 = vperm.xlu1 %5784, %v4856_v14   ;;  %v2684_v49 = vsel %vm2214_vm4, %v2681_v35, %v2683_v5  ;;  %v4867_v14 = vunpack.c.l.bf16 %v4924_v51  ;;  %v5843_v35 = vld [vmem:[%s5956_s30 + $0xa0] ss:$0 sps:$4 sm:$0x33]  }
  0xb1   : > { %5359 = vmatprep.mubr.msk.bf16.mxu0 %vm556_vm2, %v2676_v9  ;;  %v4864_v9 = vunpack.c.h.bf16 %v4923_v33  ;;  %v1034_v33 = vrot.slane %v6108_v25, 1 }
  0xb2   : > { %4002 = vperm.xlu0 %5778, %v4860_v61   ;;  %v2971_v61 = vrot.slane %v2969_v18, 2 }
  0xb3   : > { %v1037_v25 = vsel %vm1014_vm5, %v1034_v33, %v1036_v37 }
  0xb4   : > { %3997 = vperm.xlu1 %5784, %v4859_v16   ;;  %v2974_v16 = vrot.slane %v2972_v10, 3  ;;  %v2995_v10 = vshrl.u32 %v6326_v50, 16 }
  0xb5   : > { %5192 = vmatmul.mubr.msk.bf16.gmra.mrb[4].mxu1 %vm556_vm2, %v1023_v54  ;;  %v1032_v54 = vrot.slane %v6091_v63, 1  ;;  %v4925_v63 = vld [vmem:[%s7110_s2 + $0x28] sm:$0xff]  }
  0xb6   : > { %5195 = vmatprep.mubr.msk.bf16.mxu1 %vm556_vm2, %v1025_v6  ;;  %4012 = vperm.xlu0 %5778, %v4864_v9   ;;  %v1031_v6 = vsel %vm1014_vm5, %v1028_v23, %v1030_v48  ;;  %v2687_v23 = vrot.slane %v6476_v30, 2  ;;  %v4872_v0 = vunpack.c.h.bf16 %v4925_v63 }
  0xb7   : > { %v1033_v42 = vsel %vm1014_vm5, %v1030_v48, %v1032_v54 }
  0xb8   : > { %5360 = vmatmul.mubr.msk.bf16.gmra.mrb[20].mxu0 %vm556_vm2, %v2678_v43  ;;  %v4868_v43 = vunpack.c.h.bf16 %v4924_v51  ;;  %4007 = vperm.xlu1 %5784, %v4863_v36   ;;  %v2688_v9 = vsel %vm2214_vm4, %v2685_v59, %v2687_v23  ;;  %v4871_v36 = vunpack.c.l.bf16 %v4925_v63  ;;  %v2986_v51 = vshrl.u32 %v6322_v46, 16 }
  0xb9   : > { %5363 = vmatprep.mubr.msk.bf16.mxu0 %vm556_vm2, %v2680_v52  ;;  %v2977_v52 = vshrl.u32 %v6310_v38, 16  ;;  %v2998_v63 = vshll.u32 %v6326_v50, 16 }
  0xba   : > { %4022 = vperm.xlu0 %5778, %v4868_v43   ;;  %v4875_v43 = vunpack.c.l.bf16 %v4926_v41 }
  0xbb   : > { %v2979_v48 = vrot.slane %v2977_v52, 2 }
  0xbc   : > { %4017 = vperm.xlu1 %5784, %v4867_v14  }
  0xbd   : > { %5196 = vmatmul.mubr.msk.bf16.gmra.mrb[8].mxu1 %vm556_vm2, %v1027_v62  ;;  %v2980_v62 = vshll.u32 %v6310_v38, 16 }
  0xbe   : > { %5199 = vmatprep.mubr.msk.bf16.mxu1 %vm556_vm2, %v1029_v39  ;;  %v2686_v39 = vsel %vm2214_vm4, %v2683_v5, %v2685_v59  ;;  %4032 = vperm.xlu0 %5778, %v4872_v0   ;;  %v4927_v5 = vld [vmem:[%s7110_s2 + $0x38] sm:$0xff]   ;;  %v2975_v59 = vor.u32 %v2974_v16, %v2971_v61  ;;  %v2988_v0 = vrot.slane %v2986_v51, 2  ;;  %v2997_v61 = vrot.slane %v2995_v10, 2 }
  0xbf   : > { %v4880_v52 = vunpack.c.h.bf16 %v4927_v5  ;;  %v3000_v16 = vrot.slane %v2998_v63, 3  ;;  %v1042_v51 = vrot.slane %v6154_v32, 1  ;;  %v1044_v63 = vrot.slane %v6160_v40, 1  ;;  %v4930_v40 = vld [vmem:[%s7110_s2 + $0x50] sm:$0xff]  }
  0xc0   : > { %5364 = vmatmul.mubr.msk.bf16.gmra.mrb[24].mxu0 %vm556_vm2, %v2682_v24  ;;  %v2982_v24 = vrot.slane %v2980_v62, 3  ;;  %4027 = vperm.xlu1 %5784, %v4871_v36   ;;  %v1038_v62 = vrot.slane %v6132_v58, 1  ;;  %v4928_v58 = vld [vmem:[%s7110_s2 + $0x40] sm:$0xff]   ;;  %v3013_v36 = vshrl.u32 %v6344_v28, 16  ;;  %v3022_v32 = vshrl.u32 %v6363_v3, 16 }
  0xc1   : > { %5367 = vmatprep.mubr.msk.bf16.mxu0 %vm556_vm2, %v2684_v49  ;;  %v1035_v49 = vsel %vm1014_vm5, %v1032_v54, %v1034_v33  ;;  %v4876_v54 = vunpack.c.h.bf16 %v4926_v41  ;;  %v3016_v41 = vshll.u32 %v6344_v28, 16 }
  0xc2   : > { %v2983_v18 = vor.u32 %v2982_v24, %v2979_v48  ;;  %v3004_v48 = vshrl.u32 %v6338_v53, 16  ;;  %v4879_v24 = vunpack.c.l.bf16 %v4927_v5  ;;  %v4883_v5 = vunpack.c.l.bf16 %v4928_v58 }
  0xc3   : > { %4042 = vperm.xlu0 %5778, %v4876_v54  }
  0xc4   : > { %4037 = vperm.xlu1 %5784, %v4875_v43   ;;  %v3006_v54 = vrot.slane %v3004_v48, 2  ;;  %v3507_v43 = vsel %vm611_vm0, %v6349_v29, 0  ;;  %v4931_v29 = vld [vmem:[%s7110_s2 + $0x58] sm:$0xff]   ;;  %v3034_v48 = vshll.u32 %v6367_v1, 16 }
  0xc5   : > { %5200 = vmatmul.mubr.msk.bf16.gmra.mrb[12].mxu1 %vm556_vm2, %v1031_v6  ;;  %v2689_v6 = vrot.slane %v5843_v35, 2  ;;  %v1040_v35 = vrot.slane %v6137_v11, 1  ;;  %v4929_v11 = vld [vmem:[%s7110_s2 + $0x48] sm:$0xff]  }
  0xc6   : > { %5203 = vmatprep.mubr.msk.bf16.mxu1 %vm556_vm2, %v1033_v42  ;;  %v2989_v42 = vshll.u32 %v6322_v46, 16 }
  0xc7   : > { %v2690_v14 = vsel %vm2214_vm4, %v2687_v23, %v2689_v6  ;;  %4052 = vperm.xlu0 %5778, %v4880_v52   ;;  %v3007_v6 = vshll.u32 %v6338_v53, 16 }
  0xc8   : > { %5368 = vmatmul.mubr.msk.bf16.gmra.mrb[28].mxu0 %vm556_vm2, %v2686_v39  ;;  %v2991_v33 = vrot.slane %v2989_v42, 3  ;;  %v2984_v39 = vsel %vm2967_vm6, %v2975_v59, %v2983_v18  ;;  %4047 = vperm.xlu1 %5784, %v4879_v24   ;;  %v4888_v59 = vunpack.c.h.bf16 %v4929_v11  ;;  %v4891_v24 = vunpack.c.l.bf16 %v4930_v40 }
  0xc9   : > { %5371 = vmatprep.mubr.msk.bf16.mxu0 %vm556_vm2, %v2688_v9  ;;  %v1039_v9 = vsel %vm1014_vm5, %v1036_v37, %v1038_v62  ;;  %v3001_v37 = vor.u32 %v3000_v16, %v2997_v61  ;;  %v3009_v10 = vrot.slane %v3007_v6, 3  ;;  %v1045_v61 = vsel %vm1014_vm5, %v1042_v51, %v1044_v63 }
  0xca   : > { %v2992_v23 = vor.u32 %v2991_v33, %v2988_v0  ;;  %v1043_v0 = vsel %vm1014_vm5, %v1040_v35, %v1042_v51  ;;  %v4887_v33 = vunpack.c.l.bf16 %v4929_v11  ;;  %v1046_v11 = vrot.slane %v6175_v56, 1  ;;  %v4932_v56 = vld [vmem:[%s7110_s2 + $0x60] sm:$0xff]  }
  0xcc   : > { %v2993_v42 = vsel %vm2967_vm6, %v2983_v18, %v2992_v23  ;;  %v3002_v52 = vsel %vm2967_vm6, %v2992_v23, %v3001_v37  ;;  %4057 = vperm.xlu1 %5784, %v4883_v5   ;;  %v3025_v18 = vshll.u32 %v6363_v3, 16  ;;  %v3024_v23 = vrot.slane %v3022_v32, 2 }
  0xcd   : > { %5204 = vmatmul.mubr.msk.bf16.gmra.mrb[16].mxu1 %vm556_vm2, %v1035_v49  ;;  %v1041_v49 = vsel %vm1014_vm5, %v1038_v62, %v1040_v35  ;;  %v3015_v62 = vrot.slane %v3013_v36, 2  ;;  %v4892_v35 = vunpack.c.h.bf16 %v4930_v40  ;;  %v3036_v5 = vrot.slane %v3034_v48, 3 }
  0xce   : > { %5207 = vmatprep.mubr.msk.bf16.mxu1 %vm556_vm2, %v1037_v25  ;;  %v4884_v25 = vunpack.c.h.bf16 %v4928_v58  ;;  %v4896_v58 = vunpack.c.h.bf16 %v4931_v29 }
  0xd0   : > { %5372 = vmatmul.mubr.msk.bf16.gmra.mrb[32].mxu0 %vm556_vm2, %v2690_v14  ;;  %4062 = vperm.xlu0 %5778, %v4884_v25   ;;  %v3018_v14 = vrot.slane %v3016_v41, 3  ;;  %v1048_v25 = vrot.slane %v6182_v4, 1  ;;  %v4933_v4 = vld [vmem:[%s7110_s2 + $0x68] sm:$0xff]  }
  0xd1   : > { %5377 = vmatprep.mubr.msk.bf16.mxu0 %vm556_vm2, %v2984_v39  ;;  %v3010_v39 = vor.u32 %v3009_v10, %v3006_v54  ;;  %4067 = vperm.xlu1 %5784, %v4887_v33   ;;  %v3040_v54 = vshrl.u32 %v6381_v13, 16  ;;  %v3043_v10 = vshll.u32 %v6381_v13, 16  ;;  %v4934_v33 = vld [vmem:[%s7110_s2 + $0x70] sm:$0xff]  }
  0xd2   : > { %v3019_v16 = vor.u32 %v3018_v14, %v3015_v62  ;;  %v3052_v62 = vshll.u32 %v6386_v8, 16  ;;  %v4899_v14 = vunpack.c.l.bf16 %v4932_v56 }
  0xd3   : > { %v3011_v6 = vsel %vm2967_vm6, %v3001_v37, %v3010_v39  ;;  %v1049_v37 = vsel %vm1014_vm5, %v1046_v11, %v1048_v25  ;;  %v3042_v40 = vrot.slane %v3040_v54, 2 }
  0xd4   : > { %4072 = vperm.xlu0 %5778, %v4888_v59   ;;  %v3020_v36 = vsel %vm2967_vm6, %v3010_v39, %v3019_v16  ;;  %v1047_v59 = vsel %vm1014_vm5, %v1044_v63, %v1046_v11  ;;  %v1454_v39 = vrot.slane %v5987_v20, 1  ;;  %v4935_v11 = vld [vmem:[%s7110_s2 + $0x78] sm:$0xff]  }
  0xd5   : > { %5208 = vmatmul.mubr.msk.bf16.gmra.mrb[20].mxu1 %vm556_vm2, %v1039_v9  ;;  %v3031_v9 = vshrl.u32 %v6367_v1, 16  ;;  %4077 = vperm.xlu1 %5784, %v4891_v24   ;;  %v3054_v24 = vrot.slane %v3052_v62, 3 }
  0xd6   : > { %5211 = vmatprep.mubr.msk.bf16.mxu1 %vm556_vm2, %v1041_v49  ;;  %v3027_v49 = vrot.slane %v3025_v18, 3  ;;  %v1050_v18 = vrot.slane %v6205_v27, 1 }
  0xd7   : > { %v3033_v41 = vrot.slane %v3031_v9, 2 }
  0xd8   : > { %5378 = vmatmul.mubr.msk.bf16.vlgmr.msra.gmra.mrb[0].mxu0 %vm556_vm2, %v2993_v42  ;;  %4082 = vperm.xlu0 %5778, %v4892_v35   ;;  %v3028_v51 = vor.u32 %v3027_v49, %v3024_v23  ;;  %v4895_v42 = vunpack.c.l.bf16 %v4931_v29  ;;  %v3045_v29 = vrot.slane %v3043_v10, 3  ;;  %v1051_v27 = vsel %vm1014_vm5, %v1048_v25, %v1050_v18  ;;  %v5850_v10 = vld [vmem:[%s5956_s30 + $0x20] sm:$0xff]  }
  0xd9   : > { %5414 = vmatpush3.bf16.msra.mxu0 %v3507_v43  ;;  %5381 = vmatprep.mubr.msk.bf16.mxu0 %vm556_vm2, %v3002_v52  ;;  %v4900_v43 = vunpack.c.h.bf16 %v4932_v56  ;;  %v3037_v63 = vor.u32 %v3036_v5, %v3033_v41  ;;  %v3049_v52 = vshrl.u32 %v6386_v8, 16  ;;  %v3058_v49 = vshrl.u32 %v6399_v45, 16  ;;  %v4936_v56 = vld [vmem:[%s7110_s2 + $0x80] sm:$0xff]  }
  0xda   : > { %4087 = vperm.xlu1 %5784, %v4895_v42   ;;  %v3029_v32 = vsel %vm2967_vm6, %v3019_v16, %v3028_v51  ;;  %v4903_v16 = vunpack.c.l.bf16 %v4933_v4  ;;  %v3046_v20 = vor.u32 %v3045_v29, %v3042_v40  ;;  %v3067_v41 = vshrl.u32 %v6404_v44, 16 }
  0xdb   : > { %v3038_v9 = vsel %vm2967_vm6, %v3028_v51, %v3037_v63  ;;  %v3051_v48 = vrot.slane %v3049_v52, 2  ;;  %v3070_v25 = vshll.u32 %v6404_v44, 16  ;;  %v4907_v5 = vunpack.c.l.bf16 %v4934_v33  ;;  %v5849_v51 = vld [vmem:[%s5956_s30 + $0x18] sm:$0xff]  }
  0xdc   : > { %4092 = vperm.xlu0 %5778, %v4896_v58   ;;  %v4908_v58 = vunpack.c.h.bf16 %v4934_v33  ;;  %v1457_v42 = vrot.slane %v5849_v51, 1  ;;  %v3069_v62 = vrot.slane %v3067_v41, 2  ;;  %v3076_v29 = vshrl.u32 %v6419_v34, 16 }
  0xdd   : > { %5212 = vmatmul.mubr.msk.bf16.gmra.mrb[24].mxu1 %vm556_vm2, %v1043_v0  ;;  %v4904_v0 = vunpack.c.h.bf16 %v4933_v4  ;;  %v3047_v4 = vsel %vm2967_vm6, %v3037_v63, %v3046_v20  ;;  %v4937_v63 = vld [vmem:[%s7110_s2 + $0x88] sm:$0xff]   ;;  %v3094_v51 = vshrl.u32 %v6447_v47, 16 }
  0xde   : > { %5215 = vmatprep.mubr.msk.bf16.mxu1 %vm556_vm2, %v1045_v61  ;;  %v5848_v61 = vld [vmem:[%s5956_s30 + $0x10] sm:$0xff]   ;;  %4097 = vperm.xlu1 %5784, %v4899_v14   ;;  %v3072_v14 = vrot.slane %v3070_v25, 3 }
  0xdf   : > { %v1455_v35 = vrot.slane %v5848_v61, 1 }
  0xe0   : > { %5382 = vmatmul.mubr.msk.bf16.gmra.mrb[4].mxu0 %vm556_vm2, %v3011_v6  ;;  %4102 = vperm.xlu0 %5778, %v4900_v43   ;;  %v3061_v6 = vshll.u32 %v6399_v45, 16  ;;  %v1459_v43 = vrot.slane %v5850_v10, 1  ;;  %v3073_v61 = vor.u32 %v3072_v14, %v3069_v62  ;;  %v5854_v14 = vld [vmem:[%s5956_s30 + $0x40] sm:$0xff]  }
  0xe1   : > { %5385 = vmatprep.mubr.msk.bf16.mxu0 %vm556_vm2, %v3020_v36  ;;  %v1456_v23 = vsel %vm1014_vm5, %v1454_v39, %v1455_v35  ;;  %v3055_v36 = vor.u32 %v3054_v24, %v3051_v48  ;;  %v1458_v18 = vsel %vm1014_vm5, %v1455_v35, %v1457_v42  ;;  %v3079_v39 = vshll.u32 %v6419_v34, 16 }
  0xe2   : > { %4107 = vperm.xlu1 %5784, %v4903_v16   ;;  %v3063_v54 = vrot.slane %v3061_v6, 3  ;;  %v1460_v40 = vsel %vm1014_vm5, %v1457_v42, %v1459_v43  ;;  %v3088_v35 = vshll.u32 %v6428_v17, 16  ;;  %v4915_v48 = vunpack.c.l.bf16 %v4936_v56  ;;  %v5851_v16 = vld [vmem:[%s5956_s30 + $0x28] sm:$0xff]  }
  0xe3   : > { %v3056_v52 = vsel %vm2967_vm6, %v3046_v20, %v3055_v36  ;;  %v4920_v24 = vunpack.c.h.bf16 %v4937_v63  ;;  %v3081_v20 = vrot.slane %v3079_v39, 3  ;;  %v3097_v42 = vshll.u32 %v6447_v47, 16 }
  0xe4   : > { %4112 = vperm.xlu0 %5778, %v4904_v0   ;;  %v4911_v0 = vunpack.c.l.bf16 %v4935_v11  ;;  %v3090_v25 = vrot.slane %v3088_v35, 3  ;;  %v3112_v39 = vshrl.u32 %v6470_v21, 16  ;;  %v3121_v35 = vshrl.u32 %v6476_v30, 16 }
  0xe5   : > { %5216 = vmatmul.mubr.msk.bf16.gmra.mrb[28].mxu1 %vm556_vm2, %v1047_v59  ;;  %v4912_v59 = vunpack.c.h.bf16 %v4935_v11  ;;  %v3078_v11 = vrot.slane %v3076_v29, 2  ;;  %v3099_v62 = vrot.slane %v3097_v42, 3 }
  0xe6   : > { %5219 = vmatprep.mubr.msk.bf16.mxu1 %vm556_vm2, %v1049_v37  ;;  %v3060_v37 = vrot.slane %v3058_v49, 2  ;;  %4117 = vperm.xlu1 %5784, %v4907_v5   ;;  %v4919_v5 = vunpack.c.l.bf16 %v4937_v63 }
  0xe8   : > { %5386 = vmatmul.mubr.msk.bf16.gmra.mrb[8].mxu0 %vm556_vm2, %v3029_v32  ;;  %4122 = vperm.xlu0 %5778, %v4908_v58   ;;  %v4916_v32 = vunpack.c.h.bf16 %v4936_v56  ;;  %v3064_v33 = vor.u32 %v3063_v54, %v3060_v37  ;;  %v1461_v58 = vrot.slane %v5851_v16, 1  ;;  %v3106_v37 = vshll.u32 %v6452_v19, 16  ;;  %v5853_v54 = vld [vmem:[%s5956_s30 + $0x38] sm:$0xff]  }
  0xe9   : > { %5389 = vmatprep.mubr.msk.bf16.mxu0 %vm556_vm2, %v3038_v9  ;;  %v3085_v9 = vshrl.u32 %v6428_v17, 16  ;;  %v1465_v10 = vrot.slane %v5853_v54, 1 }
  0xea   : > { %4127 = vperm.xlu1 %5784, %v4911_v0   ;;  %v3074_v6 = vsel %vm2967_vm6, %v3064_v33, %v3073_v61  ;;  %v1467_v0 = vrot.slane %v5854_v14, 1  ;;  %v3108_v63 = vrot.slane %v3106_v37, 3 }
  0xeb   : > { %v3087_v41 = vrot.slane %v3085_v9, 2 }
  0xec   : > { %4132 = vperm.xlu0 %5778, %v4912_v59   ;;  %v1462_v59 = vsel %vm1014_vm5, %v1459_v43, %v1461_v58  ;;  %v1468_v29 = vsel %vm1014_vm5, %v1465_v10, %v1467_v0 }
  0xed   : > { %5220 = vmatmul.mubr.msk.bf16.gmra.mrb[32].mxu1 %vm556_vm2, %v1051_v27  ;;  %v3065_v27 = vsel %vm2967_vm6, %v3055_v36, %v3064_v33  ;;  %v3091_v56 = vor.u32 %v3090_v25, %v3087_v41  ;;  %v3123_v41 = vrot.slane %v3121_v35, 2  ;;  %v3420_v35 = vrot.slane %v6326_v50, 3 }
  0xee   : > { %5225 = vmatprep.mubr.msk.bf16.mxu1 %vm556_vm2, %v1456_v23  ;;  %v5852_v23 = vld [vmem:[%s5956_s30 + $0x30] sm:$0xff]   ;;  %4137 = vperm.xlu1 %5784, %v4915_v48   ;;  %v3124_v48 = vshll.u32 %v6476_v30, 16  ;;  %v3422_v50 = vrot.slane %v6338_v53, 3 }
  0xef   : > { %v1463_v49 = vrot.slane %v5852_v23, 1 }
  0xf0   : > { %5390 = vmatmul.mubr.msk.bf16.gmra.mrb[12].mxu0 %vm556_vm2, %v3047_v4  ;;  %4142 = vperm.xlu0 %5778, %v4916_v32   ;;  %v3103_v4 = vshrl.u32 %v6452_v19, 16  ;;  %v3126_v25 = vrot.slane %v3124_v48, 3  ;;  %v1481_v48 = vrot.slane %v6269_v7, 1 }
  0xf1   : > { %5393 = vmatprep.mubr.msk.bf16.mxu0 %vm556_vm2, %v3056_v52  ;;  %v1464_v36 = vsel %vm1014_vm5, %v1461_v58, %v1463_v49  ;;  %v3096_v52 = vrot.slane %v3094_v51, 2  ;;  %v1466_v33 = vsel %vm1014_vm5, %v1463_v49, %v1465_v10  ;;  %v6653_v49 = vld [vmem:[%s5956_s30 + $0xa0] ss:$0 sps:$4 sm:$0x77]  }
  0xf2   : > { %4147 = vperm.xlu1 %5784, %v4919_v5   ;;  %v3133_v51 = vshll.u32 %v6653_v49, 16  ;;  %v3127_v42 = vor.u32 %v3126_v25, %v3123_v41  ;;  %v1867_v41 = vshrl.u32 %v6232_v55, 16  ;;  %v1870_v25 = vshll.u32 %v6232_v55, 16 }
  0xf4   : > { %4152 = vperm.xlu0 %5778, %v4920_v24   ;;  %v5855_v24 = vld [vmem:[%s5956_s30 + $0x48] sm:$0xff]  }
  0xf5   : > { %5226 = vmatmul.mubr.msk.bf16.vlgmr.msra.gmra.mrb[0].mxu1 %vm556_vm2, %v1458_v18  ;;  %v3105_v18 = vrot.slane %v3103_v4, 2  ;;  %v1469_v16 = vrot.slane %v5855_v24, 1  ;;  %v5857_v4 = vld [vmem:[%s5956_s30 + $0x58] sm:$0xff]  }
  0xf6   : > { %5229 = vmatprep.mubr.msk.bf16.mxu1 %vm556_vm2, %v1460_v40  ;;  %5452 = vmatpush3.bf16.msra.mxu1 %v5938_v2  ;;  %v3082_v2 = vor.u32 %v3081_v20, %v3078_v11  ;;  %v3100_v40 = vor.u32 %v3099_v62, %v3096_v52  ;;  %v5856_v20 = vld [vmem:[%s5956_s30 + $0x50] sm:$0xff]   ;;  %v1473_v37 = vrot.slane %v5857_v4, 1  ;;  %v1475_v52 = vrot.slane %v6232_v55, 1 }
  0xf7   : > { %v3109_v9 = vor.u32 %v3108_v63, %v3105_v18  ;;  %v1471_v23 = vrot.slane %v5856_v20, 1  ;;  %v1470_v5 = vsel %vm1014_vm5, %v1467_v0, %v1469_v16  ;;  %v1485_v20 = vrot.slane %v6285_v22, 1 }
  0xf8   : > { %5394 = vmatmul.mubr.msk.bf16.gmra.mrb[16].mxu0 %vm556_vm2, %v3065_v27  ;;  %v3083_v43 = vsel %vm2967_vm6, %v3073_v61, %v3082_v2  ;;  %v3092_v32 = vsel %vm2967_vm6, %v3082_v2, %v3091_v56  ;;  %v3115_v61 = vshll.u32 %v6470_v21, 16  ;;  %v3101_v58 = vsel %vm2967_vm6, %v3091_v56, %v3100_v40  ;;  %v3408_v56 = vld [vmem:[%s5956_s30 + $0x10] sm:$0x8] }
  0xf9   : > { %5397 = vmatprep.mubr.msk.bf16.mxu0 %vm556_vm2, %v3074_v6  ;;  %v3114_v27 = vrot.slane %v3112_v39, 2  ;;  %v3110_v6 = vsel %vm2967_vm6, %v3100_v40, %v3109_v9  ;;  %v1472_v2 = vsel %vm1014_vm5, %v1469_v16, %v1471_v23  ;;  %v4756_v14 = vcombine.low %v3408_v56, %v6299_v31 }
  0xfa   : > { %v3117_v11 = vrot.slane %v3115_v61, 3  ;;  %v1474_v0 = vsel %vm1014_vm5, %v1471_v23, %v1473_v37  ;;  %v1476_v18 = vsel %vm1014_vm5, %v1473_v37, %v1475_v52  ;;  %v1477_v40 = vrot.slane %v6251_v57, 1 }
  0xfb   : > { %v3415_v63 = vrot.slane %v4756_v14, 3  ;;  %v1483_v16 = vrot.slane %v6273_v12, 1  ;;  %v3423_v23 = vsel %vm3414_vm7, %v3420_v35, %v3422_v50  ;;  %v1888_v37 = vshll.u32 %v6257_v60, 16 }
  0xfc   : > { %v1478_v61 = vsel %vm1014_vm5, %v1475_v52, %v1477_v40  ;;  %v3430_v52 = vrot.slane %v6381_v13, 3  ;;  %v1903_v13 = vshrl.u32 %v6273_v12, 16 }
  0xfd   : > { %5230 = vmatmul.mubr.msk.bf16.gmra.mrb[4].mxu1 %vm556_vm2, %v1462_v59  ;;  %v3118_v59 = vor.u32 %v3117_v11, %v3114_v27  ;;  %v1484_v27 = vsel %vm1014_vm5, %v1481_v48, %v1483_v16  ;;  %v3424_v11 = vrot.slane %v6344_v28, 3  ;;  %v1486_v28 = vsel %vm1014_vm5, %v1483_v16, %v1485_v20 }
  0xfe   : > { %5233 = vmatprep.mubr.msk.bf16.mxu1 %vm556_vm2, %v1464_v36  ;;  %v3130_v36 = vshrl.u32 %v6653_v49, 16  ;;  %v1890_v14 = vrot.slane %v1888_v37, 2 }
  0xff   : > { %v3119_v54 = vsel %vm2967_vm6, %v3109_v9, %v3118_v59  ;;  %v3128_v62 = vsel %vm2967_vm6, %v3118_v59, %v3127_v42  ;;  %v3425_v53 = vsel %vm3414_vm7, %v3422_v50, %v3424_v11  ;;  %v3426_v59 = vrot.slane %v6363_v3, 3 }
 0x100   : > { %5398 = vmatmul.mubr.msk.bf16.gmra.mrb[20].mxu0 %vm556_vm2, %v3083_v43  ;;  %v3132_v10 = vrot.slane %v3130_v36, 2  ;;  %v3135_v43 = vrot.slane %v3133_v51, 3  ;;  %v1872_v36 = vrot.slane %v1870_v25, 2  ;;  %v1876_v51 = vshrl.u32 %v6251_v57, 16 }
 0x101   : > { %5401 = vmatprep.mubr.msk.bf16.mxu0 %vm556_vm2, %v3092_v32  ;;  %v3427_v56 = vsel %vm3414_vm7, %v3424_v11, %v3426_v59  ;;  %v1885_v3 = vshrl.u32 %v6257_v60, 16 }
 0x102   : > { %v3136_v32 = vor.u32 %v3135_v43, %v3132_v10  ;;  %v1878_v10 = vrot.slane %v1876_v51, 1 }
 0x104   : > { %v3137_v31 = vsel %vm2967_vm6, %v3127_v42, %v3136_v32  ;;  %v1879_v42 = vshll.u32 %v6251_v57, 16  ;;  %v1894_v32 = vshrl.u32 %v6269_v7, 16 }
 0x105   : > { %5234 = vmatmul.mubr.msk.bf16.gmra.mrb[8].mxu1 %vm556_vm2, %v1466_v33  ;;  %v3416_v33 = vrot.slane %v6310_v38, 3  ;;  %v3418_v38 = vrot.slane %v6322_v46, 3 }
 0x106   : > { %5237 = vmatprep.mubr.msk.bf16.mxu1 %vm556_vm2, %v1468_v29  ;;  %v1479_v29 = vrot.slane %v6257_v60, 1  ;;  %v1881_v43 = vrot.slane %v1879_v42, 2 }
 0x107   : > { %v3417_v39 = vsel %vm3414_vm7, %v3415_v63, %v3416_v33  ;;  %v3419_v24 = vsel %vm3414_vm7, %v3416_v33, %v3418_v38 }
 0x108   : > { %5402 = vmatmul.mubr.msk.bf16.gmra.mrb[24].mxu0 %vm556_vm2, %v3101_v58  ;;  %v1480_v9 = vsel %vm1014_vm5, %v1477_v40, %v1479_v29  ;;  %v3421_v58 = vsel %vm3414_vm7, %v3418_v38, %v3420_v35  ;;  %v1482_v46 = vsel %vm1014_vm5, %v1479_v29, %v1481_v48  ;;  %v1882_v60 = vor.u32 %v1881_v43, %v1878_v10  ;;  %v5858_v35 = vld [vmem:[%s5956_s30 + $0x88] sm:$0xff]  }
 0x109   : > { %5405 = vmatprep.mubr.msk.bf16.mxu0 %vm556_vm2, %v3110_v6  ;;  %v1487_v6 = vrot.slane %v6289_v26, 1  ;;  %v3428_v26 = vrot.slane %v6367_v1, 3  ;;  %v1912_v48 = vshrl.u32 %v5858_v35, 16  ;;  %v3450_v43 = vrot.slane %v6653_v49, 3 }
 0x10b   : > { %v1488_v22 = vsel %vm1014_vm5, %v1485_v20, %v1487_v6  ;;  %v3431_v63 = vsel %vm3414_vm7, %v3428_v26, %v3430_v52  ;;  %v1914_v11 = vrot.slane %v1912_v48, 1 }
 0x10d   : > { %5238 = vmatmul.mubr.msk.bf16.gmra.mrb[12].mxu1 %vm556_vm2, %v1470_v5  ;;  %v5846_v5 = vld [vmem:[%s5956_s30 + $0x98] ss:$0 sps:$4 sm:$0x11]  }
 0x10e   : > { %5241 = vmatprep.mubr.msk.bf16.mxu1 %vm556_vm2, %v1472_v2  ;;  %v1869_v2 = vrot.slane %v1867_v41, 1  ;;  %v1489_v55 = vrot.slane %v5846_v5, 1  ;;  %v5860_v5 = vld [vmem:[%s5956_s30 + $0x98] ss:$0 sps:$4 sm:$0x33]  }
 0x110   : > { %5406 = vmatmul.mubr.msk.bf16.gmra.mrb[28].mxu0 %vm556_vm2, %v3119_v54  ;;  %v1873_v4 = vor.u32 %v1872_v36, %v1869_v2  ;;  %v3429_v54 = vsel %vm3414_vm7, %v3426_v59, %v3428_v26  ;;  %v1490_v1 = vsel %vm1014_vm5, %v1487_v6, %v1489_v55  ;;  %v1930_v59 = vshrl.u32 %v5860_v5, 16 }
 0x111   : > { %5409 = vmatprep.mubr.msk.bf16.mxu0 %vm556_vm2, %v3128_v62  ;;  %v1887_v62 = vrot.slane %v1885_v3, 1 }
 0x112   : > { %v1874_v57 = vsel %vm1767_vm3, %v6146_v15, %v1873_v4  ;;  %v1906_v15 = vshll.u32 %v6273_v12, 16  ;;  %v1932_v55 = vrot.slane %v1930_v59, 1 }
 0x113   : > { %v1891_v33 = vor.u32 %v1890_v14, %v1887_v62 }
 0x114   : > { %v1908_v38 = vrot.slane %v1906_v15, 2 }
 0x115   : > { %5242 = vmatmul.mubr.msk.bf16.gmra.mrb[16].mxu1 %vm556_vm2, %v1474_v0  ;;  %v3432_v0 = vrot.slane %v6386_v8, 3  ;;  %v1883_v8 = vsel %vm1767_vm3, %v1873_v4, %v1882_v60 }
 0x116   : > { %5245 = vmatprep.mubr.msk.bf16.mxu1 %vm556_vm2, %v1476_v18  ;;  %v1897_v18 = vshll.u32 %v6269_v7, 16  ;;  %v3434_v7 = vrot.slane %v6399_v45, 3 }
 0x117   : > { %v3433_v40 = vsel %vm3414_vm7, %v3430_v52, %v3432_v0 }
 0x118   : > { %5410 = vmatmul.mubr.msk.bf16.gmra.mrb[32].mxu0 %vm556_vm2, %v3137_v31  ;;  %v1896_v31 = vrot.slane %v1894_v32, 1  ;;  %v1899_v29 = vrot.slane %v1897_v18, 2  ;;  %v3435_v16 = vsel %vm3414_vm7, %v3432_v0, %v3434_v7 }
 0x119   : > { %5415 = vmatprep.mubr.msk.bf16.mxu0 %vm556_vm2, %v3417_v39  ;;  %v1892_v39 = vsel %vm1767_vm3, %v1882_v60, %v1891_v33 }
 0x11a   : > { %v1900_v12 = vor.u32 %v1899_v29, %v1896_v31 }
 0x11d   : > { %5246 = vmatmul.mubr.msk.bf16.gmra.mrb[20].mxu1 %vm556_vm2, %v1478_v61  ;;  %v1905_v61 = vrot.slane %v1903_v13, 1 }
 0x11e   : > { %5249 = vmatprep.mubr.msk.bf16.mxu1 %vm556_vm2, %v1480_v9  ;;  %v3436_v9 = vrot.slane %v6404_v44, 3  ;;  %v1901_v44 = vsel %vm1767_vm3, %v1891_v33, %v1900_v12 }
 0x120   : > { %5416 = vmatmul.mubr.msk.bf16.vlgmr.msra.gmra.mrb[0].mxu0 %vm556_vm2, %v3419_v24  ;;  %v1915_v24 = vshll.u32 %v5858_v35, 16 }
 0x121   : > { %5419 = vmatprep.mubr.msk.bf16.mxu0 %vm556_vm2, %v3421_v58  ;;  %v1909_v58 = vor.u32 %v1908_v38, %v1905_v61 }
 0x122   : > { %v1917_v20 = vrot.slane %v1915_v24, 2  ;;  %v5781_v18 = vpop.permute.xlu0 %5780 }
 0x123   : > { %v1910_v6 = vsel %vm1767_vm3, %v1900_v12, %v1909_v58 }
 0x125   : > { %5250 = vmatmul.mubr.msk.bf16.gmra.mrb[24].mxu1 %vm556_vm2, %v1482_v46  ;;  %v5859_v46 = vld [vmem:[%s5956_s30 + $0x90] sm:$0xff]   ;;  %s5752_s30 = smul.u32 144, %s7118_s15 }
 0x126   : > { %5253 = vmatprep.mubr.msk.bf16.mxu1 %vm556_vm2, %v1484_v27  ;;  %v1921_v50 = vshrl.u32 %v5859_v46, 16  ;;  %v1924_v45 = vshll.u32 %v5859_v46, 16  ;;  %v3437_v27 = vsel %vm3414_vm7, %v3434_v7, %v3436_v9 }
 0x127   : > { %s6835_s13 = scalar_lea.vmem %s7111_s3, %s5752_s30 }
 0x128   : > { %5420 = vmatmul.mubr.msk.bf16.gmra.mrb[4].mxu0 %vm556_vm2, %v3423_v23  ;;  %v3438_v23 = vrot.slane %v6419_v34, 3  ;;  %v1923_v41 = vrot.slane %v1921_v50, 1  ;;  %v1926_v25 = vrot.slane %v1924_v45, 2  ;;  %v5782_v50 = vunpack.i.l.bf16 %v5781_v18 }
 0x129   : > { %5423 = vmatprep.mubr.msk.bf16.mxu0 %vm556_vm2, %v3425_v53  ;;  %v3440_v53 = vrot.slane %v6428_v17, 3  ;;  %v3442_v17 = vrot.slane %v6447_v47, 3  ;;  %v3446_v47 = vrot.slane %v6470_v21, 3 }
 0x12a   : > { %v3439_v2 = vsel %vm3414_vm7, %v3436_v9, %v3438_v23  ;;  %v1927_v36 = vor.u32 %v1926_v25, %v1923_v41 }
 0x12b   : > { %v3441_v26 = vsel %vm3414_vm7, %v3438_v23, %v3440_v53  ;;  %v3443_v3 = vsel %vm3414_vm7, %v3440_v53, %v3442_v17 }
 0x12d   : > { %5254 = vmatmul.mubr.msk.bf16.gmra.mrb[28].mxu1 %vm556_vm2, %v1486_v28  ;;  %v1918_v28 = vor.u32 %v1917_v20, %v1914_v11  ;;  %v5783_v20 = vunpack.i.h.bf16 %v5781_v18 }
 0x12e   : > { %5257 = vmatprep.mubr.msk.bf16.mxu1 %vm556_vm2, %v1488_v22  ;;  %v1933_v22 = vshll.u32 %v5860_v5, 16 }
 0x12f   : > { %v1919_v34 = vsel %vm1767_vm3, %v1909_v58, %v1918_v28  ;;  %v1928_v42 = vsel %vm1767_vm3, %v1918_v28, %v1927_v36  ;;  %v3993_v13 = vpop.permute.xlu1 %3992 }
 0x130   : > { %5424 = vmatmul.mubr.msk.bf16.gmra.mrb[8].mxu0 %vm556_vm2, %v3427_v56  ;;  %v1935_v51 = vrot.slane %v1933_v22, 2  ;;  %v3444_v56 = vrot.slane %v6452_v19, 3 }
 0x131   : > { %5427 = vmatprep.mubr.msk.bf16.mxu0 %vm556_vm2, %v3429_v54 }
 0x132   : > { %v1936_v4 = vor.u32 %v1935_v51, %v1932_v55  ;;  %v3445_v37 = vsel %vm3414_vm7, %v3442_v17, %v3444_v56  ;;  %v3447_v19 = vsel %vm3414_vm7, %v3444_v56, %v3446_v47 }
 0x133   : > { %v6801_v31 = vpop.permute.xlu1 %3997 }
 0x134   : > { %v1937_v54 = vsel %vm1767_vm3, %v1927_v36, %v1936_v4 }
 0x135   : > { %5258 = vmatmul.mubr.msk.bf16.gmra.mrb[32].mxu1 %vm556_vm2, %v1490_v1  ;;  %v3448_v1 = vrot.slane %v6476_v30, 3 }
 0x136   : > { %5283 = vmatprep.mubr.msk.bf16.mxu1 %vm556_vm2, %v1874_v57 }
 0x137   : > { %v3449_v10 = vsel %vm3414_vm7, %v3446_v47, %v3448_v1  ;;  %v3451_v52 = vsel %vm3414_vm7, %v3448_v1, %v3450_v43  ;;  %v6811_v38 = vpop.permute.xlu1 %4007 }
 0x138   : > { %5428 = vmatmul.mubr.msk.bf16.gmra.mrb[12].mxu0 %vm556_vm2, %v3431_v63 }
 0x139   : > { %5431 = vmatprep.mubr.msk.bf16.mxu0 %vm556_vm2, %v3433_v40  ;;  %v3988_v40 = vpop.permute.xlu0 %3987 }
 0x13d   : > { %5284 = vmatmul.mubr.msk.bf16.vlgmr.msra.gmra.mrb[20].mxu1 %vm556_vm2, %v1883_v8 }
 0x13e   : > { %5287 = vmatprep.mubr.msk.bf16.mxu1 %vm556_vm2, %v1892_v39  ;;  %v6807_v39 = vpop.permute.xlu0 %4002 }
 0x140   : > { %5432 = vmatmul.mubr.msk.bf16.gmra.mrb[16].mxu0 %vm556_vm2, %v3435_v16  ;;  %v6823_v16 = vpop.permute.xlu1 %4017 }
 0x141   : > { %5435 = vmatprep.mubr.msk.bf16.mxu0 %vm556_vm2, %v3437_v27 }
 0x142   : > { %v6815_v12 = vpop.permute.xlu0 %4012 }
 0x144   : > { %v6827_v46 = vpop.permute.xlu1 %4027 }
 0x145   : > { %5288 = vmatmul.mubr.msk.bf16.gmra.mrb[24].mxu1 %vm556_vm2, %v1901_v44 }
 0x146   : > { %5291 = vmatprep.mubr.msk.bf16.mxu1 %vm556_vm2, %v1910_v6  ;;  %v6825_v58 = vpop.permute.xlu0 %4022 }
 0x148   : > { %5436 = vmatmul.mubr.msk.bf16.gmra.mrb[20].mxu0 %vm556_vm2, %v3439_v2  ;;  %v6837_v5 = vpop.permute.xlu1 %4037 }
 0x149   : > { %5439 = vmatprep.mubr.msk.bf16.mxu0 %vm556_vm2, %v3441_v26 }
 0x14a   : > { %v6830_v45 = vpop.permute.xlu0 %4032 }
 0x14c   : > { %v6854_v43 = vpop.permute.xlu1 %4047 }
 0x14d   : > { %5292 = vmatmul.mubr.msk.bf16.gmra.mrb[28].mxu1 %vm556_vm2, %v1919_v34 }
 0x14e   : > { %5295 = vmatprep.mubr.msk.bf16.mxu1 %vm556_vm2, %v1928_v42  ;;  %v6841_v34 = vpop.permute.xlu0 %4042 }
 0x150   : > { %5440 = vmatmul.mubr.msk.bf16.gmra.mrb[24].mxu0 %vm556_vm2, %v3443_v3 }
 0x151   : > { %5443 = vmatprep.mubr.msk.bf16.mxu0 %vm556_vm2, %v3445_v37 }
 0x155   : > { %5296 = vmatmul.mubr.msk.bf16.gmra.mrb[32].mxu1 %vm556_vm2, %v1937_v54 }
 0x158   : > { %5444 = vmatmul.mubr.msk.bf16.gmra.mrb[28].mxu0 %vm556_vm2, %v3447_v19 }
 0x159   : > { %5447 = vmatprep.mubr.msk.bf16.mxu0 %vm556_vm2, %v3449_v10 }
 0x160   : > { %5448 = vmatmul.mubr.msk.bf16.gmra.mrb[32].mxu0 %vm556_vm2, %v3451_v52 }
 0x1c8   : > { %v5227_v57 = vpop.f32.mrb[0].mxu1 }
 0x1c9   : > { %v1582_v21 = vpop.f32.mrb[1].mxu1 }
 0x1ca   : > { %v5228_v62 = vpop.f32.mrb[2].mxu1 }
 0x1cb   : > { %v1585_v30 = vpop.f32.mrb[3].mxu1 }
 0x1d0   : > { %v6783_v14 = vpop.f32.mrb[4].mxu1 }
 0x1d1   : > { %v6785_v0 = vpop.f32.mrb[5].mxu1 }
 0x1d2   : > { %v6787_v60 = vpop.f32.mrb[6].mxu1 }
 0x1d3   : > { %v6789_v32 = vpop.f32.mrb[7].mxu1 }
 0x1d8   : > { %v6791_v63 = vpop.f32.mrb[8].mxu1 }
 0x1d9   : > { %v6793_v49 = vpop.f32.mrb[9].mxu1 }
 0x1da   : > { %v6795_v33 = vpop.f32.mrb[10].mxu1 }
 0x1db   : > { %v6797_v15 = vpop.f32.mrb[11].mxu1 }
 0x1e0   : > { %v6799_v8 = vpop.f32.mrb[12].mxu1 }
 0x1e1   : > { %v6803_v29 = vpop.f32.mrb[13].mxu1 }
 0x1e2   : > { %v6805_v7 = vpop.f32.mrb[14].mxu1 }
 0x1e3   : > { %v6809_v61 = vpop.f32.mrb[15].mxu1 }
 0x1e8   : > { %v6813_v9 = vpop.f32.mrb[16].mxu1 }
 0x1e9   : > { %v6817_v35 = vpop.f32.mrb[17].mxu1 }
 0x1ea   : > { %v6819_v48 = vpop.f32.mrb[18].mxu1 }
 0x1eb   : > { %v6821_v24 = vpop.f32.mrb[19].mxu1 }
 0x1f3   : > { %v5417_v27 = vpop.f32.mrb[0].mxu0 }
 0x1f4   : > { %v5453_v44 = vadd.f32 %v5417_v27, %v5227_v57  ;;  %v3543_v11 = vpop.f32.mrb[1].mxu0 }
 0x1f5   : > { %v5454_v23 = vadd.f32 %v3543_v11, %v1582_v21  ;;  %v5418_v6 = vpop.f32.mrb[2].mxu0 }
 0x1f6   : > { %v4815_v41 = vpack.c.bf16 %v5453_v44, %v5453_v44  ;;  %v4157_v25 = vmul.f32 %v5453_v44, %v3988_v40  ;;  %v5455_v53 = vadd.f32 %v5418_v6, %v5228_v62  ;;  %v3546_v28 = vpop.f32.mrb[3].mxu0 }
 0x1f7   : > { %v4813_v59 = vpack.c.bf16 %v5454_v23, %v5454_v23  ;;  %v4155_v22 = vmul.f32 %v5782_v50, %v5454_v23  ;;  %v5456_v2 = vadd.f32 %v3546_v28, %v1585_v30 }
 0x1f8   : > { %3869 = vst.msk [vmem:[%s6835_s13 + $0x8] sm:$0xf] %vm3866_vm8, %v4815_v41  ;;  %v4273_v36 = vmul.f32 %v5453_v44, %v4157_v25  ;;  %v4816_v26 = vpack.c.bf16 %v5455_v53, %v5455_v53  ;;  %v4158_v51 = vmul.f32 %v5455_v53, %v3993_v13  ;;  %v4195_v54 = vsel %vm4191_vm9, %v4157_v25, 0.0 }
 0x1f9   : > { %3867 = vst.msk [vmem:[%s6835_s13] sm:$0xf] %vm3866_vm8, %v4813_v59  ;;  %v4271_v55 = vmul.f32 %v5454_v23, %v4155_v22  ;;  %v4814_v17 = vpack.c.bf16 %v5456_v2, %v5456_v2  ;;  %v4156_v42 = vmul.f32 %v5783_v20, %v5456_v2  ;;  %v4192_v56 = vsel %vm4191_vm9, %v4155_v22, 0.0 }
 0x1fa   : > { %3870 = vst.msk [vmem:[%s6835_s13 + $0xc] sm:$0xf] %vm3866_vm8, %v4816_v26  ;;  %v4310_v47 = vsel %vm4191_vm9, %v4273_v36, 0.0  ;;  %v4274_v57 = vmul.f32 %v5455_v53, %v4158_v51  ;;  %v4197_v18 = vsel %vm4191_vm9, %v4158_v51, 0.0 }
 0x1fb   : > { %3868 = vst.msk [vmem:[%s6835_s13 + $0x4] sm:$0xf] %vm3866_vm8, %v4814_v17  ;;  %v4193_v4 = vsel %vm4191_vm9, %v4156_v42, 0.0  ;;  %v4272_v3 = vmul.f32 %v5456_v2, %v4156_v42  ;;  %v5421_v37 = vpop.f32.mrb[4].mxu0  ;;  %v4307_v52 = vsel %vm4191_vm9, %v4271_v55, 0.0  ;;  %v6873_v2 = vpop.permute.xlu1 %4057 }
 0x1fc   : > { %v4194_v1 = vadd.f32 %v4193_v4, %v4192_v56  ;;  %v5457_v19 = vadd.f32 %v5421_v37, %v6783_v14  ;;  %v3559_v10 = vpop.f32.mrb[5].mxu0  ;;  %v6860_v14 = vpop.permute.xlu0 %4052  ;;  %v4312_v25 = vsel %vm4191_vm9, %v4274_v57, 0.0 }
 0x1fd   : > { %v4308_v21 = vsel %vm4191_vm9, %v4272_v3, 0.0  ;;  %v5458_v62 = vadd.f32 %v3559_v10, %v6785_v0  ;;  %v5422_v30 = vpop.f32.mrb[6].mxu0 }
 0x1fe   : > { %v4196_v13 = vadd.f32 %v4195_v54, %v4194_v1  ;;  %v4309_v40 = vadd.f32 %v4308_v21, %v4307_v52  ;;  %v4819_v50 = vpack.c.bf16 %v5457_v19, %v5457_v19  ;;  %v3562_v27 = vpop.f32.mrb[7].mxu0  ;;  %v5459_v20 = vadd.f32 %v5422_v30, %v6787_v60 }
 0x1ff   : > { %v4817_v44 = vpack.c.bf16 %v5458_v62, %v5458_v62  ;;  %v4159_v11 = vmul.f32 %v5458_v62, %v6801_v31  ;;  %v5460_v23 = vadd.f32 %v3562_v27, %v6789_v32  ;;  %v4161_v0 = vmul.f32 %v5457_v19, %v6811_v38 }
 0x200   : > { %v4311_v6 = vadd.f32 %v4310_v47, %v4309_v40  ;;  %3873 = vst.msk [vmem:[%s6835_s13 + $0x18] sm:$0xf] %vm3866_vm8, %v4819_v50  ;;  %v4198_v41 = vadd.f32 %v4197_v18, %v4196_v13  ;;  %v4820_v31 = vpack.c.bf16 %v5459_v20, %v5459_v20  ;;  %v4162_v32 = vmul.f32 %v5459_v20, %v6815_v12  ;;  %v6882_v56 = vpop.permute.xlu0 %4062  ;;  %v6895_v13 = vpop.permute.xlu1 %4067 }
 0x201   : > { %3871 = vst.msk [vmem:[%s6835_s13 + $0x10] sm:$0xf] %vm3866_vm8, %v4817_v44  ;;  %v4199_v53 = vsel %vm4191_vm9, %v4159_v11, 0.0  ;;  %v4275_v28 = vmul.f32 %v5458_v62, %v4159_v11  ;;  %v4818_v22 = vpack.c.bf16 %v5460_v23, %v5460_v23  ;;  %v4160_v38 = vmul.f32 %v5460_v23, %v6807_v39 }
 0x202   : > { %v4200_v59 = vadd.f32 %v4199_v53, %v4198_v41  ;;  %v4313_v60 = vadd.f32 %v4312_v25, %v4311_v6  ;;  %3874 = vst.msk [vmem:[%s6835_s13 + $0x1c] sm:$0xf] %vm3866_vm8, %v4820_v31  ;;  %v4277_v55 = vmul.f32 %v5457_v19, %v4161_v0  ;;  %v4203_v12 = vsel %vm4191_vm9, %v4161_v0, 0.0 }
 0x203   : > { %v4314_v36 = vsel %vm4191_vm9, %v4275_v28, 0.0  ;;  %v5425_v26 = vpop.f32.mrb[8].mxu0  ;;  %3872 = vst.msk [vmem:[%s6835_s13 + $0x14] sm:$0xf] %vm3866_vm8, %v4818_v22  ;;  %v4201_v4 = vsel %vm4191_vm9, %v4160_v38, 0.0  ;;  %v4276_v3 = vmul.f32 %v5460_v23, %v4160_v38  ;;  %v4278_v39 = vmul.f32 %v5459_v20, %v4162_v32 }
 0x204   : > { %v4315_v51 = vadd.f32 %v4314_v36, %v4313_v60  ;;  %v5461_v17 = vadd.f32 %v5425_v26, %v6791_v63  ;;  %v3575_v42 = vpop.f32.mrb[9].mxu0  ;;  %v4202_v47 = vadd.f32 %v4201_v4, %v4200_v59  ;;  %v4318_v62 = vsel %vm4191_vm9, %v4277_v55, 0.0  ;;  %v6902_v20 = vpop.permute.xlu0 %4072 }
 0x205   : > { %v5462_v37 = vadd.f32 %v3575_v42, %v6793_v49  ;;  %v5426_v54 = vpop.f32.mrb[10].mxu0  ;;  %v4316_v63 = vsel %vm4191_vm9, %v4276_v3, 0.0 }
 0x206   : > { %v4823_v1 = vpack.c.bf16 %v5461_v17, %v5461_v17  ;;  %v5463_v19 = vadd.f32 %v5426_v54, %v6795_v33  ;;  %v3578_v10 = vpop.f32.mrb[11].mxu0  ;;  %v4204_v30 = vadd.f32 %v4203_v12, %v4202_v47  ;;  %v4317_v18 = vadd.f32 %v4316_v63, %v4315_v51 }
 0x207   : > { %v4821_v52 = vpack.c.bf16 %v5462_v37, %v5462_v37  ;;  %v4163_v57 = vmul.f32 %v5462_v37, %v6823_v16  ;;  %v5464_v21 = vadd.f32 %v3578_v10, %v6797_v15  ;;  %v4165_v49 = vmul.f32 %v5461_v17, %v6827_v46 }
 0x208   : > { %3877 = vst.msk [vmem:[%s6835_s13 + $0x28] sm:$0xf] %vm3866_vm8, %v4823_v1  ;;  %v4205_v33 = vsel %vm4191_vm9, %v4162_v32, 0.0  ;;  %v4824_v15 = vpack.c.bf16 %v5463_v19, %v5463_v19  ;;  %v4319_v50 = vadd.f32 %v4318_v62, %v4317_v18  ;;  %v4166_v44 = vmul.f32 %v5463_v19, %v6830_v45  ;;  %v6930_v1 = vpop.permute.xlu0 %4082 }
 0x209   : > { %3875 = vst.msk [vmem:[%s6835_s13 + $0x20] sm:$0xf] %vm3866_vm8, %v4821_v52  ;;  %v4207_v40 = vsel %vm4191_vm9, %v4163_v57, 0.0  ;;  %v4279_v16 = vmul.f32 %v5462_v37, %v4163_v57  ;;  %v4206_v27 = vadd.f32 %v4205_v33, %v4204_v30  ;;  %v4822_v11 = vpack.c.bf16 %v5464_v21, %v5464_v21 }
 0x20a   : > { %v4320_v46 = vsel %vm4191_vm9, %v4278_v39, 0.0  ;;  %3878 = vst.msk [vmem:[%s6835_s13 + $0x2c] sm:$0xf] %vm3866_vm8, %v4824_v15  ;;  %v4164_v6 = vmul.f32 %v5464_v21, %v6825_v58  ;;  %v4281_v41 = vmul.f32 %v5461_v17, %v4165_v49  ;;  %v4211_v31 = vsel %vm4191_vm9, %v4165_v49, 0.0  ;;  %v6917_v17 = vpop.permute.xlu1 %4077 }
 0x20b   : > { %v4322_v23 = vsel %vm4191_vm9, %v4279_v16, 0.0  ;;  %v5429_v0 = vpop.f32.mrb[12].mxu0  ;;  %v4208_v25 = vadd.f32 %v4207_v40, %v4206_v27  ;;  %v4321_v53 = vadd.f32 %v4320_v46, %v4319_v50  ;;  %3876 = vst.msk [vmem:[%s6835_s13 + $0x24] sm:$0xf] %vm3866_vm8, %v4822_v11  ;;  %v4282_v58 = vmul.f32 %v5463_v19, %v4166_v44 }
 0x20c   : > { %v5465_v28 = vadd.f32 %v5429_v0, %v6799_v8  ;;  %v3591_v45 = vpop.f32.mrb[13].mxu0  ;;  %v4209_v59 = vsel %vm4191_vm9, %v4164_v6, 0.0  ;;  %v4280_v60 = vmul.f32 %v5464_v21, %v4164_v6  ;;  %v4326_v3 = vsel %vm4191_vm9, %v4281_v41, 0.0  ;;  %v6955_v41 = vpop.permute.xlu0 %4092 }
 0x20d   : > { %v5466_v32 = vadd.f32 %v3591_v45, %v6803_v29  ;;  %v5430_v22 = vpop.f32.mrb[14].mxu0  ;;  %v4323_v36 = vadd.f32 %v4322_v23, %v4321_v53  ;;  %v4210_v38 = vadd.f32 %v4209_v59, %v4208_v25  ;;  %v4213_v37 = vsel %vm4191_vm9, %v4166_v44, 0.0 }
 0x20e   : > { %v4827_v26 = vpack.c.bf16 %v5465_v28, %v5465_v28  ;;  %v3594_v55 = vpop.f32.mrb[15].mxu0  ;;  %v4324_v8 = vsel %vm4191_vm9, %v4280_v60, 0.0  ;;  %v5467_v4 = vadd.f32 %v5430_v22, %v6805_v7  ;;  %v4169_v19 = vmul.f32 %v5465_v28, %v6854_v43  ;;  %v6945_v50 = vpop.permute.xlu1 %4087 }
 0x20f   : > { %v4825_v42 = vpack.c.bf16 %v5466_v32, %v5466_v32  ;;  %v4167_v12 = vmul.f32 %v5466_v32, %v6837_v5  ;;  %v4212_v54 = vadd.f32 %v4211_v31, %v4210_v38  ;;  %v4325_v39 = vadd.f32 %v4324_v8, %v4323_v36 }
 0x210   : > { %v6915_v51 = vpop.f32.mrb[20].mxu1  ;;  %3881 = vst.msk [vmem:[%s6835_s13 + $0x38] sm:$0xf] %vm3866_vm8, %v4827_v26  ;;  %v4828_v10 = vpack.c.bf16 %v5467_v4, %v5467_v4  ;;  %v5468_v21 = vadd.f32 %v3594_v55, %v6809_v61  ;;  %v4328_v62 = vsel %vm4191_vm9, %v4282_v58, 0.0  ;;  %v4170_v43 = vmul.f32 %v5467_v4, %v6860_v14 }
 0x211   : > { %v6922_v29 = vpop.f32.mrb[21].mxu1  ;;  %3879 = vst.msk [vmem:[%s6835_s13 + $0x30] sm:$0xf] %vm3866_vm8, %v4825_v42  ;;  %v4215_v7 = vsel %vm4191_vm9, %v4167_v12, 0.0  ;;  %v4283_v5 = vmul.f32 %v5466_v32, %v4167_v12  ;;  %v4327_v52 = vadd.f32 %v4326_v3, %v4325_v39  ;;  %v4214_v57 = vadd.f32 %v4213_v37, %v4212_v54 }
 0x212   : > { %v6928_v47 = vpop.f32.mrb[22].mxu1  ;;  %3882 = vst.msk [vmem:[%s6835_s13 + $0x3c] sm:$0xf] %vm3866_vm8, %v4828_v10  ;;  %v4826_v40 = vpack.c.bf16 %v5468_v21, %v5468_v21  ;;  %v4168_v16 = vmul.f32 %v5468_v21, %v6841_v34  ;;  %v4285_v27 = vmul.f32 %v5465_v28, %v4169_v19  ;;  %v4286_v45 = vmul.f32 %v5467_v4, %v4170_v43  ;;  %v6977_v3 = vpop.permute.xlu1 %4097 }
 0x213   : > { %v6936_v63 = vpop.f32.mrb[23].mxu1  ;;  %v4330_v30 = vsel %vm4191_vm9, %v4283_v5, 0.0  ;;  %v5433_v18 = vpop.f32.mrb[16].mxu0  ;;  %v4216_v49 = vadd.f32 %v4215_v7, %v4214_v57  ;;  %v4329_v33 = vadd.f32 %v4328_v62, %v4327_v52  ;;  %v4221_v38 = vsel %vm4191_vm9, %v4170_v43, 0.0 }
 0x214   : > { %v3607_v15 = vpop.f32.mrb[17].mxu0  ;;  %v5469_v61 = vadd.f32 %v5433_v18, %v6813_v9  ;;  %3880 = vst.msk [vmem:[%s6835_s13 + $0x34] sm:$0xf] %vm3866_vm8, %v4826_v40  ;;  %v4217_v14 = vsel %vm4191_vm9, %v4168_v16, 0.0  ;;  %v4284_v23 = vmul.f32 %v5468_v21, %v4168_v16  ;;  %v4219_v9 = vsel %vm4191_vm9, %v4169_v19, 0.0  ;;  %v6983_v7 = vpop.permute.xlu0 %4102 }
 0x215   : > { %v5470_v44 = vadd.f32 %v3607_v15, %v6817_v35  ;;  %v5434_v11 = vpop.f32.mrb[18].mxu0  ;;  %v4331_v46 = vadd.f32 %v4330_v30, %v4329_v33  ;;  %v4218_v25 = vadd.f32 %v4217_v14, %v4216_v49  ;;  %v4334_v32 = vsel %vm4191_vm9, %v4285_v27, 0.0 }
 0x216   : > { %v5471_v6 = vadd.f32 %v5434_v11, %v6819_v48  ;;  %v3610_v0 = vpop.f32.mrb[19].mxu0  ;;  %v4831_v35 = vpack.c.bf16 %v5469_v61, %v5469_v61  ;;  %v4332_v31 = vsel %vm4191_vm9, %v4284_v23, 0.0  ;;  %v4173_v26 = vmul.f32 %v5469_v61, %v6895_v13  ;;  %v4108_v14 = vpop.permute.xlu1 %4107 }
 0x217   : > { %v4829_v53 = vpack.c.bf16 %v5470_v44, %v5470_v44  ;;  %v4171_v48 = vmul.f32 %v5470_v44, %v6873_v2  ;;  %v4220_v22 = vadd.f32 %v4219_v9, %v4218_v25  ;;  %v4333_v36 = vadd.f32 %v4332_v31, %v4331_v46 }
 0x218   : > { %v6953_v34 = vpop.f32.mrb[24].mxu1  ;;  %v4832_v59 = vpack.c.bf16 %v5471_v6, %v5471_v6  ;;  %3885 = vst.msk [vmem:[%s6835_s13 + $0x48] sm:$0xf] %vm3866_vm8, %v4831_v35  ;;  %v5472_v12 = vadd.f32 %v3610_v0, %v6821_v24  ;;  %v4336_v37 = vsel %vm4191_vm9, %v4286_v45, 0.0  ;;  %v4174_v39 = vmul.f32 %v5471_v6, %v6902_v20  ;;  %v4113_v45 = vpop.permute.xlu0 %4112 }
 0x219   : > { %v6958_v28 = vpop.f32.mrb[25].mxu1  ;;  %3883 = vst.msk [vmem:[%s6835_s13 + $0x40] sm:$0xf] %vm3866_vm8, %v4829_v53  ;;  %v4223_v55 = vsel %vm4191_vm9, %v4171_v48, 0.0  ;;  %v4287_v2 = vmul.f32 %v5470_v44, %v4171_v48  ;;  %v4335_v8 = vadd.f32 %v4334_v32, %v4333_v36  ;;  %v4222_v42 = vadd.f32 %v4221_v38, %v4220_v22 }
 0x21a   : > { %v6962_v60 = vpop.f32.mrb[26].mxu1  ;;  %3886 = vst.msk [vmem:[%s6835_s13 + $0x4c] sm:$0xf] %vm3866_vm8, %v4832_v59  ;;  %v4830_v52 = vpack.c.bf16 %v5472_v12, %v5472_v12  ;;  %v4172_v24 = vmul.f32 %v5472_v12, %v6882_v56  ;;  %v4289_v21 = vmul.f32 %v5469_v61, %v4173_v26  ;;  %v4227_v16 = vsel %vm4191_vm9, %v4173_v26, 0.0 }
 0x21b   : > { %v6969_v58 = vpop.f32.mrb[27].mxu1  ;;  %v5437_v4 = vpop.f32.mrb[20].mxu0  ;;  %v4338_v54 = vsel %vm4191_vm9, %v4287_v2, 0.0  ;;  %v4224_v5 = vadd.f32 %v4223_v55, %v4222_v42  ;;  %v4337_v10 = vadd.f32 %v4336_v37, %v4335_v8  ;;  %v4290_v15 = vmul.f32 %v5471_v6, %v4174_v39 }
 0x21c   : > { %v5473_v13 = vadd.f32 %v5437_v4, %v6915_v51  ;;  %v3623_v19 = vpop.f32.mrb[21].mxu0  ;;  %3884 = vst.msk [vmem:[%s6835_s13 + $0x44] sm:$0xf] %vm3866_vm8, %v4830_v52  ;;  %v4225_v49 = vsel %vm4191_vm9, %v4172_v24, 0.0  ;;  %v4288_v33 = vmul.f32 %v5472_v12, %v4172_v24  ;;  %v4229_v23 = vsel %vm4191_vm9, %v4174_v39, 0.0 }
 0x21d   : > { %v5438_v57 = vpop.f32.mrb[22].mxu0  ;;  %v5474_v30 = vadd.f32 %v3623_v19, %v6922_v29  ;;  %v4339_v51 = vadd.f32 %v4338_v54, %v4337_v10  ;;  %v4226_v29 = vadd.f32 %v4225_v49, %v4224_v5  ;;  %v4342_v25 = vsel %vm4191_vm9, %v4289_v21, 0.0  ;;  %v4118_v19 = vpop.permute.xlu1 %4117 }
 0x21e   : > { %v4835_v62 = vpack.c.bf16 %v5473_v13, %v5473_v13  ;;  %v5475_v43 = vadd.f32 %v5438_v57, %v6928_v47  ;;  %v3626_v20 = vpop.f32.mrb[23].mxu0  ;;  %v4340_v61 = vsel %vm4191_vm9, %v4288_v33, 0.0  ;;  %v4177_v44 = vmul.f32 %v5473_v13, %v6945_v50 }
 0x21f   : > { %v5476_v40 = vadd.f32 %v3626_v20, %v6936_v63  ;;  %v4833_v47 = vpack.c.bf16 %v5474_v30, %v5474_v30  ;;  %v4175_v11 = vmul.f32 %v5474_v30, %v6917_v17  ;;  %v4228_v6 = vadd.f32 %v4227_v16, %v4226_v29 }
 0x220   : > { %v6988_v18 = vpop.f32.mrb[28].mxu1  ;;  %3889 = vst.msk [vmem:[%s6835_s13 + $0x58] sm:$0xf] %vm3866_vm8, %v4835_v62  ;;  %v4836_v63 = vpack.c.bf16 %v5475_v43, %v5475_v43  ;;  %v4341_v0 = vadd.f32 %v4340_v61, %v4339_v51  ;;  %v4178_v17 = vmul.f32 %v5475_v43, %v6955_v41  ;;  %v4344_v36 = vsel %vm4191_vm9, %v4290_v15, 0.0 }
 0x221   : > { %v6994_v56 = vpop.f32.mrb[29].mxu1  ;;  %3887 = vst.msk [vmem:[%s6835_s13 + $0x50] sm:$0xf] %vm3866_vm8, %v4833_v47  ;;  %v4834_v9 = vpack.c.bf16 %v5476_v40, %v5476_v40  ;;  %v4231_v35 = vsel %vm4191_vm9, %v4175_v11, 0.0  ;;  %v4291_v53 = vmul.f32 %v5474_v30, %v4175_v11  ;;  %v4230_v48 = vadd.f32 %v4229_v23, %v4228_v6  ;;  %v4123_v30 = vpop.permute.xlu0 %4122 }
 0x222   : > { %v6999_v27 = vpop.f32.mrb[30].mxu1  ;;  %3890 = vst.msk [vmem:[%s6835_s13 + $0x5c] sm:$0xf] %vm3866_vm8, %v4836_v63  ;;  %v4343_v31 = vadd.f32 %v4342_v25, %v4341_v0  ;;  %v4176_v59 = vmul.f32 %v5476_v40, %v6930_v1  ;;  %v4293_v38 = vmul.f32 %v5473_v13, %v4177_v44  ;;  %v4235_v57 = vsel %vm4191_vm9, %v4177_v44, 0.0 }
 0x223   : > { %v7004_v46 = vpop.f32.mrb[31].mxu1  ;;  %v5441_v50 = vpop.f32.mrb[24].mxu0  ;;  %3888 = vst.msk [vmem:[%s6835_s13 + $0x54] sm:$0xf] %vm3866_vm8, %v4834_v9  ;;  %v4346_v26 = vsel %vm4191_vm9, %v4291_v53, 0.0  ;;  %v4232_v41 = vadd.f32 %v4231_v35, %v4230_v48 }
 0x224   : > { %v5477_v32 = vadd.f32 %v5441_v50, %v6953_v34  ;;  %v3639_v22 = vpop.f32.mrb[25].mxu0  ;;  %v4345_v8 = vadd.f32 %v4344_v36, %v4343_v31  ;;  %v4233_v42 = vsel %vm4191_vm9, %v4176_v59, 0.0  ;;  %v4292_v12 = vmul.f32 %v5476_v40, %v4176_v59  ;;  %v4128_v9 = vpop.permute.xlu1 %4127 }
 0x225   : > { %v5478_v55 = vadd.f32 %v3639_v22, %v6958_v28  ;;  %v5442_v2 = vpop.f32.mrb[26].mxu0  ;;  %v4294_v34 = vmul.f32 %v5475_v43, %v4178_v17  ;;  %v4234_v5 = vadd.f32 %v4233_v42, %v4232_v41  ;;  %v4350_v21 = vsel %vm4191_vm9, %v4293_v38, 0.0 }
 0x226   : > { %v3642_v4 = vpop.f32.mrb[27].mxu0  ;;  %v4839_v37 = vpack.c.bf16 %v5477_v32, %v5477_v32  ;;  %v4347_v28 = vadd.f32 %v4346_v26, %v4345_v8  ;;  %v4348_v10 = vsel %vm4191_vm9, %v4292_v12, 0.0  ;;  %v5479_v52 = vadd.f32 %v5442_v2, %v6962_v60 }
 0x227   : > { %v4837_v54 = vpack.c.bf16 %v5478_v55, %v5478_v55  ;;  %v4179_v39 = vmul.f32 %v5478_v55, %v6977_v3  ;;  %v4236_v43 = vadd.f32 %v4235_v57, %v4234_v5  ;;  %v4181_v51 = vmul.f32 %v5477_v32, %v4108_v14 }
 0x228   : > { %v7022_v1 = vpop.f32.mrb[32].mxu1  ;;  %3893 = vst.msk [vmem:[%s6835_s13 + $0x68] sm:$0xf] %vm3866_vm8, %v4839_v37  ;;  %v4349_v20 = vadd.f32 %v4348_v10, %v4347_v28  ;;  %v4840_v49 = vpack.c.bf16 %v5479_v52, %v5479_v52  ;;  %v4237_v60 = vsel %vm4191_vm9, %v4178_v17, 0.0  ;;  %v4352_v33 = vsel %vm4191_vm9, %v4294_v34, 0.0  ;;  %v4138_v37 = vpop.permute.xlu1 %4137 }
 0x229   : > { %v7025_v13 = vpop.f32.mrb[33].mxu1  ;;  %3891 = vst.msk [vmem:[%s6835_s13 + $0x60] sm:$0xf] %vm3866_vm8, %v4837_v54  ;;  %v4295_v3 = vmul.f32 %v5478_v55, %v4179_v39  ;;  %v4239_v40 = vsel %vm4191_vm9, %v4179_v39, 0.0  ;;  %v5480_v16 = vadd.f32 %v3642_v4, %v6969_v58  ;;  %v4238_v47 = vadd.f32 %v4237_v60, %v4236_v43 }
 0x22a   : > { %v7029_v24 = vpop.f32.mrb[34].mxu1  ;;  %v4351_v29 = vadd.f32 %v4350_v21, %v4349_v20  ;;  %3894 = vst.msk [vmem:[%s6835_s13 + $0x6c] sm:$0xf] %vm3866_vm8, %v4840_v49  ;;  %v4182_v44 = vmul.f32 %v5479_v52, %v4113_v45  ;;  %v4297_v58 = vmul.f32 %v5477_v32, %v4181_v51  ;;  %v4243_v22 = vsel %vm4191_vm9, %v4181_v51, 0.0 }
 0x22b   : > { %v7037_v62 = vpop.f32.mrb[35].mxu1  ;;  %v5445_v15 = vpop.f32.mrb[28].mxu0  ;;  %v4354_v61 = vsel %vm4191_vm9, %v4295_v3, 0.0  ;;  %v4838_v63 = vpack.c.bf16 %v5480_v16, %v5480_v16  ;;  %v4180_v14 = vmul.f32 %v5480_v16, %v6983_v7  ;;  %v4240_v25 = vadd.f32 %v4239_v40, %v4238_v47 }
 0x22c   : > { %v3655_v11 = vpop.f32.mrb[29].mxu0  ;;  %v5481_v23 = vadd.f32 %v5445_v15, %v6988_v18  ;;  %v4353_v35 = vadd.f32 %v4352_v33, %v4351_v29  ;;  %v4133_v18 = vpop.permute.xlu0 %4132  ;;  %v4298_v36 = vmul.f32 %v5479_v52, %v4182_v44  ;;  %v4358_v26 = vsel %vm4191_vm9, %v4297_v58, 0.0 }
 0x22d   : > { %v5482_v6 = vadd.f32 %v3655_v11, %v6994_v56  ;;  %v5446_v0 = vpop.f32.mrb[30].mxu0  ;;  %3892 = vst.msk [vmem:[%s6835_s13 + $0x64] sm:$0xf] %vm3866_vm8, %v4838_v63  ;;  %v4241_v50 = vsel %vm4191_vm9, %v4180_v14, 0.0  ;;  %v4296_v45 = vmul.f32 %v5480_v16, %v4180_v14  ;;  %v4245_v8 = vsel %vm4191_vm9, %v4182_v44, 0.0  ;;  %v4148_v63 = vpop.permute.xlu1 %4147 }
 0x22e   : > { %v5483_v53 = vadd.f32 %v5446_v0, %v6999_v27  ;;  %v3658_v17 = vpop.f32.mrb[31].mxu0  ;;  %v4843_v7 = vpack.c.bf16 %v5481_v23, %v5481_v23  ;;  %v4185_v31 = vmul.f32 %v5481_v23, %v4128_v9  ;;  %v4355_v48 = vadd.f32 %v4354_v61, %v4353_v35 }
 0x22f   : > { %v4242_v56 = vadd.f32 %v4241_v50, %v4240_v25  ;;  %v4841_v59 = vpack.c.bf16 %v5482_v6, %v5482_v6  ;;  %v4183_v32 = vmul.f32 %v5482_v6, %v4118_v19  ;;  %v4356_v27 = vsel %vm4191_vm9, %v4296_v45, 0.0 }
 0x230   : > { %3897 = vst.msk [vmem:[%s6835_s13 + $0x78] sm:$0xf] %vm3866_vm8, %v4843_v7  ;;  %v4844_v38 = vpack.c.bf16 %v5483_v53, %v5483_v53  ;;  %v4357_v2 = vadd.f32 %v4356_v27, %v4355_v48  ;;  %v4301_v42 = vmul.f32 %v5481_v23, %v4185_v31  ;;  %v5484_v4 = vadd.f32 %v3658_v17, %v7004_v46  ;;  %v4143_v43 = vpop.permute.xlu0 %4142 }
 0x231   : > { %v4244_v55 = vadd.f32 %v4243_v22, %v4242_v56  ;;  %3895 = vst.msk [vmem:[%s6835_s13 + $0x70] sm:$0xf] %vm3866_vm8, %v4841_v59  ;;  %v4299_v41 = vmul.f32 %v5482_v6, %v4183_v32  ;;  %v4247_v12 = vsel %vm4191_vm9, %v4183_v32, 0.0  ;;  %v4186_v19 = vmul.f32 %v5483_v53, %v4133_v18 }
 0x232   : > { %3898 = vst.msk [vmem:[%s6835_s13 + $0x7c] sm:$0xf] %vm3866_vm8, %v4844_v38  ;;  %v4359_v54 = vadd.f32 %v4358_v26, %v4357_v2  ;;  %v4360_v10 = vsel %vm4191_vm9, %v4298_v36, 0.0  ;;  %v4842_v57 = vpack.c.bf16 %v5484_v4, %v5484_v4  ;;  %v4184_v21 = vmul.f32 %v5484_v4, %v4123_v30 }
 0x233   : > { %v5449_v34 = vpop.f32.mrb[32].mxu0  ;;  %v4246_v39 = vadd.f32 %v4245_v8, %v4244_v55  ;;  %v4362_v52 = vsel %vm4191_vm9, %v4299_v41, 0.0  ;;  %v4251_v60 = vsel %vm4191_vm9, %v4185_v31, 0.0  ;;  %v4366_v16 = vsel %vm4191_vm9, %v4301_v42, 0.0 }
 0x234   : > { %v5485_v28 = vadd.f32 %v5449_v34, %v7022_v1  ;;  %v3671_v5 = vpop.f32.mrb[33].mxu0  ;;  %v4361_v46 = vadd.f32 %v4360_v10, %v4359_v54  ;;  %3896 = vst.msk [vmem:[%s6835_s13 + $0x74] sm:$0xf] %vm3866_vm8, %v4842_v57  ;;  %v4249_v1 = vsel %vm4191_vm9, %v4184_v21, 0.0  ;;  %v4300_v33 = vmul.f32 %v5484_v4, %v4184_v21  ;;  %v4153_v35 = vpop.permute.xlu0 %4152 }
 0x235   : > { %v5450_v3 = vpop.f32.mrb[34].mxu0  ;;  %v4248_v20 = vadd.f32 %v4247_v12, %v4246_v39  ;;  %v5486_v40 = vadd.f32 %v3671_v5, %v7025_v13  ;;  %v4302_v15 = vmul.f32 %v5483_v53, %v4186_v19  ;;  %v4253_v14 = vsel %vm4191_vm9, %v4186_v19, 0.0 }
 0x236   : > { %v4847_v51 = vpack.c.bf16 %v5485_v28, %v5485_v28  ;;  %v3674_v49 = vpop.f32.mrb[35].mxu0  ;;  %v4363_v30 = vadd.f32 %v4362_v52, %v4361_v46  ;;  %v4364_v47 = vsel %vm4191_vm9, %v4300_v33, 0.0  ;;  %v5487_v11 = vadd.f32 %v5450_v3, %v7029_v24 }
 0x237   : > { %v4250_v29 = vadd.f32 %v4249_v1, %v4248_v20  ;;  %v4845_v61 = vpack.c.bf16 %v5486_v40, %v5486_v40  ;;  %v4187_v44 = vmul.f32 %v5486_v40, %v4138_v37  ;;  %v5488_v6 = vadd.f32 %v3674_v49, %v7037_v62 }
 0x238   : > { %3901 = vst.msk [vmem:[%s6835_s13 + $0x88] sm:$0xf] %vm3866_vm8, %v4847_v51  ;;  %v4365_v13 = vadd.f32 %v4364_v47, %v4363_v30  ;;  %v4189_v0 = vmul.f32 %v5485_v28, %v4148_v63  ;;  %v4848_v25 = vpack.c.bf16 %v5487_v11, %v5487_v11  ;;  %v4368_v45 = vsel %vm4191_vm9, %v4302_v15, 0.0 }
 0x239   : > { %v4252_v23 = vadd.f32 %v4251_v60, %v4250_v29  ;;  %3899 = vst.msk [vmem:[%s6835_s13 + $0x80] sm:$0xf] %vm3866_vm8, %v4845_v61  ;;  %v4255_v9 = vsel %vm4191_vm9, %v4187_v44, 0.0  ;;  %v4303_v58 = vmul.f32 %v5486_v40, %v4187_v44  ;;  %v4846_v24 = vpack.c.bf16 %v5488_v6, %v5488_v6 }
 0x23a   : > { %v4367_v53 = vadd.f32 %v4366_v16, %v4365_v13  ;;  %v4188_v50 = vmul.f32 %v5488_v6, %v4143_v43  ;;  %3902 = vst.msk [vmem:[%s6835_s13 + $0x8c] sm:$0xf] %vm3866_vm8, %v4848_v25  ;;  %v4190_v62 = vmul.f32 %v5487_v11, %v4153_v35  ;;  %v4305_v59 = vmul.f32 %v5485_v28, %v4189_v0 }
 0x23b   : > { %v4254_v17 = vadd.f32 %v4253_v14, %v4252_v23  ;;  %v4370_v7 = vsel %vm4191_vm9, %v4303_v58, 0.0  ;;  %3900 = vst.msk [vmem:[%s6835_s13 + $0x84] sm:$0xf] %vm3866_vm8, %v4846_v24  ;;  %v4259_v27 = vsel %vm4191_vm9, %v4189_v0, 0.0 }
 0x23c   : > { %v4369_v18 = vadd.f32 %v4368_v45, %v4367_v53  ;;  %v4257_v48 = vsel %vm4191_vm9, %v4188_v50, 0.0  ;;  %v4304_v56 = vmul.f32 %v5488_v6, %v4188_v50  ;;  %v4306_v38 = vmul.f32 %v5487_v11, %v4190_v62 }
 0x23d   : > { %v4256_v31 = vadd.f32 %v4255_v9, %v4254_v17  ;;  %v4374_v2 = vsel %vm4191_vm9, %v4305_v59, 0.0  ;;  %v4261_v41 = vsel %vm4191_vm9, %v4190_v62, 0.0 }
 0x23e   : > { %v4371_v32 = vadd.f32 %v4370_v7, %v4369_v18  ;;  %v4372_v36 = vsel %vm4191_vm9, %v4304_v56, 0.0  ;;  %v4376_v12 = vsel %vm4191_vm9, %v4306_v38, 0.0 }
 0x23f   : > { %v4258_v22 = vadd.f32 %v4257_v48, %v4256_v31 }
 0x240   : > { %v4373_v55 = vadd.f32 %v4372_v36, %v4371_v32 }
 0x241   : > { %v4260_v26 = vadd.f32 %v4259_v27, %v4258_v22 }
 0x242   : > { %v4375_v42 = vadd.f32 %v4374_v2, %v4373_v55 }
 0x243   : > { %v4262_v8 = vadd.f32 %v4261_v41, %v4260_v26 }
 0x244   : > { %v4377_v34 = vadd.f32 %v4376_v12, %v4375_v42 }
 0x245   : > { %v4263_v4 = vrot.slane %v4262_v8, 4 }
 0x246   : > { %v4378_v54 = vrot.slane %v4377_v34, 4 }
 0x247   : > { %v4264_v37 = vadd.f32 %v4263_v4, %v4262_v8 }
 0x248   : > { %v4379_v19 = vadd.f32 %v4378_v54, %v4377_v34 }
 0x249   : > { %v4265_v39 = vrot.slane %v4264_v37, 2 }
 0x24a   : > { %v4380_v5 = vrot.slane %v4379_v19, 2 }
 0x24b   : > { %v4266_v28 = vadd.f32 %v4265_v39, %v4264_v37 }
 0x24c   : > { %v4381_v52 = vadd.f32 %v4380_v5, %v4379_v19 }
 0x24d   : > { %v4267_v10 = vrot.slane %v4266_v28, 1 }
 0x24e   : > { %v4382_v21 = vrot.slane %v4381_v52, 1 }
 0x24f   : > { %v4268_v57 = vadd.f32 %v4267_v10, %v4266_v28 }
 0x250   : > { %v4383_v3 = vadd.f32 %v4382_v21, %v4381_v52 }
 0x251   : > { %4270 = vst.msk [vmem:[%s272_s21] sm:$0x1] %vm4269_vm10, %v4268_v57 }
 0x252   : > { %4384 = vst.msk [vmem:[%s272_s21 + $0x1] sm:$0x1] %vm4269_vm10, %v4383_v3 }
 0x253 PF: > { %s15_s17 = sadd.s32 1, %s5883_s17   ;;  %s7113_s15 = smov %s5879_s16 }
 0x254   : > { %p12_p5 = scmp.ge.s32.totalorder %s15_s17, 4   ;;  %s7114_s16 = smov %s7116_s18 }
 0x256   :  { %14 = sbr.rel (!%p12_p5) target bundleno = 2 (0x2), region = 85 }

// kernel: up_forward.3
= control target key start
LH: loop header
LB: loop body
LE: loop exit
PB: predicated region body
PF: predicated region fallthrough
CT: control target
= control target key end

     0   :  { %s5911_s15 = smov 0   ;;  %s5913_s16 = smov 0   ;;  %s7108_s0 = inlined_call_operand.vmem [shape: bf16[2,1,332,4], index: 0, kind: input, shape index: {}]   ;;  %s7109_s1 = inlined_call_operand.vmem [shape: bf16[9,4,8], index: 1, kind: input, shape index: {}]   ;;  %s7110_s2 = inlined_call_operand.vmem [shape: bf16[1,288,1], index: 2, kind: input, shape index: {}]   ;;  %s7111_s3 = inlined_call_operand.vmem [shape: bf16[2,1,288,8], index: 3, kind: output, shape index: {0}]   ;;  %s7112_s4 = inlined_call_operand.vmem [shape: f32[2,1,2,8], index: 4, kind: output, shape index: {1}]  }
   0x1   :  { %s5915_s17 = smov 0  }
   0x2 LB: > { %s27_s18 = sadd.s32 1, %s5879_s16  ;;  %p4539_p0 = scmp.ge.s32.totalorder %s5883_s17, 1  ;;  %s5883_s17 = sphi %s5915_s17, %s15_s17   ;;  %s5879_s16 = sphi %s5913_s16, %s7114_s16   ;;  %s5875_s15 = sphi %s5911_s15, %s7113_s15  }
   0x3   : > { %p29_p1 = scmp.ge.s32.totalorder %s27_s18, 2  ;;  %p197_p2 = scmp.lt.s32.totalorder %s5883_s17, 3 }
   0x5   : > { %s7116_s18 = smov (%p29_p1, %s27_s18), 0  ;;  %p198_p3 = pnand %p4539_p0, %p197_p2 }
   0x6   : > { %vm611_vm0 = vcmask (!%p198_p3), 1041408   ;;  %v4657_v0 = vld [vmem:[%s7109_s1 + $0x8] sm:$0x3] (!%p198_p3)  ;;  %v4543_v1 = vld [vmem:[%s7109_s1 + $0x2] sm:$0x3] (!%p198_p3)  ;;  %p243_p4 = scmp.lt.s32.totalorder (!%p198_p3), %s5875_s15, 1 }
   0x7   : > { %201 = sbr.rel (%p198_p3) target bundleno = 595 (0x253), region = 32  ;;  %5745 = vmatprep.subr.msk.bf16.mxu0 (!%p198_p3), %vm611_vm0, %v4657_v0  ;;  %5741 = vmatprep.subr.msk.bf16.mxu1 (!%p198_p3), %vm611_vm0, %v4543_v1  ;;  %v5938_v2 = vsel (!%p198_p3), %vm611_vm0, %v4657_v0, 0  ;;  %v613_v3 = vsel (!%p198_p3), %vm611_vm0, %v4543_v1, 0  ;;  %v4677_v4 = vld [vmem:[%s7109_s1 + $0xa] sm:$0x3] (!%p198_p3)  ;;  %vm556_vm2 = vcmask (!%p198_p3), 31744  }
   0x8   : > { %5262 = vmatpush3.bf16.msra.mxu0 (!%p198_p3), %v5938_v2  ;;  %5110 = vmatpush3.bf16.msra.mxu1 (!%p198_p3), %v613_v3  ;;  %v310_v5 = vld [vmem:[%s7109_s1] sm:$0x3] (!%p198_p3)  ;;  %vm407_vm1 = vsmask.f32 (!%p198_p3), 7424  ;;  %v5959_v6 = vsel (!%p198_p3), %vm611_vm0, %v4677_v4, 0  ;;  %vm2214_vm4 = vcmask (!%p198_p3), 1045504  }
   0x9   : > { %5747 = vmatprep.subr.msk.bf16.mxu0 (!%p198_p3), %vm611_vm0, %v4677_v4  ;;  %5742 = vmatprep.subr.msk.bf16.mxu1 (!%p198_p3), %vm611_vm0, %v310_v5  ;;  %vm1767_vm3 = vsmask.f32 (!%p198_p3), 6400  ;;  %v829_v12 = vsel (!%p198_p3), %vm611_vm0, %v310_v5, 0  ;;  %v6007_v39 = vld [vmem:[%s7109_s1 + $0x4] sm:$0x3] (!%p198_p3)  ;;  %vm1014_vm5 = vcmask (!%p198_p3), 1046528  }
   0xa   : > { %v6041_v1 = vld [vmem:[%s7109_s1 + $0xc] sm:$0x3] (!%p198_p3)  ;;  %vm2967_vm6 = vsmask.f32 (!%p198_p3), 5376  ;;  %vm3414_vm7 = vcmask (!%p198_p3), 1044480   ;;  %vm3866_vm8 = vcmask (!%p198_p3), 60416  }
   0xb   : > { %vm4191_vm9 = vcmask (!%p198_p3), 64512   ;;  %vm4269_vm10 = vcmask (!%p198_p3), 57344  }
   0xe   : > { %s7118_s15 = smov (!%p243_p4, %s5875_s15), 1 }
   0xf   : > { %s5751_s27 = smul.u32 168, %s7118_s15  ;;  %s4542_s14 = sshll.u32 %s7118_s15, 1 }
  0x10   : > { %s272_s21 = scalar_lea.vmem %s7112_s4, %s4542_s14 }
  0x11   : > { %s5956_s30 = scalar_lea.vmem %s7108_s0, %s5751_s27 }
  0x12   : > { %v274_v7 = vld [vmem:[%s5956_s30] sm:$0xf]  ;;  %v5963_v8 = vld [vmem:[%s5956_s30 + $0x4] sm:$0xf]  ;;  %v5969_v10 = vld [vmem:[%s5956_s30 + $0x8] sm:$0xff]  }
  0x13   : > { %v5966_v9 = vcombine.low %v274_v7, %v5963_v8  ;;  %v1322_v11 = vld [vmem:[%s5956_s30 + $0x8] sm:$0xe]  ;;  %v5974_v13 = vld [vmem:[%s5956_s30 + $0xc] sm:$0xf]  ;;  %v416_v16 = vshll.u32 %v5969_v10, 16  ;;  %v420_v17 = vshrl.u32 %v5969_v10, 16 }
  0x14   : > { %v5981_v18 = vld [vmem:[%s5956_s30 + $0x10] sm:$0xff]   ;;  %v5987_v20 = vcombine.low %v1322_v11, %v5974_v13  ;;  %v5995_v28 = vld [vmem:[%s5956_s30 + $0x18] sm:$0xff]   ;;  %v6001_v34 = vld [vmem:[%s5956_s30 + $0x20] sm:$0xff]  }
  0x15   : > { %v409_v14 = vshrl.u32 %v5966_v9, 16  ;;  %v411_v15 = vshll.u32 %v5966_v9, 16  ;;  %v5984_v19 = vld [vmem:[%s5956_s30 + $0x10] sm:$0xff]   ;;  %v418_v22 = vrot.slane %v416_v16, 1  ;;  %v1777_v23 = vshrl.u32 %v5981_v18, 16  ;;  %v5998_v33 = vld [vmem:[%s5956_s30 + $0x18] sm:$0xff]  }
  0x16   : > { %v1780_v24 = vshll.u32 %v5981_v18, 16  ;;  %v1769_v25 = vshrl.u32 %v5987_v20, 16  ;;  %v1772_v26 = vshll.u32 %v5987_v20, 16  ;;  %v424_v27 = vshll.u32 %v5984_v19, 16  ;;  %v6016_v48 = vld [vmem:[%s5956_s30 + $0x20] sm:$0xff]   ;;  %v6019_v49 = vld [vmem:[%s5956_s30 + $0x28] sm:$0xff]  }
  0x17   : > { %v413_v21 = vrot.slane %v411_v15, 1  ;;  %v422_v30 = vor.u32 %v420_v17, %v418_v22  ;;  %v1779_v31 = vrot.slane %v1777_v23, 1  ;;  %v1786_v38 = vshrl.u32 %v5995_v28, 16  ;;  %v6025_v54 = vld [vmem:[%s5956_s30 + $0x28] sm:$0xff]   ;;  %v6031_v59 = vld [vmem:[%s5956_s30 + $0x30] sm:$0xff]   ;;  %v6055_v23 = vld [vmem:[%s5956_s30 + $0x38] sm:$0xff]  }
  0x18   : > { %v1782_v32 = vrot.slane %v1780_v24, 2  ;;  %v1771_v35 = vrot.slane %v1769_v25, 1  ;;  %v1774_v36 = vrot.slane %v1772_v26, 2  ;;  %v426_v37 = vrot.slane %v424_v27, 1  ;;  %v6036_v0 = vld [vmem:[%s5956_s30 + $0x30] sm:$0xff]  }
  0x19   : > { %v414_v29 = vor.u32 %v413_v21, %v409_v14  ;;  %v1789_v42 = vshll.u32 %v5995_v28, 16  ;;  %v428_v43 = vshrl.u32 %v5984_v19, 16  ;;  %v1788_v46 = vrot.slane %v1786_v38, 1 }
  0x1a   : > { %v1783_v41 = vor.u32 %v1782_v32, %v1779_v31  ;;  %v1775_v44 = vor.u32 %v1774_v36, %v1771_v35  ;;  %v427_v45 = vsel %vm407_vm1, %v422_v30, %v426_v37  ;;  %v432_v47 = vshll.u32 %v5998_v33, 16  ;;  %v6064_v35 = vld [vmem:[%s5956_s30 + $0x38] sm:$0xff]  }
  0x1b   : > { %v419_v40 = vsel %vm407_vm1, %v414_v29, %v418_v22  ;;  %v1791_v50 = vrot.slane %v1789_v42, 2  ;;  %v430_v51 = vor.u32 %v428_v43, %v426_v37  ;;  %v1795_v52 = vshrl.u32 %v6001_v34, 16 }
  0x1c   : > { %5111 = vmatprep.mubr.msk.bf16.mxu1 %vm556_vm2, %v419_v40  ;;  %v1798_v53 = vshll.u32 %v6001_v34, 16  ;;  %v1784_v55 = vsel %vm1767_vm3, %v1775_v44, %v1783_v41  ;;  %v434_v56 = vrot.slane %v432_v47, 1  ;;  %v436_v57 = vshrl.u32 %v5998_v33, 16  ;;  %v6075_v44 = vld [vmem:[%s5956_s30 + $0x40] sm:$0xff]  }
  0x1d   : > { %5112 = vmatmul.mubr.msk.bf16.vlgmr.msra.gmra.mrb[0].mxu1 %vm556_vm2, %v427_v45  ;;  %v440_v58 = vshll.u32 %v6016_v48, 16  ;;  %5263 = vmatprep.mubr.msk.bf16.mxu0 %vm556_vm2, %v1784_v55  ;;  %v1792_v60 = vor.u32 %v1791_v50, %v1788_v46  ;;  %v1797_v61 = vrot.slane %v1795_v52, 1  ;;  %v1804_v63 = vshrl.u32 %v6019_v49, 16 }
  0x1e   : > { %5148 = vmatpush3.bf16.msra.mxu1 %v829_v12  ;;  %v1800_v62 = vrot.slane %v1798_v53, 2  ;;  %v435_v3 = vsel %vm407_vm1, %v430_v51, %v434_v56  ;;  %v438_v4 = vor.u32 %v436_v57, %v434_v56  ;;  %v1807_v7 = vshll.u32 %v6019_v49, 16  ;;  %v6080_v51 = vld [vmem:[%s5956_s30 + $0x40] sm:$0xff]  }
  0x1f   : > { %5743 = vmatprep.subr.msk.bf16.mxu1 %vm611_vm0, %v6007_v39  ;;  %v442_v5 = vrot.slane %v440_v58, 1  ;;  %v1793_v11 = vsel %vm1767_vm3, %v1783_v41, %v1792_v60  ;;  %5115 = vmatprep.mubr.msk.bf16.mxu1 %vm556_vm2, %v435_v3  ;;  %v1806_v14 = vrot.slane %v1804_v63, 1  ;;  %v444_v15 = vshrl.u32 %v6016_v48, 16  ;;  %v6091_v63 = vld [vmem:[%s5956_s30 + $0x48] sm:$0xff]  }
  0x20   : > { %v1801_v12 = vor.u32 %v1800_v62, %v1797_v61  ;;  %5264 = vmatmul.mubr.msk.bf16.vlgmr.msra.gmra.mrb[0].mxu0 %vm556_vm2, %v1793_v11  ;;  %v1809_v17 = vrot.slane %v1807_v7, 2  ;;  %v448_v21 = vshll.u32 %v6025_v54, 16  ;;  %v1813_v22 = vshrl.u32 %v6031_v59, 16  ;;  %v6088_v62 = vld [vmem:[%s5956_s30 + $0x48] sm:$0xff]  }
  0x21   : > { %v443_v16 = vsel %vm407_vm1, %v438_v4, %v442_v5  ;;  %5300 = vmatpush3.bf16.msra.mxu0 %v5959_v6  ;;  %v446_v25 = vor.u32 %v444_v15, %v442_v5  ;;  %v1816_v26 = vshll.u32 %v6031_v59, 16  ;;  %v452_v27 = vshrl.u32 %v6025_v54, 16 }
  0x22   : > { %v1802_v24 = vsel %vm1767_vm3, %v1792_v60, %v1801_v12  ;;  %v1810_v29 = vor.u32 %v1809_v17, %v1806_v14  ;;  %v450_v30 = vrot.slane %v448_v21, 1  ;;  %v1815_v31 = vrot.slane %v1813_v22, 1  ;;  %5748 = vmatprep.subr.msk.bf16.mxu0 %vm611_vm0, %v6041_v1  ;;  %v6100_v14 = vld [vmem:[%s5956_s30 + $0x50] sm:$0xff]  }
  0x23   : > { %5267 = vmatprep.mubr.msk.bf16.mxu0 %vm556_vm2, %v1802_v24  ;;  %v456_v32 = vshll.u32 %v6036_v0, 16  ;;  %v1818_v6 = vrot.slane %v1816_v26, 2  ;;  %v1822_v36 = vshrl.u32 %v6055_v23, 16  ;;  %v1825_v37 = vshll.u32 %v6055_v23, 16 }
  0x24   : > { %v460_v38 = vshrl.u32 %v6036_v0, 16  ;;  %v1811_v40 = vsel %vm1767_vm3, %v1801_v12, %v1810_v29  ;;  %v451_v41 = vsel %vm407_vm1, %v446_v25, %v450_v30  ;;  %v454_v42 = vor.u32 %v452_v27, %v450_v30  ;;  %v6108_v25 = vld [vmem:[%s5956_s30 + $0x50] sm:$0xff]  }
  0x25   : > { %5116 = vmatmul.mubr.msk.bf16.gmra.mrb[4].mxu1 %vm556_vm2, %v443_v16  ;;  %v458_v43 = vrot.slane %v456_v32, 1  ;;  %v1819_v45 = vor.u32 %v1818_v6, %v1815_v31  ;;  %v1824_v46 = vrot.slane %v1822_v36, 1  ;;  %v1827_v47 = vrot.slane %v1825_v37, 2 }
  0x26   : > { %5119 = vmatprep.mubr.msk.bf16.mxu1 %vm556_vm2, %v451_v41  ;;  %v464_v50 = vshll.u32 %v6064_v35, 16  ;;  %v1831_v55 = vshrl.u32 %v6075_v44, 16  ;;  %v1834_v56 = vshll.u32 %v6075_v44, 16  ;;  %v468_v61 = vshrl.u32 %v6064_v35, 16  ;;  %v6118_v41 = vld [vmem:[%s5956_s30 + $0x58] sm:$0xff]  }
  0x27   : > { %v459_v52 = vsel %vm407_vm1, %v454_v42, %v458_v43  ;;  %v462_v53 = vor.u32 %v460_v38, %v458_v43  ;;  %v1820_v57 = vsel %vm1767_vm3, %v1810_v29, %v1819_v45  ;;  %v1828_v58 = vor.u32 %v1827_v47, %v1824_v46  ;;  %v6113_v29 = vld [vmem:[%s5956_s30 + $0x58] sm:$0xff]  }
  0x28   : > { %v466_v60 = vrot.slane %v464_v50, 1  ;;  %5268 = vmatmul.mubr.msk.bf16.gmra.mrb[4].mxu0 %vm556_vm2, %v1811_v40  ;;  %v1833_v3 = vrot.slane %v1831_v55, 1  ;;  %v1836_v4 = vrot.slane %v1834_v56, 2  ;;  %v472_v5 = vshll.u32 %v6080_v51, 16 }
  0x29   : > { %v476_v7 = vshrl.u32 %v6080_v51, 16  ;;  %5271 = vmatprep.mubr.msk.bf16.mxu0 %vm556_vm2, %v1820_v57  ;;  %v1840_v12 = vshrl.u32 %v6088_v62, 16  ;;  %v1843_v16 = vshll.u32 %v6088_v62, 16  ;;  %v480_v17 = vshll.u32 %v6091_v63, 16  ;;  %v2208_v57 = vld [vmem:[%s5956_s30 + $0x8] sm:$0xc] }
  0x2a   : > { %v467_v11 = vsel %vm407_vm1, %v462_v53, %v466_v60  ;;  %v1837_v15 = vor.u32 %v1836_v4, %v1833_v3  ;;  %v474_v21 = vrot.slane %v472_v5, 1  ;;  %v1849_v22 = vshrl.u32 %v6100_v14, 16 }
  0x2b   : > { %v1852_v24 = vshll.u32 %v6100_v14, 16  ;;  %v1829_v26 = vsel %vm1767_vm3, %v1819_v45, %v1828_v58  ;;  %v470_v27 = vor.u32 %v468_v61, %v466_v60  ;;  %v1842_v30 = vrot.slane %v1840_v12, 1 }
  0x2c   : > { %v1845_v31 = vrot.slane %v1843_v16, 2  ;;  %v478_v32 = vor.u32 %v476_v7, %v474_v21  ;;  %v482_v6 = vrot.slane %v480_v17, 1  ;;  %v1838_v36 = vsel %vm1767_vm3, %v1828_v58, %v1837_v15  ;;  %v6132_v58 = vld [vmem:[%s5956_s30 + $0x60] sm:$0xff]  }
  0x2d   : > { %5120 = vmatmul.mubr.msk.bf16.gmra.mrb[8].mxu1 %vm556_vm2, %v459_v52  ;;  %v1851_v37 = vrot.slane %v1849_v22, 1  ;;  %v1854_v38 = vrot.slane %v1852_v24, 2  ;;  %v488_v40 = vshll.u32 %v6108_v25, 16  ;;  %v475_v42 = vsel %vm407_vm1, %v470_v27, %v474_v21 }
  0x2e   : > { %5123 = vmatprep.mubr.msk.bf16.mxu1 %vm556_vm2, %v467_v11  ;;  %v484_v43 = vshrl.u32 %v6091_v63, 16  ;;  %v1858_v45 = vshrl.u32 %v6113_v29, 16  ;;  %v1861_v46 = vshll.u32 %v6113_v29, 16  ;;  %v1846_v47 = vor.u32 %v1845_v31, %v1842_v30  ;;  %v6137_v11 = vld [vmem:[%s5956_s30 + $0x68] sm:$0xff]  }
  0x2f   : > { %v483_v50 = vsel %vm407_vm1, %v478_v32, %v482_v6  ;;  %v492_v52 = vshrl.u32 %v6108_v25, 16  ;;  %v496_v53 = vshll.u32 %v6118_v41, 16  ;;  %v1855_v55 = vor.u32 %v1854_v38, %v1851_v37  ;;  %v6154_v32 = vld [vmem:[%s5956_s30 + $0x70] sm:$0xff]  }
  0x30   : > { %5272 = vmatmul.mubr.msk.bf16.gmra.mrb[8].mxu0 %vm556_vm2, %v1829_v26  ;;  %v490_v56 = vrot.slane %v488_v40, 1  ;;  %v486_v60 = vor.u32 %v484_v43, %v482_v6  ;;  %v1860_v61 = vrot.slane %v1858_v45, 1  ;;  %v1863_v3 = vrot.slane %v1861_v46, 2  ;;  %v6160_v40 = vld [vmem:[%s5956_s30 + $0x78] sm:$0xff]  }
  0x31   : > { %5275 = vmatprep.mubr.msk.bf16.mxu0 %vm556_vm2, %v1838_v36  ;;  %v1847_v4 = vsel %vm1767_vm3, %v1837_v15, %v1846_v47  ;;  %v498_v7 = vrot.slane %v496_v53, 1  ;;  %v1856_v12 = vsel %vm1767_vm3, %v1846_v47, %v1855_v55  ;;  %v4678_v16 = vcombine.low %v2208_v57, %v5974_v13 }
  0x32   : > { %v494_v5 = vor.u32 %v492_v52, %v490_v56  ;;  %v504_v17 = vshll.u32 %v6132_v58, 16  ;;  %v491_v21 = vsel %vm407_vm1, %v486_v60, %v490_v56  ;;  %v500_v22 = vshrl.u32 %v6118_v41, 16  ;;  %v6175_v56 = vld [vmem:[%s5956_s30 + $0x80] sm:$0xff]  }
  0x33   : > { %v6146_v15 = vor.u32 %v1863_v3, %v1860_v61  ;;  %v508_v26 = vshrl.u32 %v6132_v58, 16  ;;  %v512_v27 = vshll.u32 %v6137_v11, 16  ;;  %v2215_v13 = vrot.slane %v4678_v16, 2 }
  0x34   : > { %v499_v24 = vsel %vm407_vm1, %v494_v5, %v498_v7  ;;  %v2216_v30 = vrot.slane %v5981_v18, 2  ;;  %v506_v31 = vrot.slane %v504_v17, 1  ;;  %v502_v6 = vor.u32 %v500_v22, %v498_v7 }
  0x35   : > { %5124 = vmatmul.mubr.msk.bf16.gmra.mrb[12].mxu1 %vm556_vm2, %v475_v42  ;;  %v1865_v36 = vsel %vm1767_vm3, %v1855_v55, %v6146_v15  ;;  %v514_v38 = vrot.slane %v512_v27, 1  ;;  %v520_v18 = vshll.u32 %v6154_v32, 16  ;;  %v2218_v45 = vrot.slane %v5995_v28, 2  ;;  %v6205_v27 = vld [vmem:[%s5956_s30 + $0x90] ss:$0 sps:$4 sm:$0x11]  }
  0x36   : > { %5127 = vmatprep.mubr.msk.bf16.mxu1 %vm556_vm2, %v483_v50  ;;  %v510_v37 = vor.u32 %v508_v26, %v506_v31  ;;  %v2217_v42 = vsel %vm2214_vm4, %v2215_v13, %v2216_v30  ;;  %v507_v43 = vsel %vm407_vm1, %v502_v6, %v506_v31  ;;  %v516_v46 = vshrl.u32 %v6137_v11, 16 }
  0x37   : > { %v524_v50 = vshrl.u32 %v6154_v32, 16  ;;  %v528_v52 = vshll.u32 %v6160_v40, 16  ;;  %v2220_v53 = vrot.slane %v6001_v34, 2  ;;  %v522_v55 = vrot.slane %v520_v18, 1  ;;  %v6188_v34 = vld [vmem:[%s7109_s1 + $0xe] sm:$0x3] }
  0x38   : > { %5276 = vmatmul.mubr.msk.bf16.gmra.mrb[12].mxu0 %vm556_vm2, %v1847_v4  ;;  %v515_v47 = vsel %vm407_vm1, %v510_v37, %v514_v38  ;;  %v2746_v28 = vsel %vm611_vm0, %v6041_v1, 0  ;;  %v518_v57 = vor.u32 %v516_v46, %v514_v38  ;;  %v2219_v60 = vsel %vm2214_vm4, %v2216_v30, %v2218_v45  ;;  %v6182_v4 = vld [vmem:[%s5956_s30 + $0x88] sm:$0xff]  }
  0x39   : > { %5279 = vmatprep.mubr.msk.bf16.mxu0 %vm556_vm2, %v1856_v12  ;;  %v526_v61 = vor.u32 %v524_v50, %v522_v55  ;;  %v530_v3 = vrot.slane %v528_v52, 1  ;;  %v2221_v5 = vsel %vm2214_vm4, %v2218_v45, %v2220_v53  ;;  %v536_v7 = vshll.u32 %v6175_v56, 16 }
  0x3a   : > { %v523_v1 = vsel %vm407_vm1, %v518_v57, %v522_v55  ;;  %v2222_v12 = vrot.slane %v6019_v49, 2  ;;  %v532_v16 = vshrl.u32 %v6160_v40, 16  ;;  %v544_v22 = vshll.u32 %v6182_v4, 16  ;;  %v6232_v55 = vld [vmem:[%s5956_s30 + $0x60] sm:$0xff]   ;;  %v6251_v57 = vld [vmem:[%s5956_s30 + $0x68] sm:$0xff]  }
  0x3b   : > { %v531_v17 = vsel %vm407_vm1, %v526_v61, %v530_v3  ;;  %v538_v26 = vrot.slane %v536_v7, 1  ;;  %v552_v37 = vshll.u32 %v6205_v27, 16  ;;  %v2226_v38 = vrot.slane %v6055_v23, 2  ;;  %v6269_v7 = vld [vmem:[%s5956_s30 + $0x78] sm:$0xff]  }
  0x3c   : > { %v534_v49 = vor.u32 %v532_v16, %v530_v3  ;;  %v2223_v13 = vsel %vm2214_vm4, %v2220_v53, %v2222_v12  ;;  %v546_v31 = vrot.slane %v544_v22, 1  ;;  %v2228_v18 = vrot.slane %v6075_v44, 2  ;;  %v6285_v22 = vld [vmem:[%s5956_s30 + $0x88] sm:$0xff]  }
  0x3d   : > { %5128 = vmatmul.mubr.msk.bf16.gmra.mrb[16].mxu1 %vm556_vm2, %v491_v21  ;;  %v540_v21 = vshrl.u32 %v6175_v56, 16  ;;  %v554_v45 = vrot.slane %v552_v37, 1  ;;  %v2230_v23 = vrot.slane %v6088_v62, 2  ;;  %v2232_v44 = vrot.slane %v6100_v14, 2 }
  0x3e   : > { %5131 = vmatprep.mubr.msk.bf16.mxu1 %vm556_vm2, %v499_v24  ;;  %v2224_v24 = vrot.slane %v6031_v59, 2  ;;  %v539_v59 = vsel %vm407_vm1, %v534_v49, %v538_v26  ;;  %v2234_v62 = vrot.slane %v6113_v29, 2  ;;  %v1107_v14 = vsel %vm611_vm0, %v6007_v39, 0 }
  0x3f   : > { %v542_v30 = vor.u32 %v540_v21, %v538_v26  ;;  %v2231_v52 = vsel %vm2214_vm4, %v2228_v18, %v2230_v23  ;;  %v2233_v53 = vsel %vm2214_vm4, %v2230_v23, %v2232_v44  ;;  %v2238_v61 = vrot.slane %v6251_v57, 2  ;;  %v6289_v26 = vld [vmem:[%s5956_s30 + $0x90] sm:$0xff]  }
  0x40   : > { %5280 = vmatmul.mubr.msk.bf16.gmra.mrb[16].mxu0 %vm556_vm2, %v1865_v36  ;;  %v2225_v6 = vsel %vm2214_vm4, %v2222_v12, %v2224_v24  ;;  %v548_v36 = vshrl.u32 %v6182_v4, 16  ;;  %v2227_v46 = vsel %vm2214_vm4, %v2224_v24, %v2226_v38  ;;  %v2235_v29 = vsel %vm2214_vm4, %v2232_v44, %v2234_v62  ;;  %v6273_v12 = vld [vmem:[%s5956_s30 + $0x80] sm:$0xff]  }
  0x41   : > { %5301 = vmatprep.mubr.msk.bf16.mxu0 %vm556_vm2, %v2217_v42  ;;  %v547_v42 = vsel %vm407_vm1, %v542_v30, %v546_v31  ;;  %v2242_v16 = vrot.slane %v6269_v7, 2  ;;  %v2246_v49 = vrot.slane %v6285_v22, 2  ;;  %v2522_v30 = vld [vmem:[%s5956_s30 + $0x10] sm:$0xc] }
  0x45   : > { %5132 = vmatmul.mubr.msk.bf16.gmra.mrb[20].mxu1 %vm556_vm2, %v507_v43  ;;  %v550_v43 = vor.u32 %v548_v36, %v546_v31  ;;  %v6299_v31 = vld [vmem:[%s5956_s30 + $0x14] sm:$0xf] }
  0x46   : > { %5135 = vmatprep.mubr.msk.bf16.mxu1 %vm556_vm2, %v515_v47  ;;  %v2229_v47 = vsel %vm2214_vm4, %v2226_v38, %v2228_v18  ;;  %v6307_v37 = vcombine.low %v2522_v30, %v6299_v31  ;;  %v6310_v38 = vld [vmem:[%s5956_s30 + $0x18] sm:$0xff]  }
  0x47   : > { %v555_v50 = vsel %vm407_vm1, %v550_v43, %v554_v45  ;;  %v2655_v43 = vrot.slane %v6310_v38, 2 }
  0x48   : > { %5302 = vmatmul.mubr.msk.bf16.vlgmr.msra.gmra.mrb[0].mxu0 %vm556_vm2, %v2219_v60  ;;  %v6257_v60 = vld [vmem:[%s5956_s30 + $0x70] sm:$0xff]   ;;  %v2654_v18 = vrot.slane %v6307_v37, 2 }
  0x49   : > { %5338 = vmatpush3.bf16.msra.mxu0 %v2746_v28  ;;  %5305 = vmatprep.mubr.msk.bf16.mxu0 %vm556_vm2, %v2221_v5  ;;  %v2236_v28 = vrot.slane %v6232_v55, 2  ;;  %v2240_v3 = vrot.slane %v6257_v60, 2 }
  0x4a   : > { %5749 = vmatprep.subr.msk.bf16.mxu0 %vm611_vm0, %v6188_v34 }
  0x4b   : > { %v2237_v39 = vsel %vm2214_vm4, %v2234_v62, %v2236_v28  ;;  %v2239_v5 = vsel %vm2214_vm4, %v2236_v28, %v2238_v61  ;;  %v2243_v21 = vsel %vm2214_vm4, %v2240_v3, %v2242_v16  ;;  %v3193_v62 = vsel %vm611_vm0, %v6188_v34, 0  ;;  %v6344_v28 = vld [vmem:[%s5956_s30 + $0x38] sm:$0xff]  }
  0x4d   : > { %5136 = vmatmul.mubr.msk.bf16.gmra.mrb[24].mxu1 %vm556_vm2, %v523_v1  ;;  %v2241_v1 = vsel %vm2214_vm4, %v2238_v61, %v2240_v3  ;;  %v2663_v61 = vrot.slane %v6344_v28, 2  ;;  %v6363_v3 = vld [vmem:[%s5956_s30 + $0x40] sm:$0xff]  }
  0x4e   : > { %5139 = vmatprep.mubr.msk.bf16.mxu1 %vm556_vm2, %v531_v17  ;;  %v2244_v17 = vrot.slane %v6273_v12, 2 }
  0x50   : > { %5306 = vmatmul.mubr.msk.bf16.gmra.mrb[4].mxu0 %vm556_vm2, %v2223_v13  ;;  %v2245_v24 = vsel %vm2214_vm4, %v2242_v16, %v2244_v17  ;;  %v2248_v13 = vrot.slane %v6289_v26, 2  ;;  %v1008_v16 = vld [vmem:[%s5956_s30] sm:$0xe] }
  0x51   : > { %5309 = vmatprep.mubr.msk.bf16.mxu0 %vm556_vm2, %v2225_v6  ;;  %v2247_v6 = vsel %vm2214_vm4, %v2244_v17, %v2246_v49  ;;  %v2665_v17 = vrot.slane %v6363_v3, 2 }
  0x52   : > { %v2249_v36 = vsel %vm2214_vm4, %v2246_v49, %v2248_v13 }
  0x53   : > { %v2666_v49 = vsel %vm2214_vm4, %v2663_v61, %v2665_v17 }
  0x55   : > { %5140 = vmatmul.mubr.msk.bf16.gmra.mrb[28].mxu1 %vm556_vm2, %v539_v59  ;;  %v5823_v59 = vld [vmem:[%s5956_s30 + $0x98] ss:$0 sps:$4 sm:$0x33]  }
  0x56   : > { %5143 = vmatprep.mubr.msk.bf16.mxu1 %vm556_vm2, %v547_v42  ;;  %v2250_v42 = vrot.slane %v5823_v59, 2 }
  0x58   : > { %5310 = vmatmul.mubr.msk.bf16.gmra.mrb[8].mxu0 %vm556_vm2, %v2227_v46  ;;  %v2251_v45 = vsel %vm2214_vm4, %v2248_v13, %v2250_v42  ;;  %v6322_v46 = vld [vmem:[%s5956_s30 + $0x20] sm:$0xff]   ;;  %v6381_v13 = vld [vmem:[%s5956_s30 + $0x50] sm:$0xff]  }
  0x59   : > { %5313 = vmatprep.mubr.msk.bf16.mxu0 %vm556_vm2, %v2229_v47  ;;  %v2656_v47 = vsel %vm2214_vm4, %v2654_v18, %v2655_v43  ;;  %v2657_v23 = vrot.slane %v6322_v46, 2 }
  0x5d   : > { %5144 = vmatmul.mubr.msk.bf16.gmra.mrb[32].mxu1 %vm556_vm2, %v555_v50  ;;  %v6326_v50 = vld [vmem:[%s5956_s30 + $0x28] sm:$0xff]  }
  0x5e   : > { %5149 = vmatprep.mubr.msk.bf16.mxu1 %vm556_vm2, %v5966_v9  ;;  %v6243_v9 = vld [vmem:[%s7109_s1 + $0x6] sm:$0x3]  ;;  %v2659_v44 = vrot.slane %v6326_v50, 2 }
  0x60   : > { %5314 = vmatmul.mubr.msk.bf16.gmra.mrb[12].mxu0 %vm556_vm2, %v2231_v52  ;;  %v2658_v52 = vsel %vm2214_vm4, %v2655_v43, %v2657_v23 }
  0x61   : > { %5317 = vmatprep.mubr.msk.bf16.mxu0 %vm556_vm2, %v2233_v53  ;;  %v6338_v53 = vld [vmem:[%s5956_s30 + $0x30] sm:$0xff]  }
  0x65   : > { %5150 = vmatmul.mubr.msk.bf16.vlgmr.msra.gmra.mrb[0].mxu1 %vm556_vm2, %v5969_v10 }
  0x66   : > { %5153 = vmatprep.mubr.msk.bf16.mxu1 %vm556_vm2, %v5984_v19  ;;  %5186 = vmatpush3.bf16.msra.mxu1 %v1107_v14  ;;  %v2660_v14 = vsel %vm2214_vm4, %v2657_v23, %v2659_v44 }
  0x67   : > { %5744 = vmatprep.subr.msk.bf16.mxu1 %vm611_vm0, %v6243_v9 }
  0x68   : > { %5318 = vmatmul.mubr.msk.bf16.gmra.mrb[16].mxu0 %vm556_vm2, %v2235_v29  ;;  %v6349_v29 = vld [vmem:[%s7109_s1 + $0x10] sm:$0x3] }
  0x69   : > { %5321 = vmatprep.mubr.msk.bf16.mxu0 %vm556_vm2, %v2237_v39  ;;  %v2661_v39 = vrot.slane %v6338_v53, 2 }
  0x6b   : > { %v2662_v34 = vsel %vm2214_vm4, %v2659_v44, %v2661_v39  ;;  %v6404_v44 = vld [vmem:[%s5956_s30 + $0x68] sm:$0xff]  }
  0x6d   : > { %5154 = vmatmul.mubr.msk.bf16.gmra.mrb[4].mxu1 %vm556_vm2, %v5998_v33 }
  0x6e   : > { %5157 = vmatprep.mubr.msk.bf16.mxu1 %vm556_vm2, %v6016_v48 }
  0x70   : > { %5322 = vmatmul.mubr.msk.bf16.gmra.mrb[20].mxu0 %vm556_vm2, %v2239_v5  ;;  %v2664_v5 = vsel %vm2214_vm4, %v2661_v39, %v2663_v61  ;;  %v1022_v39 = vrot.slane %v6016_v48, 1  ;;  %v4850_v48 = vld [vmem:[%s7110_s2] sm:$0xff]  }
  0x71   : > { %5325 = vmatprep.mubr.msk.bf16.mxu0 %vm556_vm2, %v2241_v1  ;;  %v6367_v1 = vld [vmem:[%s5956_s30 + $0x48] sm:$0xff]  }
  0x75   : > { %5158 = vmatmul.mubr.msk.bf16.gmra.mrb[8].mxu1 %vm556_vm2, %v6025_v54 }
  0x76   : > { %5161 = vmatprep.mubr.msk.bf16.mxu1 %vm556_vm2, %v6036_v0 }
  0x78   : > { %5326 = vmatmul.mubr.msk.bf16.gmra.mrb[24].mxu0 %vm556_vm2, %v2243_v21  ;;  %v4600_v21 = vcombine.low %v1008_v16, %v5963_v8  ;;  %v6386_v8 = vld [vmem:[%s5956_s30 + $0x58] sm:$0xff]   ;;  %v5847_v16 = vld [vmem:[%s7109_s1 + $0x8] sm:$0x3] }
  0x79   : > { %5329 = vmatprep.mubr.msk.bf16.mxu0 %vm556_vm2, %v2245_v24  ;;  %v2667_v24 = vrot.slane %v6367_v1, 2  ;;  %v2671_v18 = vrot.slane %v6386_v8, 2 }
  0x7a   : > { %v1015_v30 = vrot.slane %v4600_v21, 1  ;;  %v4851_v21 = vunpack.c.l.bf16 %v4850_v48 }
  0x7b   : > { %v2668_v59 = vsel %vm2214_vm4, %v2665_v17, %v2667_v24  ;;  %v6428_v17 = vld [vmem:[%s5956_s30 + $0x78] sm:$0xff]  }
  0x7d   : > { %5162 = vmatmul.mubr.msk.bf16.gmra.mrb[12].mxu1 %vm556_vm2, %v6064_v35 }
  0x7e   : > { %5165 = vmatprep.mubr.msk.bf16.mxu1 %vm556_vm2, %v6080_v51 }
  0x80   : > { %5330 = vmatmul.mubr.msk.bf16.gmra.mrb[28].mxu0 %vm556_vm2, %v2247_v6  ;;  %v1016_v6 = vrot.slane %v5969_v10, 1  ;;  %v1018_v10 = vrot.slane %v5984_v19, 1 }
  0x81   : > { %5333 = vmatprep.mubr.msk.bf16.mxu0 %vm556_vm2, %v2249_v36  ;;  %v2669_v36 = vrot.slane %v6381_v13, 2 }
  0x82   : > { %v1017_v42 = vsel %vm1014_vm5, %v1015_v30, %v1016_v6 }
  0x83   : > { %v2670_v43 = vsel %vm2214_vm4, %v2667_v24, %v2669_v36  ;;  %v2672_v23 = vsel %vm2214_vm4, %v2669_v36, %v2671_v18  ;;  %v4852_v24 = vunpack.c.h.bf16 %v4850_v48  ;;  %v1030_v48 = vrot.slane %v6080_v51, 1  ;;  %v4924_v51 = vld [vmem:[%s7110_s2 + $0x20] sm:$0xff]  }
  0x85   : > { %5166 = vmatmul.mubr.msk.bf16.gmra.mrb[16].mxu1 %vm556_vm2, %v6091_v63  ;;  %v5779_v36 = vpack.i.bf16 %v4852_v24, %v4851_v21  ;;  %v6470_v21 = vld [vmem:[%s5956_s30 + $0x90] sm:$0xff]  }
  0x86   : > { %5169 = vmatprep.mubr.msk.bf16.mxu1 %vm556_vm2, %v6108_v25 }
  0x88   : > { %5334 = vmatmul.mubr.msk.bf16.gmra.mrb[32].mxu0 %vm556_vm2, %v2251_v45  ;;  %v6399_v45 = vld [vmem:[%s5956_s30 + $0x60] sm:$0xff]  }
  0x89   : > { %5339 = vmatprep.mubr.msk.bf16.mxu0 %vm556_vm2, %v2656_v47  ;;  %v1020_v47 = vrot.slane %v5998_v33, 1  ;;  %v2673_v19 = vrot.slane %v6399_v45, 2  ;;  %v2675_v33 = vrot.slane %v6404_v44, 2 }
  0x8b   : > { %v2674_v61 = vsel %vm2214_vm4, %v2671_v18, %v2673_v19 }
  0x8d   : > { %5170 = vmatmul.mubr.msk.bf16.gmra.mrb[20].mxu1 %vm556_vm2, %v6118_v41 }
  0x8e   : > { %5173 = vmatprep.mubr.msk.bf16.mxu1 %vm556_vm2, %v6132_v58 }
  0x90   : > { %5340 = vmatmul.mubr.msk.bf16.vlgmr.msra.gmra.mrb[0].mxu0 %vm556_vm2, %v2658_v52  ;;  %v1019_v52 = vsel %vm1014_vm5, %v1016_v6, %v1018_v10 }
  0x91   : > { %5376 = vmatpush3.bf16.msra.mxu0 %v3193_v62  ;;  %5343 = vmatprep.mubr.msk.bf16.mxu0 %vm556_vm2, %v2660_v14  ;;  %v1021_v62 = vsel %vm1014_vm5, %v1018_v10, %v1020_v47  ;;  %v1546_v14 = vsel %vm611_vm0, %v6243_v9, 0  ;;  %v2676_v9 = vsel %vm2214_vm4, %v2673_v19, %v2675_v33  ;;  %v1026_v10 = vrot.slane %v6036_v0, 1  ;;  %v6452_v19 = vld [vmem:[%s5956_s30 + $0x88] sm:$0xff]   ;;  %v4922_v0 = vld [vmem:[%s7110_s2 + $0x10] sm:$0xff]  }
  0x92   : > { %5750 = vmatprep.subr.msk.bf16.mxu0 %vm611_vm0, %v6349_v29 }
  0x95   : > { %5174 = vmatmul.mubr.msk.bf16.gmra.mrb[24].mxu1 %vm556_vm2, %v6137_v11 }
  0x96   : > { %5177 = vmatprep.mubr.msk.bf16.mxu1 %vm556_vm2, %v6154_v32 }
  0x98   : > { %5344 = vmatmul.mubr.msk.bf16.gmra.mrb[4].mxu0 %vm556_vm2, %v2662_v34  ;;  %v6419_v34 = vld [vmem:[%s5956_s30 + $0x70] sm:$0xff]  }
  0x99   : > { %5347 = vmatprep.mubr.msk.bf16.mxu0 %vm556_vm2, %v2664_v5  ;;  %v1024_v5 = vrot.slane %v6025_v54, 1  ;;  %v1023_v54 = vsel %vm1014_vm5, %v1020_v47, %v1022_v39  ;;  %v2677_v30 = vrot.slane %v6419_v34, 2  ;;  %v6447_v47 = vld [vmem:[%s5956_s30 + $0x80] sm:$0xff]  }
  0x9b   : > { %v1025_v6 = vsel %vm1014_vm5, %v1022_v39, %v1024_v5 }
  0x9d   : > { %5178 = vmatmul.mubr.msk.bf16.gmra.mrb[28].mxu1 %vm556_vm2, %v6160_v40 }
  0x9e   : > { %5181 = vmatprep.mubr.msk.bf16.mxu1 %vm556_vm2, %v6175_v56 }
  0xa0   : > { %5348 = vmatmul.mubr.msk.bf16.gmra.mrb[8].mxu0 %vm556_vm2, %v2666_v49  ;;  %v4921_v49 = vld [vmem:[%s7110_s2 + $0x8] sm:$0xff]  }
  0xa1   : > { %5351 = vmatprep.mubr.msk.bf16.mxu0 %vm556_vm2, %v2668_v59  ;;  %v5885_v59 = vmov 0   ;;  %v4855_v18 = vunpack.c.l.bf16 %v4921_v49 }
  0xa2   : > { %5778 = vset.pattern.permute.xlu0 %v5885_v59  ;;  %5784 = vset.pattern.permute.xlu1 %v5885_v59  ;;  %v2685_v59 = vrot.slane %v6470_v21, 2 }
  0xa3   : > { %5780 = vperm.xlu0 %5778, %v5779_v36  }
  0xa5   : > { %5182 = vmatmul.mubr.msk.bf16.gmra.mrb[32].mxu1 %vm556_vm2, %v6182_v4 }
  0xa6   : > { %5187 = vmatprep.mubr.msk.bf16.mxu1 %vm556_vm2, %v1017_v42  ;;  %v2679_v42 = vrot.slane %v6428_v17, 2 }
  0xa7   : > { %3987 = vperm.xlu0 %5778, %v4855_v18   ;;  %v2969_v18 = vshrl.u32 %v6307_v37, 16 }
  0xa8   : > { %5352 = vmatmul.mubr.msk.bf16.gmra.mrb[12].mxu0 %vm556_vm2, %v2670_v43  ;;  %v2678_v43 = vsel %vm2214_vm4, %v2675_v33, %v2677_v30  ;;  %v4923_v33 = vld [vmem:[%s7110_s2 + $0x18] sm:$0xff]  }
  0xa9   : > { %5355 = vmatprep.mubr.msk.bf16.mxu0 %vm556_vm2, %v2672_v23  ;;  %v1028_v23 = vrot.slane %v6064_v35, 1  ;;  %v2681_v35 = vrot.slane %v6447_v47, 2  ;;  %v4863_v36 = vunpack.c.l.bf16 %v4923_v33 }
  0xab   : > { %v1029_v39 = vsel %vm1014_vm5, %v1026_v10, %v1028_v23  ;;  %v2682_v24 = vsel %vm2214_vm4, %v2679_v42, %v2681_v35 }
  0xad   : > { %5188 = vmatmul.mubr.msk.bf16.vlgmr.msra.gmra.mrb[0].mxu1 %vm556_vm2, %v1019_v52  ;;  %v2680_v52 = vsel %vm2214_vm4, %v2677_v30, %v2679_v42  ;;  %v6476_v30 = vld [vmem:[%s5956_s30 + $0x98] sm:$0xff]  }
  0xae   : > { %5191 = vmatprep.mubr.msk.bf16.mxu1 %vm556_vm2, %v1021_v62  ;;  %5224 = vmatpush3.bf16.msra.mxu1 %v1546_v14  ;;  %v1027_v62 = vsel %vm1014_vm5, %v1024_v5, %v1026_v10  ;;  %v4856_v14 = vunpack.c.h.bf16 %v4921_v49  ;;  %v2683_v5 = vrot.slane %v6452_v19, 2  ;;  %v2972_v10 = vshll.u32 %v6307_v37, 16 }
  0xaf   : > { %5746 = vmatprep.subr.msk.bf16.mxu1 %vm611_vm0, %v5847_v16  ;;  %v4859_v16 = vunpack.c.l.bf16 %v4922_v0  ;;  %v1036_v37 = vrot.slane %v6118_v41, 1  ;;  %v4926_v41 = vld [vmem:[%s7110_s2 + $0x30] sm:$0xff]  }
  0xb0   : > { %5356 = vmatmul.mubr.msk.bf16.gmra.mrb[16].mxu0 %vm556_vm2, %v2674_v61  ;;  %v4860_v61 = vunpack.c.h.bf16 %v4922_v0  ;;  %3992 = vperm.xlu1 %5784, %v4856_v14   ;;  %v2684_v49 = vsel %vm2214_vm4, %v2681_v35, %v2683_v5  ;;  %v4867_v14 = vunpack.c.l.bf16 %v4924_v51  ;;  %v5843_v35 = vld [vmem:[%s5956_s30 + $0xa0] ss:$0 sps:$4 sm:$0x33]  }
  0xb1   : > { %5359 = vmatprep.mubr.msk.bf16.mxu0 %vm556_vm2, %v2676_v9  ;;  %v4864_v9 = vunpack.c.h.bf16 %v4923_v33  ;;  %v1034_v33 = vrot.slane %v6108_v25, 1 }
  0xb2   : > { %4002 = vperm.xlu0 %5778, %v4860_v61   ;;  %v2971_v61 = vrot.slane %v2969_v18, 2 }
  0xb3   : > { %v1037_v25 = vsel %vm1014_vm5, %v1034_v33, %v1036_v37 }
  0xb4   : > { %3997 = vperm.xlu1 %5784, %v4859_v16   ;;  %v2974_v16 = vrot.slane %v2972_v10, 3  ;;  %v2995_v10 = vshrl.u32 %v6326_v50, 16 }
  0xb5   : > { %5192 = vmatmul.mubr.msk.bf16.gmra.mrb[4].mxu1 %vm556_vm2, %v1023_v54  ;;  %v1032_v54 = vrot.slane %v6091_v63, 1  ;;  %v4925_v63 = vld [vmem:[%s7110_s2 + $0x28] sm:$0xff]  }
  0xb6   : > { %5195 = vmatprep.mubr.msk.bf16.mxu1 %vm556_vm2, %v1025_v6  ;;  %4012 = vperm.xlu0 %5778, %v4864_v9   ;;  %v1031_v6 = vsel %vm1014_vm5, %v1028_v23, %v1030_v48  ;;  %v2687_v23 = vrot.slane %v6476_v30, 2  ;;  %v4872_v0 = vunpack.c.h.bf16 %v4925_v63 }
  0xb7   : > { %v1033_v42 = vsel %vm1014_vm5, %v1030_v48, %v1032_v54 }
  0xb8   : > { %5360 = vmatmul.mubr.msk.bf16.gmra.mrb[20].mxu0 %vm556_vm2, %v2678_v43  ;;  %v4868_v43 = vunpack.c.h.bf16 %v4924_v51  ;;  %4007 = vperm.xlu1 %5784, %v4863_v36   ;;  %v2688_v9 = vsel %vm2214_vm4, %v2685_v59, %v2687_v23  ;;  %v4871_v36 = vunpack.c.l.bf16 %v4925_v63  ;;  %v2986_v51 = vshrl.u32 %v6322_v46, 16 }
  0xb9   : > { %5363 = vmatprep.mubr.msk.bf16.mxu0 %vm556_vm2, %v2680_v52  ;;  %v2977_v52 = vshrl.u32 %v6310_v38, 16  ;;  %v2998_v63 = vshll.u32 %v6326_v50, 16 }
  0xba   : > { %4022 = vperm.xlu0 %5778, %v4868_v43   ;;  %v4875_v43 = vunpack.c.l.bf16 %v4926_v41 }
  0xbb   : > { %v2979_v48 = vrot.slane %v2977_v52, 2 }
  0xbc   : > { %4017 = vperm.xlu1 %5784, %v4867_v14  }
  0xbd   : > { %5196 = vmatmul.mubr.msk.bf16.gmra.mrb[8].mxu1 %vm556_vm2, %v1027_v62  ;;  %v2980_v62 = vshll.u32 %v6310_v38, 16 }
  0xbe   : > { %5199 = vmatprep.mubr.msk.bf16.mxu1 %vm556_vm2, %v1029_v39  ;;  %v2686_v39 = vsel %vm2214_vm4, %v2683_v5, %v2685_v59  ;;  %4032 = vperm.xlu0 %5778, %v4872_v0   ;;  %v4927_v5 = vld [vmem:[%s7110_s2 + $0x38] sm:$0xff]   ;;  %v2975_v59 = vor.u32 %v2974_v16, %v2971_v61  ;;  %v2988_v0 = vrot.slane %v2986_v51, 2  ;;  %v2997_v61 = vrot.slane %v2995_v10, 2 }
  0xbf   : > { %v4880_v52 = vunpack.c.h.bf16 %v4927_v5  ;;  %v3000_v16 = vrot.slane %v2998_v63, 3  ;;  %v1042_v51 = vrot.slane %v6154_v32, 1  ;;  %v1044_v63 = vrot.slane %v6160_v40, 1  ;;  %v4930_v40 = vld [vmem:[%s7110_s2 + $0x50] sm:$0xff]  }
  0xc0   : > { %5364 = vmatmul.mubr.msk.bf16.gmra.mrb[24].mxu0 %vm556_vm2, %v2682_v24  ;;  %v2982_v24 = vrot.slane %v2980_v62, 3  ;;  %4027 = vperm.xlu1 %5784, %v4871_v36   ;;  %v1038_v62 = vrot.slane %v6132_v58, 1  ;;  %v4928_v58 = vld [vmem:[%s7110_s2 + $0x40] sm:$0xff]   ;;  %v3013_v36 = vshrl.u32 %v6344_v28, 16  ;;  %v3022_v32 = vshrl.u32 %v6363_v3, 16 }
  0xc1   : > { %5367 = vmatprep.mubr.msk.bf16.mxu0 %vm556_vm2, %v2684_v49  ;;  %v1035_v49 = vsel %vm1014_vm5, %v1032_v54, %v1034_v33  ;;  %v4876_v54 = vunpack.c.h.bf16 %v4926_v41  ;;  %v3016_v41 = vshll.u32 %v6344_v28, 16 }
  0xc2   : > { %v2983_v18 = vor.u32 %v2982_v24, %v2979_v48  ;;  %v3004_v48 = vshrl.u32 %v6338_v53, 16  ;;  %v4879_v24 = vunpack.c.l.bf16 %v4927_v5  ;;  %v4883_v5 = vunpack.c.l.bf16 %v4928_v58 }
  0xc3   : > { %4042 = vperm.xlu0 %5778, %v4876_v54  }
  0xc4   : > { %4037 = vperm.xlu1 %5784, %v4875_v43   ;;  %v3006_v54 = vrot.slane %v3004_v48, 2  ;;  %v3507_v43 = vsel %vm611_vm0, %v6349_v29, 0  ;;  %v4931_v29 = vld [vmem:[%s7110_s2 + $0x58] sm:$0xff]   ;;  %v3034_v48 = vshll.u32 %v6367_v1, 16 }
  0xc5   : > { %5200 = vmatmul.mubr.msk.bf16.gmra.mrb[12].mxu1 %vm556_vm2, %v1031_v6  ;;  %v2689_v6 = vrot.slane %v5843_v35, 2  ;;  %v1040_v35 = vrot.slane %v6137_v11, 1  ;;  %v4929_v11 = vld [vmem:[%s7110_s2 + $0x48] sm:$0xff]  }
  0xc6   : > { %5203 = vmatprep.mubr.msk.bf16.mxu1 %vm556_vm2, %v1033_v42  ;;  %v2989_v42 = vshll.u32 %v6322_v46, 16 }
  0xc7   : > { %v2690_v14 = vsel %vm2214_vm4, %v2687_v23, %v2689_v6  ;;  %4052 = vperm.xlu0 %5778, %v4880_v52   ;;  %v3007_v6 = vshll.u32 %v6338_v53, 16 }
  0xc8   : > { %5368 = vmatmul.mubr.msk.bf16.gmra.mrb[28].mxu0 %vm556_vm2, %v2686_v39  ;;  %v2991_v33 = vrot.slane %v2989_v42, 3  ;;  %v2984_v39 = vsel %vm2967_vm6, %v2975_v59, %v2983_v18  ;;  %4047 = vperm.xlu1 %5784, %v4879_v24   ;;  %v4888_v59 = vunpack.c.h.bf16 %v4929_v11  ;;  %v4891_v24 = vunpack.c.l.bf16 %v4930_v40 }
  0xc9   : > { %5371 = vmatprep.mubr.msk.bf16.mxu0 %vm556_vm2, %v2688_v9  ;;  %v1039_v9 = vsel %vm1014_vm5, %v1036_v37, %v1038_v62  ;;  %v3001_v37 = vor.u32 %v3000_v16, %v2997_v61  ;;  %v3009_v10 = vrot.slane %v3007_v6, 3  ;;  %v1045_v61 = vsel %vm1014_vm5, %v1042_v51, %v1044_v63 }
  0xca   : > { %v2992_v23 = vor.u32 %v2991_v33, %v2988_v0  ;;  %v1043_v0 = vsel %vm1014_vm5, %v1040_v35, %v1042_v51  ;;  %v4887_v33 = vunpack.c.l.bf16 %v4929_v11  ;;  %v1046_v11 = vrot.slane %v6175_v56, 1  ;;  %v4932_v56 = vld [vmem:[%s7110_s2 + $0x60] sm:$0xff]  }
  0xcc   : > { %v2993_v42 = vsel %vm2967_vm6, %v2983_v18, %v2992_v23  ;;  %v3002_v52 = vsel %vm2967_vm6, %v2992_v23, %v3001_v37  ;;  %4057 = vperm.xlu1 %5784, %v4883_v5   ;;  %v3025_v18 = vshll.u32 %v6363_v3, 16  ;;  %v3024_v23 = vrot.slane %v3022_v32, 2 }
  0xcd   : > { %5204 = vmatmul.mubr.msk.bf16.gmra.mrb[16].mxu1 %vm556_vm2, %v1035_v49  ;;  %v1041_v49 = vsel %vm1014_vm5, %v1038_v62, %v1040_v35  ;;  %v3015_v62 = vrot.slane %v3013_v36, 2  ;;  %v4892_v35 = vunpack.c.h.bf16 %v4930_v40  ;;  %v3036_v5 = vrot.slane %v3034_v48, 3 }
  0xce   : > { %5207 = vmatprep.mubr.msk.bf16.mxu1 %vm556_vm2, %v1037_v25  ;;  %v4884_v25 = vunpack.c.h.bf16 %v4928_v58  ;;  %v4896_v58 = vunpack.c.h.bf16 %v4931_v29 }
  0xd0   : > { %5372 = vmatmul.mubr.msk.bf16.gmra.mrb[32].mxu0 %vm556_vm2, %v2690_v14  ;;  %4062 = vperm.xlu0 %5778, %v4884_v25   ;;  %v3018_v14 = vrot.slane %v3016_v41, 3  ;;  %v1048_v25 = vrot.slane %v6182_v4, 1  ;;  %v4933_v4 = vld [vmem:[%s7110_s2 + $0x68] sm:$0xff]  }
  0xd1   : > { %5377 = vmatprep.mubr.msk.bf16.mxu0 %vm556_vm2, %v2984_v39  ;;  %v3010_v39 = vor.u32 %v3009_v10, %v3006_v54  ;;  %4067 = vperm.xlu1 %5784, %v4887_v33   ;;  %v3040_v54 = vshrl.u32 %v6381_v13, 16  ;;  %v3043_v10 = vshll.u32 %v6381_v13, 16  ;;  %v4934_v33 = vld [vmem:[%s7110_s2 + $0x70] sm:$0xff]  }
  0xd2   : > { %v3019_v16 = vor.u32 %v3018_v14, %v3015_v62  ;;  %v3052_v62 = vshll.u32 %v6386_v8, 16  ;;  %v4899_v14 = vunpack.c.l.bf16 %v4932_v56 }
  0xd3   : > { %v3011_v6 = vsel %vm2967_vm6, %v3001_v37, %v3010_v39  ;;  %v1049_v37 = vsel %vm1014_vm5, %v1046_v11, %v1048_v25  ;;  %v3042_v40 = vrot.slane %v3040_v54, 2 }
  0xd4   : > { %4072 = vperm.xlu0 %5778, %v4888_v59   ;;  %v3020_v36 = vsel %vm2967_vm6, %v3010_v39, %v3019_v16  ;;  %v1047_v59 = vsel %vm1014_vm5, %v1044_v63, %v1046_v11  ;;  %v1454_v39 = vrot.slane %v5987_v20, 1  ;;  %v4935_v11 = vld [vmem:[%s7110_s2 + $0x78] sm:$0xff]  }
  0xd5   : > { %5208 = vmatmul.mubr.msk.bf16.gmra.mrb[20].mxu1 %vm556_vm2, %v1039_v9  ;;  %v3031_v9 = vshrl.u32 %v6367_v1, 16  ;;  %4077 = vperm.xlu1 %5784, %v4891_v24   ;;  %v3054_v24 = vrot.slane %v3052_v62, 3 }
  0xd6   : > { %5211 = vmatprep.mubr.msk.bf16.mxu1 %vm556_vm2, %v1041_v49  ;;  %v3027_v49 = vrot.slane %v3025_v18, 3  ;;  %v1050_v18 = vrot.slane %v6205_v27, 1 }
  0xd7   : > { %v3033_v41 = vrot.slane %v3031_v9, 2 }
  0xd8   : > { %5378 = vmatmul.mubr.msk.bf16.vlgmr.msra.gmra.mrb[0].mxu0 %vm556_vm2, %v2993_v42  ;;  %4082 = vperm.xlu0 %5778, %v4892_v35   ;;  %v3028_v51 = vor.u32 %v3027_v49, %v3024_v23  ;;  %v4895_v42 = vunpack.c.l.bf16 %v4931_v29  ;;  %v3045_v29 = vrot.slane %v3043_v10, 3  ;;  %v1051_v27 = vsel %vm1014_vm5, %v1048_v25, %v1050_v18  ;;  %v5850_v10 = vld [vmem:[%s5956_s30 + $0x20] sm:$0xff]  }
  0xd9   : > { %5414 = vmatpush3.bf16.msra.mxu0 %v3507_v43  ;;  %5381 = vmatprep.mubr.msk.bf16.mxu0 %vm556_vm2, %v3002_v52  ;;  %v4900_v43 = vunpack.c.h.bf16 %v4932_v56  ;;  %v3037_v63 = vor.u32 %v3036_v5, %v3033_v41  ;;  %v3049_v52 = vshrl.u32 %v6386_v8, 16  ;;  %v3058_v49 = vshrl.u32 %v6399_v45, 16  ;;  %v4936_v56 = vld [vmem:[%s7110_s2 + $0x80] sm:$0xff]  }
  0xda   : > { %4087 = vperm.xlu1 %5784, %v4895_v42   ;;  %v3029_v32 = vsel %vm2967_vm6, %v3019_v16, %v3028_v51  ;;  %v4903_v16 = vunpack.c.l.bf16 %v4933_v4  ;;  %v3046_v20 = vor.u32 %v3045_v29, %v3042_v40  ;;  %v3067_v41 = vshrl.u32 %v6404_v44, 16 }
  0xdb   : > { %v3038_v9 = vsel %vm2967_vm6, %v3028_v51, %v3037_v63  ;;  %v3051_v48 = vrot.slane %v3049_v52, 2  ;;  %v3070_v25 = vshll.u32 %v6404_v44, 16  ;;  %v4907_v5 = vunpack.c.l.bf16 %v4934_v33  ;;  %v5849_v51 = vld [vmem:[%s5956_s30 + $0x18] sm:$0xff]  }
  0xdc   : > { %4092 = vperm.xlu0 %5778, %v4896_v58   ;;  %v4908_v58 = vunpack.c.h.bf16 %v4934_v33  ;;  %v1457_v42 = vrot.slane %v5849_v51, 1  ;;  %v3069_v62 = vrot.slane %v3067_v41, 2  ;;  %v3076_v29 = vshrl.u32 %v6419_v34, 16 }
  0xdd   : > { %5212 = vmatmul.mubr.msk.bf16.gmra.mrb[24].mxu1 %vm556_vm2, %v1043_v0  ;;  %v4904_v0 = vunpack.c.h.bf16 %v4933_v4  ;;  %v3047_v4 = vsel %vm2967_vm6, %v3037_v63, %v3046_v20  ;;  %v4937_v63 = vld [vmem:[%s7110_s2 + $0x88] sm:$0xff]   ;;  %v3094_v51 = vshrl.u32 %v6447_v47, 16 }
  0xde   : > { %5215 = vmatprep.mubr.msk.bf16.mxu1 %vm556_vm2, %v1045_v61  ;;  %v5848_v61 = vld [vmem:[%s5956_s30 + $0x10] sm:$0xff]   ;;  %4097 = vperm.xlu1 %5784, %v4899_v14   ;;  %v3072_v14 = vrot.slane %v3070_v25, 3 }
  0xdf   : > { %v1455_v35 = vrot.slane %v5848_v61, 1 }
  0xe0   : > { %5382 = vmatmul.mubr.msk.bf16.gmra.mrb[4].mxu0 %vm556_vm2, %v3011_v6  ;;  %4102 = vperm.xlu0 %5778, %v4900_v43   ;;  %v3061_v6 = vshll.u32 %v6399_v45, 16  ;;  %v1459_v43 = vrot.slane %v5850_v10, 1  ;;  %v3073_v61 = vor.u32 %v3072_v14, %v3069_v62  ;;  %v5854_v14 = vld [vmem:[%s5956_s30 + $0x40] sm:$0xff]  }
  0xe1   : > { %5385 = vmatprep.mubr.msk.bf16.mxu0 %vm556_vm2, %v3020_v36  ;;  %v1456_v23 = vsel %vm1014_vm5, %v1454_v39, %v1455_v35  ;;  %v3055_v36 = vor.u32 %v3054_v24, %v3051_v48  ;;  %v1458_v18 = vsel %vm1014_vm5, %v1455_v35, %v1457_v42  ;;  %v3079_v39 = vshll.u32 %v6419_v34, 16 }
  0xe2   : > { %4107 = vperm.xlu1 %5784, %v4903_v16   ;;  %v3063_v54 = vrot.slane %v3061_v6, 3  ;;  %v1460_v40 = vsel %vm1014_vm5, %v1457_v42, %v1459_v43  ;;  %v3088_v35 = vshll.u32 %v6428_v17, 16  ;;  %v4915_v48 = vunpack.c.l.bf16 %v4936_v56  ;;  %v5851_v16 = vld [vmem:[%s5956_s30 + $0x28] sm:$0xff]  }
  0xe3   : > { %v3056_v52 = vsel %vm2967_vm6, %v3046_v20, %v3055_v36  ;;  %v4920_v24 = vunpack.c.h.bf16 %v4937_v63  ;;  %v3081_v20 = vrot.slane %v3079_v39, 3  ;;  %v3097_v42 = vshll.u32 %v6447_v47, 16 }
  0xe4   : > { %4112 = vperm.xlu0 %5778, %v4904_v0   ;;  %v4911_v0 = vunpack.c.l.bf16 %v4935_v11  ;;  %v3090_v25 = vrot.slane %v3088_v35, 3  ;;  %v3112_v39 = vshrl.u32 %v6470_v21, 16  ;;  %v3121_v35 = vshrl.u32 %v6476_v30, 16 }
  0xe5   : > { %5216 = vmatmul.mubr.msk.bf16.gmra.mrb[28].mxu1 %vm556_vm2, %v1047_v59  ;;  %v4912_v59 = vunpack.c.h.bf16 %v4935_v11  ;;  %v3078_v11 = vrot.slane %v3076_v29, 2  ;;  %v3099_v62 = vrot.slane %v3097_v42, 3 }
  0xe6   : > { %5219 = vmatprep.mubr.msk.bf16.mxu1 %vm556_vm2, %v1049_v37  ;;  %v3060_v37 = vrot.slane %v3058_v49, 2  ;;  %4117 = vperm.xlu1 %5784, %v4907_v5   ;;  %v4919_v5 = vunpack.c.l.bf16 %v4937_v63 }
  0xe8   : > { %5386 = vmatmul.mubr.msk.bf16.gmra.mrb[8].mxu0 %vm556_vm2, %v3029_v32  ;;  %4122 = vperm.xlu0 %5778, %v4908_v58   ;;  %v4916_v32 = vunpack.c.h.bf16 %v4936_v56  ;;  %v3064_v33 = vor.u32 %v3063_v54, %v3060_v37  ;;  %v1461_v58 = vrot.slane %v5851_v16, 1  ;;  %v3106_v37 = vshll.u32 %v6452_v19, 16  ;;  %v5853_v54 = vld [vmem:[%s5956_s30 + $0x38] sm:$0xff]  }
  0xe9   : > { %5389 = vmatprep.mubr.msk.bf16.mxu0 %vm556_vm2, %v3038_v9  ;;  %v3085_v9 = vshrl.u32 %v6428_v17, 16  ;;  %v1465_v10 = vrot.slane %v5853_v54, 1 }
  0xea   : > { %4127 = vperm.xlu1 %5784, %v4911_v0   ;;  %v3074_v6 = vsel %vm2967_vm6, %v3064_v33, %v3073_v61  ;;  %v1467_v0 = vrot.slane %v5854_v14, 1  ;;  %v3108_v63 = vrot.slane %v3106_v37, 3 }
  0xeb   : > { %v3087_v41 = vrot.slane %v3085_v9, 2 }
  0xec   : > { %4132 = vperm.xlu0 %5778, %v4912_v59   ;;  %v1462_v59 = vsel %vm1014_vm5, %v1459_v43, %v1461_v58  ;;  %v1468_v29 = vsel %vm1014_vm5, %v1465_v10, %v1467_v0 }
  0xed   : > { %5220 = vmatmul.mubr.msk.bf16.gmra.mrb[32].mxu1 %vm556_vm2, %v1051_v27  ;;  %v3065_v27 = vsel %vm2967_vm6, %v3055_v36, %v3064_v33  ;;  %v3091_v56 = vor.u32 %v3090_v25, %v3087_v41  ;;  %v3123_v41 = vrot.slane %v3121_v35, 2  ;;  %v3420_v35 = vrot.slane %v6326_v50, 3 }
  0xee   : > { %5225 = vmatprep.mubr.msk.bf16.mxu1 %vm556_vm2, %v1456_v23  ;;  %v5852_v23 = vld [vmem:[%s5956_s30 + $0x30] sm:$0xff]   ;;  %4137 = vperm.xlu1 %5784, %v4915_v48   ;;  %v3124_v48 = vshll.u32 %v6476_v30, 16  ;;  %v3422_v50 = vrot.slane %v6338_v53, 3 }
  0xef   : > { %v1463_v49 = vrot.slane %v5852_v23, 1 }
  0xf0   : > { %5390 = vmatmul.mubr.msk.bf16.gmra.mrb[12].mxu0 %vm556_vm2, %v3047_v4  ;;  %4142 = vperm.xlu0 %5778, %v4916_v32   ;;  %v3103_v4 = vshrl.u32 %v6452_v19, 16  ;;  %v3126_v25 = vrot.slane %v3124_v48, 3  ;;  %v1481_v48 = vrot.slane %v6269_v7, 1 }
  0xf1   : > { %5393 = vmatprep.mubr.msk.bf16.mxu0 %vm556_vm2, %v3056_v52  ;;  %v1464_v36 = vsel %vm1014_vm5, %v1461_v58, %v1463_v49  ;;  %v3096_v52 = vrot.slane %v3094_v51, 2  ;;  %v1466_v33 = vsel %vm1014_vm5, %v1463_v49, %v1465_v10  ;;  %v6653_v49 = vld [vmem:[%s5956_s30 + $0xa0] ss:$0 sps:$4 sm:$0x77]  }
  0xf2   : > { %4147 = vperm.xlu1 %5784, %v4919_v5   ;;  %v3133_v51 = vshll.u32 %v6653_v49, 16  ;;  %v3127_v42 = vor.u32 %v3126_v25, %v3123_v41  ;;  %v1867_v41 = vshrl.u32 %v6232_v55, 16  ;;  %v1870_v25 = vshll.u32 %v6232_v55, 16 }
  0xf4   : > { %4152 = vperm.xlu0 %5778, %v4920_v24   ;;  %v5855_v24 = vld [vmem:[%s5956_s30 + $0x48] sm:$0xff]  }
  0xf5   : > { %5226 = vmatmul.mubr.msk.bf16.vlgmr.msra.gmra.mrb[0].mxu1 %vm556_vm2, %v1458_v18  ;;  %v3105_v18 = vrot.slane %v3103_v4, 2  ;;  %v1469_v16 = vrot.slane %v5855_v24, 1  ;;  %v5857_v4 = vld [vmem:[%s5956_s30 + $0x58] sm:$0xff]  }
  0xf6   : > { %5229 = vmatprep.mubr.msk.bf16.mxu1 %vm556_vm2, %v1460_v40  ;;  %5452 = vmatpush3.bf16.msra.mxu1 %v5938_v2  ;;  %v3082_v2 = vor.u32 %v3081_v20, %v3078_v11  ;;  %v3100_v40 = vor.u32 %v3099_v62, %v3096_v52  ;;  %v5856_v20 = vld [vmem:[%s5956_s30 + $0x50] sm:$0xff]   ;;  %v1473_v37 = vrot.slane %v5857_v4, 1  ;;  %v1475_v52 = vrot.slane %v6232_v55, 1 }
  0xf7   : > { %v3109_v9 = vor.u32 %v3108_v63, %v3105_v18  ;;  %v1471_v23 = vrot.slane %v5856_v20, 1  ;;  %v1470_v5 = vsel %vm1014_vm5, %v1467_v0, %v1469_v16  ;;  %v1485_v20 = vrot.slane %v6285_v22, 1 }
  0xf8   : > { %5394 = vmatmul.mubr.msk.bf16.gmra.mrb[16].mxu0 %vm556_vm2, %v3065_v27  ;;  %v3083_v43 = vsel %vm2967_vm6, %v3073_v61, %v3082_v2  ;;  %v3092_v32 = vsel %vm2967_vm6, %v3082_v2, %v3091_v56  ;;  %v3115_v61 = vshll.u32 %v6470_v21, 16  ;;  %v3101_v58 = vsel %vm2967_vm6, %v3091_v56, %v3100_v40  ;;  %v3408_v56 = vld [vmem:[%s5956_s30 + $0x10] sm:$0x8] }
  0xf9   : > { %5397 = vmatprep.mubr.msk.bf16.mxu0 %vm556_vm2, %v3074_v6  ;;  %v3114_v27 = vrot.slane %v3112_v39, 2  ;;  %v3110_v6 = vsel %vm2967_vm6, %v3100_v40, %v3109_v9  ;;  %v1472_v2 = vsel %vm1014_vm5, %v1469_v16, %v1471_v23  ;;  %v4756_v14 = vcombine.low %v3408_v56, %v6299_v31 }
  0xfa   : > { %v3117_v11 = vrot.slane %v3115_v61, 3  ;;  %v1474_v0 = vsel %vm1014_vm5, %v1471_v23, %v1473_v37  ;;  %v1476_v18 = vsel %vm1014_vm5, %v1473_v37, %v1475_v52  ;;  %v1477_v40 = vrot.slane %v6251_v57, 1 }
  0xfb   : > { %v3415_v63 = vrot.slane %v4756_v14, 3  ;;  %v1483_v16 = vrot.slane %v6273_v12, 1  ;;  %v3423_v23 = vsel %vm3414_vm7, %v3420_v35, %v3422_v50  ;;  %v1888_v37 = vshll.u32 %v6257_v60, 16 }
  0xfc   : > { %v1478_v61 = vsel %vm1014_vm5, %v1475_v52, %v1477_v40  ;;  %v3430_v52 = vrot.slane %v6381_v13, 3  ;;  %v1903_v13 = vshrl.u32 %v6273_v12, 16 }
  0xfd   : > { %5230 = vmatmul.mubr.msk.bf16.gmra.mrb[4].mxu1 %vm556_vm2, %v1462_v59  ;;  %v3118_v59 = vor.u32 %v3117_v11, %v3114_v27  ;;  %v1484_v27 = vsel %vm1014_vm5, %v1481_v48, %v1483_v16  ;;  %v3424_v11 = vrot.slane %v6344_v28, 3  ;;  %v1486_v28 = vsel %vm1014_vm5, %v1483_v16, %v1485_v20 }
  0xfe   : > { %5233 = vmatprep.mubr.msk.bf16.mxu1 %vm556_vm2, %v1464_v36  ;;  %v3130_v36 = vshrl.u32 %v6653_v49, 16  ;;  %v1890_v14 = vrot.slane %v1888_v37, 2 }
  0xff   : > { %v3119_v54 = vsel %vm2967_vm6, %v3109_v9, %v3118_v59  ;;  %v3128_v62 = vsel %vm2967_vm6, %v3118_v59, %v3127_v42  ;;  %v3425_v53 = vsel %vm3414_vm7, %v3422_v50, %v3424_v11  ;;  %v3426_v59 = vrot.slane %v6363_v3, 3 }
 0x100   : > { %5398 = vmatmul.mubr.msk.bf16.gmra.mrb[20].mxu0 %vm556_vm2, %v3083_v43  ;;  %v3132_v10 = vrot.slane %v3130_v36, 2  ;;  %v3135_v43 = vrot.slane %v3133_v51, 3  ;;  %v1872_v36 = vrot.slane %v1870_v25, 2  ;;  %v1876_v51 = vshrl.u32 %v6251_v57, 16 }
 0x101   : > { %5401 = vmatprep.mubr.msk.bf16.mxu0 %vm556_vm2, %v3092_v32  ;;  %v3427_v56 = vsel %vm3414_vm7, %v3424_v11, %v3426_v59  ;;  %v1885_v3 = vshrl.u32 %v6257_v60, 16 }
 0x102   : > { %v3136_v32 = vor.u32 %v3135_v43, %v3132_v10  ;;  %v1878_v10 = vrot.slane %v1876_v51, 1 }
 0x104   : > { %v3137_v31 = vsel %vm2967_vm6, %v3127_v42, %v3136_v32  ;;  %v1879_v42 = vshll.u32 %v6251_v57, 16  ;;  %v1894_v32 = vshrl.u32 %v6269_v7, 16 }
 0x105   : > { %5234 = vmatmul.mubr.msk.bf16.gmra.mrb[8].mxu1 %vm556_vm2, %v1466_v33  ;;  %v3416_v33 = vrot.slane %v6310_v38, 3  ;;  %v3418_v38 = vrot.slane %v6322_v46, 3 }
 0x106   : > { %5237 = vmatprep.mubr.msk.bf16.mxu1 %vm556_vm2, %v1468_v29  ;;  %v1479_v29 = vrot.slane %v6257_v60, 1  ;;  %v1881_v43 = vrot.slane %v1879_v42, 2 }
 0x107   : > { %v3417_v39 = vsel %vm3414_vm7, %v3415_v63, %v3416_v33  ;;  %v3419_v24 = vsel %vm3414_vm7, %v3416_v33, %v3418_v38 }
 0x108   : > { %5402 = vmatmul.mubr.msk.bf16.gmra.mrb[24].mxu0 %vm556_vm2, %v3101_v58  ;;  %v1480_v9 = vsel %vm1014_vm5, %v1477_v40, %v1479_v29  ;;  %v3421_v58 = vsel %vm3414_vm7, %v3418_v38, %v3420_v35  ;;  %v1482_v46 = vsel %vm1014_vm5, %v1479_v29, %v1481_v48  ;;  %v1882_v60 = vor.u32 %v1881_v43, %v1878_v10  ;;  %v5858_v35 = vld [vmem:[%s5956_s30 + $0x88] sm:$0xff]  }
 0x109   : > { %5405 = vmatprep.mubr.msk.bf16.mxu0 %vm556_vm2, %v3110_v6  ;;  %v1487_v6 = vrot.slane %v6289_v26, 1  ;;  %v3428_v26 = vrot.slane %v6367_v1, 3  ;;  %v1912_v48 = vshrl.u32 %v5858_v35, 16  ;;  %v3450_v43 = vrot.slane %v6653_v49, 3 }
 0x10b   : > { %v1488_v22 = vsel %vm1014_vm5, %v1485_v20, %v1487_v6  ;;  %v3431_v63 = vsel %vm3414_vm7, %v3428_v26, %v3430_v52  ;;  %v1914_v11 = vrot.slane %v1912_v48, 1 }
 0x10d   : > { %5238 = vmatmul.mubr.msk.bf16.gmra.mrb[12].mxu1 %vm556_vm2, %v1470_v5  ;;  %v5846_v5 = vld [vmem:[%s5956_s30 + $0x98] ss:$0 sps:$4 sm:$0x11]  }
 0x10e   : > { %5241 = vmatprep.mubr.msk.bf16.mxu1 %vm556_vm2, %v1472_v2  ;;  %v1869_v2 = vrot.slane %v1867_v41, 1  ;;  %v1489_v55 = vrot.slane %v5846_v5, 1  ;;  %v5860_v5 = vld [vmem:[%s5956_s30 + $0x98] ss:$0 sps:$4 sm:$0x33]  }
 0x110   : > { %5406 = vmatmul.mubr.msk.bf16.gmra.mrb[28].mxu0 %vm556_vm2, %v3119_v54  ;;  %v1873_v4 = vor.u32 %v1872_v36, %v1869_v2  ;;  %v3429_v54 = vsel %vm3414_vm7, %v3426_v59, %v3428_v26  ;;  %v1490_v1 = vsel %vm1014_vm5, %v1487_v6, %v1489_v55  ;;  %v1930_v59 = vshrl.u32 %v5860_v5, 16 }
 0x111   : > { %5409 = vmatprep.mubr.msk.bf16.mxu0 %vm556_vm2, %v3128_v62  ;;  %v1887_v62 = vrot.slane %v1885_v3, 1 }
 0x112   : > { %v1874_v57 = vsel %vm1767_vm3, %v6146_v15, %v1873_v4  ;;  %v1906_v15 = vshll.u32 %v6273_v12, 16  ;;  %v1932_v55 = vrot.slane %v1930_v59, 1 }
 0x113   : > { %v1891_v33 = vor.u32 %v1890_v14, %v1887_v62 }
 0x114   : > { %v1908_v38 = vrot.slane %v1906_v15, 2 }
 0x115   : > { %5242 = vmatmul.mubr.msk.bf16.gmra.mrb[16].mxu1 %vm556_vm2, %v1474_v0  ;;  %v3432_v0 = vrot.slane %v6386_v8, 3  ;;  %v1883_v8 = vsel %vm1767_vm3, %v1873_v4, %v1882_v60 }
 0x116   : > { %5245 = vmatprep.mubr.msk.bf16.mxu1 %vm556_vm2, %v1476_v18  ;;  %v1897_v18 = vshll.u32 %v6269_v7, 16  ;;  %v3434_v7 = vrot.slane %v6399_v45, 3 }
 0x117   : > { %v3433_v40 = vsel %vm3414_vm7, %v3430_v52, %v3432_v0 }
 0x118   : > { %5410 = vmatmul.mubr.msk.bf16.gmra.mrb[32].mxu0 %vm556_vm2, %v3137_v31  ;;  %v1896_v31 = vrot.slane %v1894_v32, 1  ;;  %v1899_v29 = vrot.slane %v1897_v18, 2  ;;  %v3435_v16 = vsel %vm3414_vm7, %v3432_v0, %v3434_v7 }
 0x119   : > { %5415 = vmatprep.mubr.msk.bf16.mxu0 %vm556_vm2, %v3417_v39  ;;  %v1892_v39 = vsel %vm1767_vm3, %v1882_v60, %v1891_v33 }
 0x11a   : > { %v1900_v12 = vor.u32 %v1899_v29, %v1896_v31 }
 0x11d   : > { %5246 = vmatmul.mubr.msk.bf16.gmra.mrb[20].mxu1 %vm556_vm2, %v1478_v61  ;;  %v1905_v61 = vrot.slane %v1903_v13, 1 }
 0x11e   : > { %5249 = vmatprep.mubr.msk.bf16.mxu1 %vm556_vm2, %v1480_v9  ;;  %v3436_v9 = vrot.slane %v6404_v44, 3  ;;  %v1901_v44 = vsel %vm1767_vm3, %v1891_v33, %v1900_v12 }
 0x120   : > { %5416 = vmatmul.mubr.msk.bf16.vlgmr.msra.gmra.mrb[0].mxu0 %vm556_vm2, %v3419_v24  ;;  %v1915_v24 = vshll.u32 %v5858_v35, 16 }
 0x121   : > { %5419 = vmatprep.mubr.msk.bf16.mxu0 %vm556_vm2, %v3421_v58  ;;  %v1909_v58 = vor.u32 %v1908_v38, %v1905_v61 }
 0x122   : > { %v1917_v20 = vrot.slane %v1915_v24, 2  ;;  %v5781_v18 = vpop.permute.xlu0 %5780 }
 0x123   : > { %v1910_v6 = vsel %vm1767_vm3, %v1900_v12, %v1909_v58 }
 0x125   : > { %5250 = vmatmul.mubr.msk.bf16.gmra.mrb[24].mxu1 %vm556_vm2, %v1482_v46  ;;  %v5859_v46 = vld [vmem:[%s5956_s30 + $0x90] sm:$0xff]   ;;  %s5752_s30 = smul.u32 144, %s7118_s15 }
 0x126   : > { %5253 = vmatprep.mubr.msk.bf16.mxu1 %vm556_vm2, %v1484_v27  ;;  %v1921_v50 = vshrl.u32 %v5859_v46, 16  ;;  %v1924_v45 = vshll.u32 %v5859_v46, 16  ;;  %v3437_v27 = vsel %vm3414_vm7, %v3434_v7, %v3436_v9 }
 0x127   : > { %s6835_s13 = scalar_lea.vmem %s7111_s3, %s5752_s30 }
 0x128   : > { %5420 = vmatmul.mubr.msk.bf16.gmra.mrb[4].mxu0 %vm556_vm2, %v3423_v23  ;;  %v3438_v23 = vrot.slane %v6419_v34, 3  ;;  %v1923_v41 = vrot.slane %v1921_v50, 1  ;;  %v1926_v25 = vrot.slane %v1924_v45, 2  ;;  %v5782_v50 = vunpack.i.l.bf16 %v5781_v18 }
 0x129   : > { %5423 = vmatprep.mubr.msk.bf16.mxu0 %vm556_vm2, %v3425_v53  ;;  %v3440_v53 = vrot.slane %v6428_v17, 3  ;;  %v3442_v17 = vrot.slane %v6447_v47, 3  ;;  %v3446_v47 = vrot.slane %v6470_v21, 3 }
 0x12a   : > { %v3439_v2 = vsel %vm3414_vm7, %v3436_v9, %v3438_v23  ;;  %v1927_v36 = vor.u32 %v1926_v25, %v1923_v41 }
 0x12b   : > { %v3441_v26 = vsel %vm3414_vm7, %v3438_v23, %v3440_v53  ;;  %v3443_v3 = vsel %vm3414_vm7, %v3440_v53, %v3442_v17 }
 0x12d   : > { %5254 = vmatmul.mubr.msk.bf16.gmra.mrb[28].mxu1 %vm556_vm2, %v1486_v28  ;;  %v1918_v28 = vor.u32 %v1917_v20, %v1914_v11  ;;  %v5783_v20 = vunpack.i.h.bf16 %v5781_v18 }
 0x12e   : > { %5257 = vmatprep.mubr.msk.bf16.mxu1 %vm556_vm2, %v1488_v22  ;;  %v1933_v22 = vshll.u32 %v5860_v5, 16 }
 0x12f   : > { %v1919_v34 = vsel %vm1767_vm3, %v1909_v58, %v1918_v28  ;;  %v1928_v42 = vsel %vm1767_vm3, %v1918_v28, %v1927_v36  ;;  %v3993_v13 = vpop.permute.xlu1 %3992 }
 0x130   : > { %5424 = vmatmul.mubr.msk.bf16.gmra.mrb[8].mxu0 %vm556_vm2, %v3427_v56  ;;  %v1935_v51 = vrot.slane %v1933_v22, 2  ;;  %v3444_v56 = vrot.slane %v6452_v19, 3 }
 0x131   : > { %5427 = vmatprep.mubr.msk.bf16.mxu0 %vm556_vm2, %v3429_v54 }
 0x132   : > { %v1936_v4 = vor.u32 %v1935_v51, %v1932_v55  ;;  %v3445_v37 = vsel %vm3414_vm7, %v3442_v17, %v3444_v56  ;;  %v3447_v19 = vsel %vm3414_vm7, %v3444_v56, %v3446_v47 }
 0x133   : > { %v6801_v31 = vpop.permute.xlu1 %3997 }
 0x134   : > { %v1937_v54 = vsel %vm1767_vm3, %v1927_v36, %v1936_v4 }
 0x135   : > { %5258 = vmatmul.mubr.msk.bf16.gmra.mrb[32].mxu1 %vm556_vm2, %v1490_v1  ;;  %v3448_v1 = vrot.slane %v6476_v30, 3 }
 0x136   : > { %5283 = vmatprep.mubr.msk.bf16.mxu1 %vm556_vm2, %v1874_v57 }
 0x137   : > { %v3449_v10 = vsel %vm3414_vm7, %v3446_v47, %v3448_v1  ;;  %v3451_v52 = vsel %vm3414_vm7, %v3448_v1, %v3450_v43  ;;  %v6811_v38 = vpop.permute.xlu1 %4007 }
 0x138   : > { %5428 = vmatmul.mubr.msk.bf16.gmra.mrb[12].mxu0 %vm556_vm2, %v3431_v63 }
 0x139   : > { %5431 = vmatprep.mubr.msk.bf16.mxu0 %vm556_vm2, %v3433_v40  ;;  %v3988_v40 = vpop.permute.xlu0 %3987 }
 0x13d   : > { %5284 = vmatmul.mubr.msk.bf16.vlgmr.msra.gmra.mrb[20].mxu1 %vm556_vm2, %v1883_v8 }
 0x13e   : > { %5287 = vmatprep.mubr.msk.bf16.mxu1 %vm556_vm2, %v1892_v39  ;;  %v6807_v39 = vpop.permute.xlu0 %4002 }
 0x140   : > { %5432 = vmatmul.mubr.msk.bf16.gmra.mrb[16].mxu0 %vm556_vm2, %v3435_v16  ;;  %v6823_v16 = vpop.permute.xlu1 %4017 }
 0x141   : > { %5435 = vmatprep.mubr.msk.bf16.mxu0 %vm556_vm2, %v3437_v27 }
 0x142   : > { %v6815_v12 = vpop.permute.xlu0 %4012 }
 0x144   : > { %v6827_v46 = vpop.permute.xlu1 %4027 }
 0x145   : > { %5288 = vmatmul.mubr.msk.bf16.gmra.mrb[24].mxu1 %vm556_vm2, %v1901_v44 }
 0x146   : > { %5291 = vmatprep.mubr.msk.bf16.mxu1 %vm556_vm2, %v1910_v6  ;;  %v6825_v58 = vpop.permute.xlu0 %4022 }
 0x148   : > { %5436 = vmatmul.mubr.msk.bf16.gmra.mrb[20].mxu0 %vm556_vm2, %v3439_v2  ;;  %v6837_v5 = vpop.permute.xlu1 %4037 }
 0x149   : > { %5439 = vmatprep.mubr.msk.bf16.mxu0 %vm556_vm2, %v3441_v26 }
 0x14a   : > { %v6830_v45 = vpop.permute.xlu0 %4032 }
 0x14c   : > { %v6854_v43 = vpop.permute.xlu1 %4047 }
 0x14d   : > { %5292 = vmatmul.mubr.msk.bf16.gmra.mrb[28].mxu1 %vm556_vm2, %v1919_v34 }
 0x14e   : > { %5295 = vmatprep.mubr.msk.bf16.mxu1 %vm556_vm2, %v1928_v42  ;;  %v6841_v34 = vpop.permute.xlu0 %4042 }
 0x150   : > { %5440 = vmatmul.mubr.msk.bf16.gmra.mrb[24].mxu0 %vm556_vm2, %v3443_v3 }
 0x151   : > { %5443 = vmatprep.mubr.msk.bf16.mxu0 %vm556_vm2, %v3445_v37 }
 0x155   : > { %5296 = vmatmul.mubr.msk.bf16.gmra.mrb[32].mxu1 %vm556_vm2, %v1937_v54 }
 0x158   : > { %5444 = vmatmul.mubr.msk.bf16.gmra.mrb[28].mxu0 %vm556_vm2, %v3447_v19 }
 0x159   : > { %5447 = vmatprep.mubr.msk.bf16.mxu0 %vm556_vm2, %v3449_v10 }
 0x160   : > { %5448 = vmatmul.mubr.msk.bf16.gmra.mrb[32].mxu0 %vm556_vm2, %v3451_v52 }
 0x1c8   : > { %v5227_v57 = vpop.f32.mrb[0].mxu1 }
 0x1c9   : > { %v1582_v21 = vpop.f32.mrb[1].mxu1 }
 0x1ca   : > { %v5228_v62 = vpop.f32.mrb[2].mxu1 }
 0x1cb   : > { %v1585_v30 = vpop.f32.mrb[3].mxu1 }
 0x1d0   : > { %v6783_v14 = vpop.f32.mrb[4].mxu1 }
 0x1d1   : > { %v6785_v0 = vpop.f32.mrb[5].mxu1 }
 0x1d2   : > { %v6787_v60 = vpop.f32.mrb[6].mxu1 }
 0x1d3   : > { %v6789_v32 = vpop.f32.mrb[7].mxu1 }
 0x1d8   : > { %v6791_v63 = vpop.f32.mrb[8].mxu1 }
 0x1d9   : > { %v6793_v49 = vpop.f32.mrb[9].mxu1 }
 0x1da   : > { %v6795_v33 = vpop.f32.mrb[10].mxu1 }
 0x1db   : > { %v6797_v15 = vpop.f32.mrb[11].mxu1 }
 0x1e0   : > { %v6799_v8 = vpop.f32.mrb[12].mxu1 }
 0x1e1   : > { %v6803_v29 = vpop.f32.mrb[13].mxu1 }
 0x1e2   : > { %v6805_v7 = vpop.f32.mrb[14].mxu1 }
 0x1e3   : > { %v6809_v61 = vpop.f32.mrb[15].mxu1 }
 0x1e8   : > { %v6813_v9 = vpop.f32.mrb[16].mxu1 }
 0x1e9   : > { %v6817_v35 = vpop.f32.mrb[17].mxu1 }
 0x1ea   : > { %v6819_v48 = vpop.f32.mrb[18].mxu1 }
 0x1eb   : > { %v6821_v24 = vpop.f32.mrb[19].mxu1 }
 0x1f3   : > { %v5417_v27 = vpop.f32.mrb[0].mxu0 }
 0x1f4   : > { %v5453_v44 = vadd.f32 %v5417_v27, %v5227_v57  ;;  %v3543_v11 = vpop.f32.mrb[1].mxu0 }
 0x1f5   : > { %v5454_v23 = vadd.f32 %v3543_v11, %v1582_v21  ;;  %v5418_v6 = vpop.f32.mrb[2].mxu0 }
 0x1f6   : > { %v4815_v41 = vpack.c.bf16 %v5453_v44, %v5453_v44  ;;  %v4157_v25 = vmul.f32 %v5453_v44, %v3988_v40  ;;  %v5455_v53 = vadd.f32 %v5418_v6, %v5228_v62  ;;  %v3546_v28 = vpop.f32.mrb[3].mxu0 }
 0x1f7   : > { %v4813_v59 = vpack.c.bf16 %v5454_v23, %v5454_v23  ;;  %v4155_v22 = vmul.f32 %v5782_v50, %v5454_v23  ;;  %v5456_v2 = vadd.f32 %v3546_v28, %v1585_v30 }
 0x1f8   : > { %3869 = vst.msk [vmem:[%s6835_s13 + $0x8] sm:$0xf] %vm3866_vm8, %v4815_v41  ;;  %v4273_v36 = vmul.f32 %v5453_v44, %v4157_v25  ;;  %v4816_v26 = vpack.c.bf16 %v5455_v53, %v5455_v53  ;;  %v4158_v51 = vmul.f32 %v5455_v53, %v3993_v13  ;;  %v4195_v54 = vsel %vm4191_vm9, %v4157_v25, 0.0 }
 0x1f9   : > { %3867 = vst.msk [vmem:[%s6835_s13] sm:$0xf] %vm3866_vm8, %v4813_v59  ;;  %v4271_v55 = vmul.f32 %v5454_v23, %v4155_v22  ;;  %v4814_v17 = vpack.c.bf16 %v5456_v2, %v5456_v2  ;;  %v4156_v42 = vmul.f32 %v5783_v20, %v5456_v2  ;;  %v4192_v56 = vsel %vm4191_vm9, %v4155_v22, 0.0 }
 0x1fa   : > { %3870 = vst.msk [vmem:[%s6835_s13 + $0xc] sm:$0xf] %vm3866_vm8, %v4816_v26  ;;  %v4310_v47 = vsel %vm4191_vm9, %v4273_v36, 0.0  ;;  %v4274_v57 = vmul.f32 %v5455_v53, %v4158_v51  ;;  %v4197_v18 = vsel %vm4191_vm9, %v4158_v51, 0.0 }
 0x1fb   : > { %3868 = vst.msk [vmem:[%s6835_s13 + $0x4] sm:$0xf] %vm3866_vm8, %v4814_v17  ;;  %v4193_v4 = vsel %vm4191_vm9, %v4156_v42, 0.0  ;;  %v4272_v3 = vmul.f32 %v5456_v2, %v4156_v42  ;;  %v5421_v37 = vpop.f32.mrb[4].mxu0  ;;  %v4307_v52 = vsel %vm4191_vm9, %v4271_v55, 0.0  ;;  %v6873_v2 = vpop.permute.xlu1 %4057 }
 0x1fc   : > { %v4194_v1 = vadd.f32 %v4193_v4, %v4192_v56  ;;  %v5457_v19 = vadd.f32 %v5421_v37, %v6783_v14  ;;  %v3559_v10 = vpop.f32.mrb[5].mxu0  ;;  %v6860_v14 = vpop.permute.xlu0 %4052  ;;  %v4312_v25 = vsel %vm4191_vm9, %v4274_v57, 0.0 }
 0x1fd   : > { %v4308_v21 = vsel %vm4191_vm9, %v4272_v3, 0.0  ;;  %v5458_v62 = vadd.f32 %v3559_v10, %v6785_v0  ;;  %v5422_v30 = vpop.f32.mrb[6].mxu0 }
 0x1fe   : > { %v4196_v13 = vadd.f32 %v4195_v54, %v4194_v1  ;;  %v4309_v40 = vadd.f32 %v4308_v21, %v4307_v52  ;;  %v4819_v50 = vpack.c.bf16 %v5457_v19, %v5457_v19  ;;  %v3562_v27 = vpop.f32.mrb[7].mxu0  ;;  %v5459_v20 = vadd.f32 %v5422_v30, %v6787_v60 }
 0x1ff   : > { %v4817_v44 = vpack.c.bf16 %v5458_v62, %v5458_v62  ;;  %v4159_v11 = vmul.f32 %v5458_v62, %v6801_v31  ;;  %v5460_v23 = vadd.f32 %v3562_v27, %v6789_v32  ;;  %v4161_v0 = vmul.f32 %v5457_v19, %v6811_v38 }
 0x200   : > { %v4311_v6 = vadd.f32 %v4310_v47, %v4309_v40  ;;  %3873 = vst.msk [vmem:[%s6835_s13 + $0x18] sm:$0xf] %vm3866_vm8, %v4819_v50  ;;  %v4198_v41 = vadd.f32 %v4197_v18, %v4196_v13  ;;  %v4820_v31 = vpack.c.bf16 %v5459_v20, %v5459_v20  ;;  %v4162_v32 = vmul.f32 %v5459_v20, %v6815_v12  ;;  %v6882_v56 = vpop.permute.xlu0 %4062  ;;  %v6895_v13 = vpop.permute.xlu1 %4067 }
 0x201   : > { %3871 = vst.msk [vmem:[%s6835_s13 + $0x10] sm:$0xf] %vm3866_vm8, %v4817_v44  ;;  %v4199_v53 = vsel %vm4191_vm9, %v4159_v11, 0.0  ;;  %v4275_v28 = vmul.f32 %v5458_v62, %v4159_v11  ;;  %v4818_v22 = vpack.c.bf16 %v5460_v23, %v5460_v23  ;;  %v4160_v38 = vmul.f32 %v5460_v23, %v6807_v39 }
 0x202   : > { %v4200_v59 = vadd.f32 %v4199_v53, %v4198_v41  ;;  %v4313_v60 = vadd.f32 %v4312_v25, %v4311_v6  ;;  %3874 = vst.msk [vmem:[%s6835_s13 + $0x1c] sm:$0xf] %vm3866_vm8, %v4820_v31  ;;  %v4277_v55 = vmul.f32 %v5457_v19, %v4161_v0  ;;  %v4203_v12 = vsel %vm4191_vm9, %v4161_v0, 0.0 }
 0x203   : > { %v4314_v36 = vsel %vm4191_vm9, %v4275_v28, 0.0  ;;  %v5425_v26 = vpop.f32.mrb[8].mxu0  ;;  %3872 = vst.msk [vmem:[%s6835_s13 + $0x14] sm:$0xf] %vm3866_vm8, %v4818_v22  ;;  %v4201_v4 = vsel %vm4191_vm9, %v4160_v38, 0.0  ;;  %v4276_v3 = vmul.f32 %v5460_v23, %v4160_v38  ;;  %v4278_v39 = vmul.f32 %v5459_v20, %v4162_v32 }
 0x204   : > { %v4315_v51 = vadd.f32 %v4314_v36, %v4313_v60  ;;  %v5461_v17 = vadd.f32 %v5425_v26, %v6791_v63  ;;  %v3575_v42 = vpop.f32.mrb[9].mxu0  ;;  %v4202_v47 = vadd.f32 %v4201_v4, %v4200_v59  ;;  %v4318_v62 = vsel %vm4191_vm9, %v4277_v55, 0.0  ;;  %v6902_v20 = vpop.permute.xlu0 %4072 }
 0x205   : > { %v5462_v37 = vadd.f32 %v3575_v42, %v6793_v49  ;;  %v5426_v54 = vpop.f32.mrb[10].mxu0  ;;  %v4316_v63 = vsel %vm4191_vm9, %v4276_v3, 0.0 }
 0x206   : > { %v4823_v1 = vpack.c.bf16 %v5461_v17, %v5461_v17  ;;  %v5463_v19 = vadd.f32 %v5426_v54, %v6795_v33  ;;  %v3578_v10 = vpop.f32.mrb[11].mxu0  ;;  %v4204_v30 = vadd.f32 %v4203_v12, %v4202_v47  ;;  %v4317_v18 = vadd.f32 %v4316_v63, %v4315_v51 }
 0x207   : > { %v4821_v52 = vpack.c.bf16 %v5462_v37, %v5462_v37  ;;  %v4163_v57 = vmul.f32 %v5462_v37, %v6823_v16  ;;  %v5464_v21 = vadd.f32 %v3578_v10, %v6797_v15  ;;  %v4165_v49 = vmul.f32 %v5461_v17, %v6827_v46 }
 0x208   : > { %3877 = vst.msk [vmem:[%s6835_s13 + $0x28] sm:$0xf] %vm3866_vm8, %v4823_v1  ;;  %v4205_v33 = vsel %vm4191_vm9, %v4162_v32, 0.0  ;;  %v4824_v15 = vpack.c.bf16 %v5463_v19, %v5463_v19  ;;  %v4319_v50 = vadd.f32 %v4318_v62, %v4317_v18  ;;  %v4166_v44 = vmul.f32 %v5463_v19, %v6830_v45  ;;  %v6930_v1 = vpop.permute.xlu0 %4082 }
 0x209   : > { %3875 = vst.msk [vmem:[%s6835_s13 + $0x20] sm:$0xf] %vm3866_vm8, %v4821_v52  ;;  %v4207_v40 = vsel %vm4191_vm9, %v4163_v57, 0.0  ;;  %v4279_v16 = vmul.f32 %v5462_v37, %v4163_v57  ;;  %v4206_v27 = vadd.f32 %v4205_v33, %v4204_v30  ;;  %v4822_v11 = vpack.c.bf16 %v5464_v21, %v5464_v21 }
 0x20a   : > { %v4320_v46 = vsel %vm4191_vm9, %v4278_v39, 0.0  ;;  %3878 = vst.msk [vmem:[%s6835_s13 + $0x2c] sm:$0xf] %vm3866_vm8, %v4824_v15  ;;  %v4164_v6 = vmul.f32 %v5464_v21, %v6825_v58  ;;  %v4281_v41 = vmul.f32 %v5461_v17, %v4165_v49  ;;  %v4211_v31 = vsel %vm4191_vm9, %v4165_v49, 0.0  ;;  %v6917_v17 = vpop.permute.xlu1 %4077 }
 0x20b   : > { %v4322_v23 = vsel %vm4191_vm9, %v4279_v16, 0.0  ;;  %v5429_v0 = vpop.f32.mrb[12].mxu0  ;;  %v4208_v25 = vadd.f32 %v4207_v40, %v4206_v27  ;;  %v4321_v53 = vadd.f32 %v4320_v46, %v4319_v50  ;;  %3876 = vst.msk [vmem:[%s6835_s13 + $0x24] sm:$0xf] %vm3866_vm8, %v4822_v11  ;;  %v4282_v58 = vmul.f32 %v5463_v19, %v4166_v44 }
 0x20c   : > { %v5465_v28 = vadd.f32 %v5429_v0, %v6799_v8  ;;  %v3591_v45 = vpop.f32.mrb[13].mxu0  ;;  %v4209_v59 = vsel %vm4191_vm9, %v4164_v6, 0.0  ;;  %v4280_v60 = vmul.f32 %v5464_v21, %v4164_v6  ;;  %v4326_v3 = vsel %vm4191_vm9, %v4281_v41, 0.0  ;;  %v6955_v41 = vpop.permute.xlu0 %4092 }
 0x20d   : > { %v5466_v32 = vadd.f32 %v3591_v45, %v6803_v29  ;;  %v5430_v22 = vpop.f32.mrb[14].mxu0  ;;  %v4323_v36 = vadd.f32 %v4322_v23, %v4321_v53  ;;  %v4210_v38 = vadd.f32 %v4209_v59, %v4208_v25  ;;  %v4213_v37 = vsel %vm4191_vm9, %v4166_v44, 0.0 }
 0x20e   : > { %v4827_v26 = vpack.c.bf16 %v5465_v28, %v5465_v28  ;;  %v3594_v55 = vpop.f32.mrb[15].mxu0  ;;  %v4324_v8 = vsel %vm4191_vm9, %v4280_v60, 0.0  ;;  %v5467_v4 = vadd.f32 %v5430_v22, %v6805_v7  ;;  %v4169_v19 = vmul.f32 %v5465_v28, %v6854_v43  ;;  %v6945_v50 = vpop.permute.xlu1 %4087 }
 0x20f   : > { %v4825_v42 = vpack.c.bf16 %v5466_v32, %v5466_v32  ;;  %v4167_v12 = vmul.f32 %v5466_v32, %v6837_v5  ;;  %v4212_v54 = vadd.f32 %v4211_v31, %v4210_v38  ;;  %v4325_v39 = vadd.f32 %v4324_v8, %v4323_v36 }
 0x210   : > { %v6915_v51 = vpop.f32.mrb[20].mxu1  ;;  %3881 = vst.msk [vmem:[%s6835_s13 + $0x38] sm:$0xf] %vm3866_vm8, %v4827_v26  ;;  %v4828_v10 = vpack.c.bf16 %v5467_v4, %v5467_v4  ;;  %v5468_v21 = vadd.f32 %v3594_v55, %v6809_v61  ;;  %v4328_v62 = vsel %vm4191_vm9, %v4282_v58, 0.0  ;;  %v4170_v43 = vmul.f32 %v5467_v4, %v6860_v14 }
 0x211   : > { %v6922_v29 = vpop.f32.mrb[21].mxu1  ;;  %3879 = vst.msk [vmem:[%s6835_s13 + $0x30] sm:$0xf] %vm3866_vm8, %v4825_v42  ;;  %v4215_v7 = vsel %vm4191_vm9, %v4167_v12, 0.0  ;;  %v4283_v5 = vmul.f32 %v5466_v32, %v4167_v12  ;;  %v4327_v52 = vadd.f32 %v4326_v3, %v4325_v39  ;;  %v4214_v57 = vadd.f32 %v4213_v37, %v4212_v54 }
 0x212   : > { %v6928_v47 = vpop.f32.mrb[22].mxu1  ;;  %3882 = vst.msk [vmem:[%s6835_s13 + $0x3c] sm:$0xf] %vm3866_vm8, %v4828_v10  ;;  %v4826_v40 = vpack.c.bf16 %v5468_v21, %v5468_v21  ;;  %v4168_v16 = vmul.f32 %v5468_v21, %v6841_v34  ;;  %v4285_v27 = vmul.f32 %v5465_v28, %v4169_v19  ;;  %v4286_v45 = vmul.f32 %v5467_v4, %v4170_v43  ;;  %v6977_v3 = vpop.permute.xlu1 %4097 }
 0x213   : > { %v6936_v63 = vpop.f32.mrb[23].mxu1  ;;  %v4330_v30 = vsel %vm4191_vm9, %v4283_v5, 0.0  ;;  %v5433_v18 = vpop.f32.mrb[16].mxu0  ;;  %v4216_v49 = vadd.f32 %v4215_v7, %v4214_v57  ;;  %v4329_v33 = vadd.f32 %v4328_v62, %v4327_v52  ;;  %v4221_v38 = vsel %vm4191_vm9, %v4170_v43, 0.0 }
 0x214   : > { %v3607_v15 = vpop.f32.mrb[17].mxu0  ;;  %v5469_v61 = vadd.f32 %v5433_v18, %v6813_v9  ;;  %3880 = vst.msk [vmem:[%s6835_s13 + $0x34] sm:$0xf] %vm3866_vm8, %v4826_v40  ;;  %v4217_v14 = vsel %vm4191_vm9, %v4168_v16, 0.0  ;;  %v4284_v23 = vmul.f32 %v5468_v21, %v4168_v16  ;;  %v4219_v9 = vsel %vm4191_vm9, %v4169_v19, 0.0  ;;  %v6983_v7 = vpop.permute.xlu0 %4102 }
 0x215   : > { %v5470_v44 = vadd.f32 %v3607_v15, %v6817_v35  ;;  %v5434_v11 = vpop.f32.mrb[18].mxu0  ;;  %v4331_v46 = vadd.f32 %v4330_v30, %v4329_v33  ;;  %v4218_v25 = vadd.f32 %v4217_v14, %v4216_v49  ;;  %v4334_v32 = vsel %vm4191_vm9, %v4285_v27, 0.0 }
 0x216   : > { %v5471_v6 = vadd.f32 %v5434_v11, %v6819_v48  ;;  %v3610_v0 = vpop.f32.mrb[19].mxu0  ;;  %v4831_v35 = vpack.c.bf16 %v5469_v61, %v5469_v61  ;;  %v4332_v31 = vsel %vm4191_vm9, %v4284_v23, 0.0  ;;  %v4173_v26 = vmul.f32 %v5469_v61, %v6895_v13  ;;  %v4108_v14 = vpop.permute.xlu1 %4107 }
 0x217   : > { %v4829_v53 = vpack.c.bf16 %v5470_v44, %v5470_v44  ;;  %v4171_v48 = vmul.f32 %v5470_v44, %v6873_v2  ;;  %v4220_v22 = vadd.f32 %v4219_v9, %v4218_v25  ;;  %v4333_v36 = vadd.f32 %v4332_v31, %v4331_v46 }
 0x218   : > { %v6953_v34 = vpop.f32.mrb[24].mxu1  ;;  %v4832_v59 = vpack.c.bf16 %v5471_v6, %v5471_v6  ;;  %3885 = vst.msk [vmem:[%s6835_s13 + $0x48] sm:$0xf] %vm3866_vm8, %v4831_v35  ;;  %v5472_v12 = vadd.f32 %v3610_v0, %v6821_v24  ;;  %v4336_v37 = vsel %vm4191_vm9, %v4286_v45, 0.0  ;;  %v4174_v39 = vmul.f32 %v5471_v6, %v6902_v20  ;;  %v4113_v45 = vpop.permute.xlu0 %4112 }
 0x219   : > { %v6958_v28 = vpop.f32.mrb[25].mxu1  ;;  %3883 = vst.msk [vmem:[%s6835_s13 + $0x40] sm:$0xf] %vm3866_vm8, %v4829_v53  ;;  %v4223_v55 = vsel %vm4191_vm9, %v4171_v48, 0.0  ;;  %v4287_v2 = vmul.f32 %v5470_v44, %v4171_v48  ;;  %v4335_v8 = vadd.f32 %v4334_v32, %v4333_v36  ;;  %v4222_v42 = vadd.f32 %v4221_v38, %v4220_v22 }
 0x21a   : > { %v6962_v60 = vpop.f32.mrb[26].mxu1  ;;  %3886 = vst.msk [vmem:[%s6835_s13 + $0x4c] sm:$0xf] %vm3866_vm8, %v4832_v59  ;;  %v4830_v52 = vpack.c.bf16 %v5472_v12, %v5472_v12  ;;  %v4172_v24 = vmul.f32 %v5472_v12, %v6882_v56  ;;  %v4289_v21 = vmul.f32 %v5469_v61, %v4173_v26  ;;  %v4227_v16 = vsel %vm4191_vm9, %v4173_v26, 0.0 }
 0x21b   : > { %v6969_v58 = vpop.f32.mrb[27].mxu1  ;;  %v5437_v4 = vpop.f32.mrb[20].mxu0  ;;  %v4338_v54 = vsel %vm4191_vm9, %v4287_v2, 0.0  ;;  %v4224_v5 = vadd.f32 %v4223_v55, %v4222_v42  ;;  %v4337_v10 = vadd.f32 %v4336_v37, %v4335_v8  ;;  %v4290_v15 = vmul.f32 %v5471_v6, %v4174_v39 }
 0x21c   : > { %v5473_v13 = vadd.f32 %v5437_v4, %v6915_v51  ;;  %v3623_v19 = vpop.f32.mrb[21].mxu0  ;;  %3884 = vst.msk [vmem:[%s6835_s13 + $0x44] sm:$0xf] %vm3866_vm8, %v4830_v52  ;;  %v4225_v49 = vsel %vm4191_vm9, %v4172_v24, 0.0  ;;  %v4288_v33 = vmul.f32 %v5472_v12, %v4172_v24  ;;  %v4229_v23 = vsel %vm4191_vm9, %v4174_v39, 0.0 }
 0x21d   : > { %v5438_v57 = vpop.f32.mrb[22].mxu0  ;;  %v5474_v30 = vadd.f32 %v3623_v19, %v6922_v29  ;;  %v4339_v51 = vadd.f32 %v4338_v54, %v4337_v10  ;;  %v4226_v29 = vadd.f32 %v4225_v49, %v4224_v5  ;;  %v4342_v25 = vsel %vm4191_vm9, %v4289_v21, 0.0  ;;  %v4118_v19 = vpop.permute.xlu1 %4117 }
 0x21e   : > { %v4835_v62 = vpack.c.bf16 %v5473_v13, %v5473_v13  ;;  %v5475_v43 = vadd.f32 %v5438_v57, %v6928_v47  ;;  %v3626_v20 = vpop.f32.mrb[23].mxu0  ;;  %v4340_v61 = vsel %vm4191_vm9, %v4288_v33, 0.0  ;;  %v4177_v44 = vmul.f32 %v5473_v13, %v6945_v50 }
 0x21f   : > { %v5476_v40 = vadd.f32 %v3626_v20, %v6936_v63  ;;  %v4833_v47 = vpack.c.bf16 %v5474_v30, %v5474_v30  ;;  %v4175_v11 = vmul.f32 %v5474_v30, %v6917_v17  ;;  %v4228_v6 = vadd.f32 %v4227_v16, %v4226_v29 }
 0x220   : > { %v6988_v18 = vpop.f32.mrb[28].mxu1  ;;  %3889 = vst.msk [vmem:[%s6835_s13 + $0x58] sm:$0xf] %vm3866_vm8, %v4835_v62  ;;  %v4836_v63 = vpack.c.bf16 %v5475_v43, %v5475_v43  ;;  %v4341_v0 = vadd.f32 %v4340_v61, %v4339_v51  ;;  %v4178_v17 = vmul.f32 %v5475_v43, %v6955_v41  ;;  %v4344_v36 = vsel %vm4191_vm9, %v4290_v15, 0.0 }
 0x221   : > { %v6994_v56 = vpop.f32.mrb[29].mxu1  ;;  %3887 = vst.msk [vmem:[%s6835_s13 + $0x50] sm:$0xf] %vm3866_vm8, %v4833_v47  ;;  %v4834_v9 = vpack.c.bf16 %v5476_v40, %v5476_v40  ;;  %v4231_v35 = vsel %vm4191_vm9, %v4175_v11, 0.0  ;;  %v4291_v53 = vmul.f32 %v5474_v30, %v4175_v11  ;;  %v4230_v48 = vadd.f32 %v4229_v23, %v4228_v6  ;;  %v4123_v30 = vpop.permute.xlu0 %4122 }
 0x222   : > { %v6999_v27 = vpop.f32.mrb[30].mxu1  ;;  %3890 = vst.msk [vmem:[%s6835_s13 + $0x5c] sm:$0xf] %vm3866_vm8, %v4836_v63  ;;  %v4343_v31 = vadd.f32 %v4342_v25, %v4341_v0  ;;  %v4176_v59 = vmul.f32 %v5476_v40, %v6930_v1  ;;  %v4293_v38 = vmul.f32 %v5473_v13, %v4177_v44  ;;  %v4235_v57 = vsel %vm4191_vm9, %v4177_v44, 0.0 }
 0x223   : > { %v7004_v46 = vpop.f32.mrb[31].mxu1  ;;  %v5441_v50 = vpop.f32.mrb[24].mxu0  ;;  %3888 = vst.msk [vmem:[%s6835_s13 + $0x54] sm:$0xf] %vm3866_vm8, %v4834_v9  ;;  %v4346_v26 = vsel %vm4191_vm9, %v4291_v53, 0.0  ;;  %v4232_v41 = vadd.f32 %v4231_v35, %v4230_v48 }
 0x224   : > { %v5477_v32 = vadd.f32 %v5441_v50, %v6953_v34  ;;  %v3639_v22 = vpop.f32.mrb[25].mxu0  ;;  %v4345_v8 = vadd.f32 %v4344_v36, %v4343_v31  ;;  %v4233_v42 = vsel %vm4191_vm9, %v4176_v59, 0.0  ;;  %v4292_v12 = vmul.f32 %v5476_v40, %v4176_v59  ;;  %v4128_v9 = vpop.permute.xlu1 %4127 }
 0x225   : > { %v5478_v55 = vadd.f32 %v3639_v22, %v6958_v28  ;;  %v5442_v2 = vpop.f32.mrb[26].mxu0  ;;  %v4294_v34 = vmul.f32 %v5475_v43, %v4178_v17  ;;  %v4234_v5 = vadd.f32 %v4233_v42, %v4232_v41  ;;  %v4350_v21 = vsel %vm4191_vm9, %v4293_v38, 0.0 }
 0x226   : > { %v3642_v4 = vpop.f32.mrb[27].mxu0  ;;  %v4839_v37 = vpack.c.bf16 %v5477_v32, %v5477_v32  ;;  %v4347_v28 = vadd.f32 %v4346_v26, %v4345_v8  ;;  %v4348_v10 = vsel %vm4191_vm9, %v4292_v12, 0.0  ;;  %v5479_v52 = vadd.f32 %v5442_v2, %v6962_v60 }
 0x227   : > { %v4837_v54 = vpack.c.bf16 %v5478_v55, %v5478_v55  ;;  %v4179_v39 = vmul.f32 %v5478_v55, %v6977_v3  ;;  %v4236_v43 = vadd.f32 %v4235_v57, %v4234_v5  ;;  %v4181_v51 = vmul.f32 %v5477_v32, %v4108_v14 }
 0x228   : > { %v7022_v1 = vpop.f32.mrb[32].mxu1  ;;  %3893 = vst.msk [vmem:[%s6835_s13 + $0x68] sm:$0xf] %vm3866_vm8, %v4839_v37  ;;  %v4349_v20 = vadd.f32 %v4348_v10, %v4347_v28  ;;  %v4840_v49 = vpack.c.bf16 %v5479_v52, %v5479_v52  ;;  %v4237_v60 = vsel %vm4191_vm9, %v4178_v17, 0.0  ;;  %v4352_v33 = vsel %vm4191_vm9, %v4294_v34, 0.0  ;;  %v4138_v37 = vpop.permute.xlu1 %4137 }
 0x229   : > { %v7025_v13 = vpop.f32.mrb[33].mxu1  ;;  %3891 = vst.msk [vmem:[%s6835_s13 + $0x60] sm:$0xf] %vm3866_vm8, %v4837_v54  ;;  %v4295_v3 = vmul.f32 %v5478_v55, %v4179_v39  ;;  %v4239_v40 = vsel %vm4191_vm9, %v4179_v39, 0.0  ;;  %v5480_v16 = vadd.f32 %v3642_v4, %v6969_v58  ;;  %v4238_v47 = vadd.f32 %v4237_v60, %v4236_v43 }
 0x22a   : > { %v7029_v24 = vpop.f32.mrb[34].mxu1  ;;  %v4351_v29 = vadd.f32 %v4350_v21, %v4349_v20  ;;  %3894 = vst.msk [vmem:[%s6835_s13 + $0x6c] sm:$0xf] %vm3866_vm8, %v4840_v49  ;;  %v4182_v44 = vmul.f32 %v5479_v52, %v4113_v45  ;;  %v4297_v58 = vmul.f32 %v5477_v32, %v4181_v51  ;;  %v4243_v22 = vsel %vm4191_vm9, %v4181_v51, 0.0 }
 0x22b   : > { %v7037_v62 = vpop.f32.mrb[35].mxu1  ;;  %v5445_v15 = vpop.f32.mrb[28].mxu0  ;;  %v4354_v61 = vsel %vm4191_vm9, %v4295_v3, 0.0  ;;  %v4838_v63 = vpack.c.bf16 %v5480_v16, %v5480_v16  ;;  %v4180_v14 = vmul.f32 %v5480_v16, %v6983_v7  ;;  %v4240_v25 = vadd.f32 %v4239_v40, %v4238_v47 }
 0x22c   : > { %v3655_v11 = vpop.f32.mrb[29].mxu0  ;;  %v5481_v23 = vadd.f32 %v5445_v15, %v6988_v18  ;;  %v4353_v35 = vadd.f32 %v4352_v33, %v4351_v29  ;;  %v4133_v18 = vpop.permute.xlu0 %4132  ;;  %v4298_v36 = vmul.f32 %v5479_v52, %v4182_v44  ;;  %v4358_v26 = vsel %vm4191_vm9, %v4297_v58, 0.0 }
 0x22d   : > { %v5482_v6 = vadd.f32 %v3655_v11, %v6994_v56  ;;  %v5446_v0 = vpop.f32.mrb[30].mxu0  ;;  %3892 = vst.msk [vmem:[%s6835_s13 + $0x64] sm:$0xf] %vm3866_vm8, %v4838_v63  ;;  %v4241_v50 = vsel %vm4191_vm9, %v4180_v14, 0.0  ;;  %v4296_v45 = vmul.f32 %v5480_v16, %v4180_v14  ;;  %v4245_v8 = vsel %vm4191_vm9, %v4182_v44, 0.0  ;;  %v4148_v63 = vpop.permute.xlu1 %4147 }
 0x22e   : > { %v5483_v53 = vadd.f32 %v5446_v0, %v6999_v27  ;;  %v3658_v17 = vpop.f32.mrb[31].mxu0  ;;  %v4843_v7 = vpack.c.bf16 %v5481_v23, %v5481_v23  ;;  %v4185_v31 = vmul.f32 %v5481_v23, %v4128_v9  ;;  %v4355_v48 = vadd.f32 %v4354_v61, %v4353_v35 }
 0x22f   : > { %v4242_v56 = vadd.f32 %v4241_v50, %v4240_v25  ;;  %v4841_v59 = vpack.c.bf16 %v5482_v6, %v5482_v6  ;;  %v4183_v32 = vmul.f32 %v5482_v6, %v4118_v19  ;;  %v4356_v27 = vsel %vm4191_vm9, %v4296_v45, 0.0 }
 0x230   : > { %3897 = vst.msk [vmem:[%s6835_s13 + $0x78] sm:$0xf] %vm3866_vm8, %v4843_v7  ;;  %v4844_v38 = vpack.c.bf16 %v5483_v53, %v5483_v53  ;;  %v4357_v2 = vadd.f32 %v4356_v27, %v4355_v48  ;;  %v4301_v42 = vmul.f32 %v5481_v23, %v4185_v31  ;;  %v5484_v4 = vadd.f32 %v3658_v17, %v7004_v46  ;;  %v4143_v43 = vpop.permute.xlu0 %4142 }
 0x231   : > { %v4244_v55 = vadd.f32 %v4243_v22, %v4242_v56  ;;  %3895 = vst.msk [vmem:[%s6835_s13 + $0x70] sm:$0xf] %vm3866_vm8, %v4841_v59  ;;  %v4299_v41 = vmul.f32 %v5482_v6, %v4183_v32  ;;  %v4247_v12 = vsel %vm4191_vm9, %v4183_v32, 0.0  ;;  %v4186_v19 = vmul.f32 %v5483_v53, %v4133_v18 }
 0x232   : > { %3898 = vst.msk [vmem:[%s6835_s13 + $0x7c] sm:$0xf] %vm3866_vm8, %v4844_v38  ;;  %v4359_v54 = vadd.f32 %v4358_v26, %v4357_v2  ;;  %v4360_v10 = vsel %vm4191_vm9, %v4298_v36, 0.0  ;;  %v4842_v57 = vpack.c.bf16 %v5484_v4, %v5484_v4  ;;  %v4184_v21 = vmul.f32 %v5484_v4, %v4123_v30 }
 0x233   : > { %v5449_v34 = vpop.f32.mrb[32].mxu0  ;;  %v4246_v39 = vadd.f32 %v4245_v8, %v4244_v55  ;;  %v4362_v52 = vsel %vm4191_vm9, %v4299_v41, 0.0  ;;  %v4251_v60 = vsel %vm4191_vm9, %v4185_v31, 0.0  ;;  %v4366_v16 = vsel %vm4191_vm9, %v4301_v42, 0.0 }
 0x234   : > { %v5485_v28 = vadd.f32 %v5449_v34, %v7022_v1  ;;  %v3671_v5 = vpop.f32.mrb[33].mxu0  ;;  %v4361_v46 = vadd.f32 %v4360_v10, %v4359_v54  ;;  %3896 = vst.msk [vmem:[%s6835_s13 + $0x74] sm:$0xf] %vm3866_vm8, %v4842_v57  ;;  %v4249_v1 = vsel %vm4191_vm9, %v4184_v21, 0.0  ;;  %v4300_v33 = vmul.f32 %v5484_v4, %v4184_v21  ;;  %v4153_v35 = vpop.permute.xlu0 %4152 }
 0x235   : > { %v5450_v3 = vpop.f32.mrb[34].mxu0  ;;  %v4248_v20 = vadd.f32 %v4247_v12, %v4246_v39  ;;  %v5486_v40 = vadd.f32 %v3671_v5, %v7025_v13  ;;  %v4302_v15 = vmul.f32 %v5483_v53, %v4186_v19  ;;  %v4253_v14 = vsel %vm4191_vm9, %v4186_v19, 0.0 }
 0x236   : > { %v4847_v51 = vpack.c.bf16 %v5485_v28, %v5485_v28  ;;  %v3674_v49 = vpop.f32.mrb[35].mxu0  ;;  %v4363_v30 = vadd.f32 %v4362_v52, %v4361_v46  ;;  %v4364_v47 = vsel %vm4191_vm9, %v4300_v33, 0.0  ;;  %v5487_v11 = vadd.f32 %v5450_v3, %v7029_v24 }
 0x237   : > { %v4250_v29 = vadd.f32 %v4249_v1, %v4248_v20  ;;  %v4845_v61 = vpack.c.bf16 %v5486_v40, %v5486_v40  ;;  %v4187_v44 = vmul.f32 %v5486_v40, %v4138_v37  ;;  %v5488_v6 = vadd.f32 %v3674_v49, %v7037_v62 }
 0x238   : > { %3901 = vst.msk [vmem:[%s6835_s13 + $0x88] sm:$0xf] %vm3866_vm8, %v4847_v51  ;;  %v4365_v13 = vadd.f32 %v4364_v47, %v4363_v30  ;;  %v4189_v0 = vmul.f32 %v5485_v28, %v4148_v63  ;;  %v4848_v25 = vpack.c.bf16 %v5487_v11, %v5487_v11  ;;  %v4368_v45 = vsel %vm4191_vm9, %v4302_v15, 0.0 }
 0x239   : > { %v4252_v23 = vadd.f32 %v4251_v60, %v4250_v29  ;;  %3899 = vst.msk [vmem:[%s6835_s13 + $0x80] sm:$0xf] %vm3866_vm8, %v4845_v61  ;;  %v4255_v9 = vsel %vm4191_vm9, %v4187_v44, 0.0  ;;  %v4303_v58 = vmul.f32 %v5486_v40, %v4187_v44  ;;  %v4846_v24 = vpack.c.bf16 %v5488_v6, %v5488_v6 }
 0x23a   : > { %v4367_v53 = vadd.f32 %v4366_v16, %v4365_v13  ;;  %v4188_v50 = vmul.f32 %v5488_v6, %v4143_v43  ;;  %3902 = vst.msk [vmem:[%s6835_s13 + $0x8c] sm:$0xf] %vm3866_vm8, %v4848_v25  ;;  %v4190_v62 = vmul.f32 %v5487_v11, %v4153_v35  ;;  %v4305_v59 = vmul.f32 %v5485_v28, %v4189_v0 }
 0x23b   : > { %v4254_v17 = vadd.f32 %v4253_v14, %v4252_v23  ;;  %v4370_v7 = vsel %vm4191_vm9, %v4303_v58, 0.0  ;;  %3900 = vst.msk [vmem:[%s6835_s13 + $0x84] sm:$0xf] %vm3866_vm8, %v4846_v24  ;;  %v4259_v27 = vsel %vm4191_vm9, %v4189_v0, 0.0 }
 0x23c   : > { %v4369_v18 = vadd.f32 %v4368_v45, %v4367_v53  ;;  %v4257_v48 = vsel %vm4191_vm9, %v4188_v50, 0.0  ;;  %v4304_v56 = vmul.f32 %v5488_v6, %v4188_v50  ;;  %v4306_v38 = vmul.f32 %v5487_v11, %v4190_v62 }
 0x23d   : > { %v4256_v31 = vadd.f32 %v4255_v9, %v4254_v17  ;;  %v4374_v2 = vsel %vm4191_vm9, %v4305_v59, 0.0  ;;  %v4261_v41 = vsel %vm4191_vm9, %v4190_v62, 0.0 }
 0x23e   : > { %v4371_v32 = vadd.f32 %v4370_v7, %v4369_v18  ;;  %v4372_v36 = vsel %vm4191_vm9, %v4304_v56, 0.0  ;;  %v4376_v12 = vsel %vm4191_vm9, %v4306_v38, 0.0 }
 0x23f   : > { %v4258_v22 = vadd.f32 %v4257_v48, %v4256_v31 }
 0x240   : > { %v4373_v55 = vadd.f32 %v4372_v36, %v4371_v32 }
 0x241   : > { %v4260_v26 = vadd.f32 %v4259_v27, %v4258_v22 }
 0x242   : > { %v4375_v42 = vadd.f32 %v4374_v2, %v4373_v55 }
 0x243   : > { %v4262_v8 = vadd.f32 %v4261_v41, %v4260_v26 }
 0x244   : > { %v4377_v34 = vadd.f32 %v4376_v12, %v4375_v42 }
 0x245   : > { %v4263_v4 = vrot.slane %v4262_v8, 4 }
 0x246   : > { %v4378_v54 = vrot.slane %v4377_v34, 4 }
 0x247   : > { %v4264_v37 = vadd.f32 %v4263_v4, %v4262_v8 }
 0x248   : > { %v4379_v19 = vadd.f32 %v4378_v54, %v4377_v34 }
 0x249   : > { %v4265_v39 = vrot.slane %v4264_v37, 2 }
 0x24a   : > { %v4380_v5 = vrot.slane %v4379_v19, 2 }
 0x24b   : > { %v4266_v28 = vadd.f32 %v4265_v39, %v4264_v37 }
 0x24c   : > { %v4381_v52 = vadd.f32 %v4380_v5, %v4379_v19 }
 0x24d   : > { %v4267_v10 = vrot.slane %v4266_v28, 1 }
 0x24e   : > { %v4382_v21 = vrot.slane %v4381_v52, 1 }
 0x24f   : > { %v4268_v57 = vadd.f32 %v4267_v10, %v4266_v28 }
 0x250   : > { %v4383_v3 = vadd.f32 %v4382_v21, %v4381_v52 }
 0x251   : > { %4270 = vst.msk [vmem:[%s272_s21] sm:$0x1] %vm4269_vm10, %v4268_v57 }
 0x252   : > { %4384 = vst.msk [vmem:[%s272_s21 + $0x1] sm:$0x1] %vm4269_vm10, %v4383_v3 }
 0x253 PF: > { %s15_s17 = sadd.s32 1, %s5883_s17   ;;  %s7113_s15 = smov %s5879_s16 }
 0x254   : > { %p12_p5 = scmp.ge.s32.totalorder %s15_s17, 4   ;;  %s7114_s16 = smov %s7116_s18 }
 0x256   :  { %14 = sbr.rel (!%p12_p5) target bundleno = 2 (0x2), region = 85 }

</bundles_post_ra>
